<compile_context>
chip_gen: v7x
topology: tpu7x:2x2x1
jax: 0.10.0
libtpu: 0.0.40
codegen_flags: <defaults>
</compile_context>

<pallas_src>
import jax
import jax.numpy as jnp
import numpy as np
from jax.experimental import pallas as pl
from jax.experimental.pallas import tpu as pltpu

BN_EPS = 1e-5

# Flattened-spatial row counts (padded to multiples of the bf16 sublane pack = 16
# so every in-kernel row slice is tile aligned).
M1, M1P = 13 * 13, 176      # conv1 output map
M2, M2P = 6 * 6, 48         # conv2 output map
M3 = 4 * 4                  # conv3 output map (already a multiple of 16)
K1P = 16                    # conv1 im2col K (9 taps) padded to 16


# ------------------------------ fused Pallas kernel ---------------------------
def _disc_fused_kernel(a1_ref, w1_ref, b1_ref,
                       s2_ref, w2_ref, sc2_ref, sh2_ref,
                       s3_ref, w3_ref, sc3_ref, sh3_ref,
                       wfc_ref, bfc_ref, o_ref):
    """One batch element per grid step: conv1..conv3 + BN + ReLU + fc + sigmoid."""
    # ---- conv1 (1->128, s=2): one small matmul; Dropout(0.8) is identity (eval).
    h1 = jnp.dot(a1_ref[0], w1_ref[...], preferred_element_type=jnp.float32)
    h1 = jnp.maximum(h1 + b1_ref[...], 0.0).astype(jnp.bfloat16)          # [176,128]

    # ---- conv2 (128->256, s=2): in-kernel im2col via a 0/1 selection matmul,
    #      lane-concat of the 9 tap blocks, then one dense matmul. BN+ReLU folded.
    g2 = jnp.dot(s2_ref[...], h1, preferred_element_type=jnp.float32)     # [432,128]
    g2 = g2.astype(jnp.bfloat16)
    a2 = jnp.concatenate([g2[o * M2P:(o + 1) * M2P, :] for o in range(9)],
                         axis=1)                                          # [48,1152]
    acc2 = jnp.dot(a2, w2_ref[...], preferred_element_type=jnp.float32)   # [48,256]
    h2 = jnp.maximum(acc2 * sc2_ref[...] + sh2_ref[...], 0.0).astype(jnp.bfloat16)

    # ---- conv3 (256->512, s=1): same selection-matmul im2col. BN+ReLU folded.
    g3 = jnp.dot(s3_ref[...], h2, preferred_element_type=jnp.float32)     # [144,256]
    g3 = g3.astype(jnp.bfloat16)
    a3 = jnp.concatenate([g3[o * M3:(o + 1) * M3, :] for o in range(9)],
                         axis=1)                                          # [16,2304]
    acc3 = jnp.dot(a3, w3_ref[...], preferred_element_type=jnp.float32)   # [16,512]
    h3 = jnp.maximum(acc3 * sc3_ref[...] + sh3_ref[...], 0.0)             # [16,512] f32
    # TODO(synk): Dropout(p=0.5) after this ReLU is identity in eval mode.

    # ---- fc(8192 -> 1): elementwise multiply with the resident [16,512] weight,
    #      lane-reduce the 512 channels first, then the 16 spatial rows.
    t = h3 * wfc_ref[...]                                                 # [16,512]
    z = jnp.sum(jnp.sum(t, axis=1, keepdims=True), axis=0, keepdims=True)
    z = z + bfc_ref[...]                                                  # [1,1]
    # numerically stable sigmoid (exp of a non-positive argument only)
    ez = jnp.exp(-jnp.abs(z))
    pos = 1.0 / (1.0 + ez)
    res = jnp.where(z >= 0.0, pos, 1.0 - pos)
    o_ref[0, :, :] = jnp.broadcast_to(res, (8, 128)).astype(o_ref.dtype)


# ------------------------------ host-side wrapper -----------------------------
def _conv1_patches(x):
    """x:[B,1,28,28] -> conv1 im2col [B, 169, 9]; row = i1*13+j1, col = kh*3+kw."""
    xs = x[:, 0]                                                          # [B,28,28]
    cols = [xs[:, kh:kh + 26:2, kw:kw + 26:2]
            for kh in range(3) for kw in range(3)]                        # 9x [B,13,13]
    return jnp.stack(cols, axis=-1).reshape(x.shape[0], M1, 9)


def discriminator_forward(x, p):
    """x: [B, 1, 28, 28] f32 (NCHW, like PyTorch). Returns [B, 1] sigmoid outputs."""
    B = x.shape[0]
    a1 = _conv1_patches(x)
    a1 = jnp.pad(a1, ((0, 0), (0, M1P - M1), (0, K1P - 9))).astype(jnp.bfloat16)

    const2 = lambda b: (0, 0)
    out = pl.pallas_call(
        _disc_fused_kernel,
        out_shape=jax.ShapeDtypeStruct((B, 8, 128), jnp.float32),
        grid=(B,),
        in_specs=[
            pl.BlockSpec((1, M1P, K1P), lambda b: (b, 0, 0)),   # conv1 patches
            pl.BlockSpec((K1P, 128), const2),                   # w1
            pl.BlockSpec((1, 128), const2),                     # b1
            pl.BlockSpec((9 * M2P, M1P), const2),               # conv2 selection
            pl.BlockSpec((9 * 128, 256), const2),               # w2
            pl.BlockSpec((1, 256), const2),                     # scale2
            pl.BlockSpec((1, 256), const2),                     # shift2
            pl.BlockSpec((9 * M3, M2P), const2),                # conv3 selection
            pl.BlockSpec((9 * 256, 512), const2),               # w3
            pl.BlockSpec((1, 512), const2),                     # scale3
            pl.BlockSpec((1, 512), const2),                     # shift3
            pl.BlockSpec((M3, 512), const2),                    # fc weight (NHWC order)
            pl.BlockSpec((1, 1), const2),                       # fc bias
        ],
        out_specs=pl.BlockSpec((1, 8, 128), lambda b: (b, 0, 0)),
        compiler_params=pltpu.CompilerParams(
            dimension_semantics=("parallel",)),
    )(a1, p["w1m"], p["b1"],
      p["s2"], p["w2m"], p["scale2"], p["shift2"],
      p["s3"], p["w3m"], p["scale3"], p["shift3"],
      p["wfc2"], p["bfc"])
    return out[:, 0, :1]


# ------------------------------ one-time preprocessing ------------------------
def _build_selection_matrices():
    """0/1 matrices that perform the conv2/conv3 im2col row-gather on the MXU."""
    s2 = np.zeros((9 * M2P, M1P), np.float32)          # selects rows of H1 [176,128]
    for kh in range(3):
        for kw in range(3):
            o = kh * 3 + kw
            for i2 in range(6):
                for j2 in range(6):
                    s2[o * M2P + i2 * 6 + j2,
                       (2 * i2 + kh) * 13 + (2 * j2 + kw)] = 1.0
    s3 = np.zeros((9 * M3, M2P), np.float32)           # selects rows of H2 [48,256]
    for kh in range(3):
        for kw in range(3):
            o = kh * 3 + kw
            for i3 in range(4):
                for j3 in range(4):
                    s3[o * M3 + i3 * 4 + j3,
                       (i3 + kh) * 6 + (j3 + kw)] = 1.0
    return s2, s3


def init_raw_params(key):
    """PyTorch-layout parameters (used by the pure-JAX reference)."""
    ks = jax.random.split(key, 8)

    def u(k, shape, fan_in):
        b = 1.0 / np.sqrt(fan_in)
        return jax.random.uniform(k, shape, jnp.float32, -b, b)

    return dict(
        w1=u(ks[0], (128, 1, 3, 3), 9),          b1=u(ks[1], (128,), 9),
        w2=u(ks[2], (256, 128, 3, 3), 128 * 9),  b2=u(ks[3], (256,), 128 * 9),
        w3=u(ks[4], (512, 256, 3, 3), 256 * 9),  b3=u(ks[5], (512,), 256 * 9),
        wfc=u(ks[6], (1, 4 * 4 * 512), 4 * 4 * 512),
        bfc=u(ks[7], (1,), 4 * 4 * 512),
    )


def preprocess_params(raw):
    """One-time: reshape/pad/cast weights, fold conv bias + eval-mode BN into
    scale/shift, build selection matrices, permute the fc weight."""
    s = 1.0 / np.sqrt(1.0 + BN_EPS)   # gamma=1, running_var=1, running_mean=0, beta=0

    def conv_w(w):  # OIHW -> [kh*kw*Cin, Cout], bf16
        return jnp.transpose(w, (2, 3, 1, 0)).reshape(-1, w.shape[0]).astype(jnp.bfloat16)

    p = {}
    p["w1m"] = jnp.pad(conv_w(raw["w1"]), ((0, K1P - 9), (0, 0)))   # [16,128]
    p["w2m"] = conv_w(raw["w2"])                                    # [1152,256]
    p["w3m"] = conv_w(raw["w3"])                                    # [2304,512]

    p["b1"] = raw["b1"].reshape(1, 128).astype(jnp.float32)         # bias only, no scale
    p["scale2"] = jnp.full((1, 256), s, jnp.float32)
    p["shift2"] = (raw["b2"] * s).reshape(1, 256).astype(jnp.float32)
    p["scale3"] = jnp.full((1, 512), s, jnp.float32)
    p["shift3"] = (raw["b3"] * s).reshape(1, 512).astype(jnp.float32)

    s2, s3 = _build_selection_matrices()
    p["s2"] = jnp.asarray(s2, jnp.bfloat16)
    p["s3"] = jnp.asarray(s3, jnp.bfloat16)

    # fc weight: PyTorch NCHW-flatten (c*16 + h*4 + w) -> rows (h*4+w), cols c
    p["wfc2"] = jnp.transpose(raw["wfc"].reshape(512, 4, 4),
                              (1, 2, 0)).reshape(16, 512).astype(jnp.float32)
    p["bfc"] = raw["bfc"].reshape(1, 1).astype(jnp.float32)
    return p


# ------------------------ pure-JAX reference (correctness) --------------------
def reference_forward(x, raw):
    bf = lambda t: t.astype(jnp.bfloat16)

    def conv(h, w, stride):
        return jax.lax.conv_general_dilated(
            bf(h), bf(w), (stride, stride), "VALID",
            dimension_numbers=("NCHW", "OIHW", "NCHW"),
            preferred_element_type=jnp.float32)

    s = 1.0 / np.sqrt(1.0 + BN_EPS)
    h = jax.nn.relu(conv(x, raw["w1"], 2) + raw["b1"][None, :, None, None])
    h = jax.nn.relu((conv(h, raw["w2"], 2) + raw["b2"][None, :, None, None]) * s)
    h = jax.nn.relu((conv(h, raw["w3"], 1) + raw["b3"][None, :, None, None]) * s)
    h = h.reshape(h.shape[0], -1)
    z = h @ raw["wfc"].T + raw["bfc"]
    return jax.nn.sigmoid(z)


if __name__ == "__main__":
    key = jax.random.PRNGKey(0)
    k_param, k_x = jax.random.split(key)

    raw = init_raw_params(k_param)
    params = preprocess_params(raw)
    # 28x28 spatial is dictated by the module's fc(4*4*512, 1); small batch = 2.
    x = jax.random.normal(k_x, (2, 1, 28, 28), jnp.float32)

    fwd = jax.jit(discriminator_forward)
    out = jax.block_until_ready(fwd(x, params))

    ref = jax.block_until_ready(reference_forward(x, raw))
    assert out.shape == (2, 1), out.shape
    np.testing.assert_allclose(np.asarray(out), np.asarray(ref), rtol=1e-2, atol=2e-3)

    print("KERNEL_OK")
</pallas_src>

<mosaic_0001>
module attributes {stable_mosaic.version = 11 : i64} {
  func.func @_disc_fused_kernel(%arg0: i32, %arg1: memref<1x176x16xbf16, #tpu.memory_space<vmem>>, %arg2: memref<16x128xbf16, #tpu.memory_space<vmem>>, %arg3: memref<1x128xf32, #tpu.memory_space<vmem>>, %arg4: memref<432x176xbf16, #tpu.memory_space<vmem>>, %arg5: memref<1152x256xbf16, #tpu.memory_space<vmem>>, %arg6: memref<1x256xf32, #tpu.memory_space<vmem>>, %arg7: memref<1x256xf32, #tpu.memory_space<vmem>>, %arg8: memref<144x48xbf16, #tpu.memory_space<vmem>>, %arg9: memref<2304x512xbf16, #tpu.memory_space<vmem>>, %arg10: memref<1x512xf32, #tpu.memory_space<vmem>>, %arg11: memref<1x512xf32, #tpu.memory_space<vmem>>, %arg12: memref<16x512xf32, #tpu.memory_space<vmem>>, %arg13: memref<1x1xf32, #tpu.memory_space<vmem>>, %arg14: memref<1x8x128xf32, #tpu.memory_space<vmem>>) attributes {dimension_semantics = [#tpu.dimension_semantics<parallel>], iteration_bounds = array<i64: 2>, scalar_prefetch = 0 : i64, scratch_operands = 0 : i64, tpu.core_type = #tpu.core_type<tc>, window_params = [{transform_indices = @transform_0, window_bounds = array<i64: 1, 176, 16>}, {pipeline_mode = #tpu.pipeline_mode<synchronous>, transform_indices = @transform_1, window_bounds = array<i64: 16, 128>}, {pipeline_mode = #tpu.pipeline_mode<synchronous>, transform_indices = @transform_2, window_bounds = array<i64: 1, 128>}, {pipeline_mode = #tpu.pipeline_mode<synchronous>, transform_indices = @transform_3, window_bounds = array<i64: 432, 176>}, {pipeline_mode = #tpu.pipeline_mode<synchronous>, transform_indices = @transform_4, window_bounds = array<i64: 1152, 256>}, {pipeline_mode = #tpu.pipeline_mode<synchronous>, transform_indices = @transform_5, window_bounds = array<i64: 1, 256>}, {pipeline_mode = #tpu.pipeline_mode<synchronous>, transform_indices = @transform_6, window_bounds = array<i64: 1, 256>}, {pipeline_mode = #tpu.pipeline_mode<synchronous>, transform_indices = @transform_7, window_bounds = array<i64: 144, 48>}, {pipeline_mode = #tpu.pipeline_mode<synchronous>, transform_indices = @transform_8, window_bounds = array<i64: 2304, 512>}, {pipeline_mode = #tpu.pipeline_mode<synchronous>, transform_indices = @transform_9, window_bounds = array<i64: 1, 512>}, {pipeline_mode = #tpu.pipeline_mode<synchronous>, transform_indices = @transform_10, window_bounds = array<i64: 1, 512>}, {pipeline_mode = #tpu.pipeline_mode<synchronous>, transform_indices = @transform_11, window_bounds = array<i64: 16, 512>}, {pipeline_mode = #tpu.pipeline_mode<synchronous>, transform_indices = @transform_12, window_bounds = array<i64: 1, 1>}, {transform_indices = @transform_13, window_bounds = array<i64: 1, 8, 128>}]} {
    %c0 = arith.constant 0 : index
    %c0_0 = arith.constant 0 : index
    %c0_1 = arith.constant 0 : index
    %0 = vector.load %arg1[%c0, %c0_0, %c0_1] : memref<1x176x16xbf16, #tpu.memory_space<vmem>>, vector<1x176x16xbf16>
    %1 = vector.shape_cast %0 : vector<1x176x16xbf16> to vector<176x16xbf16>
    %c0_2 = arith.constant 0 : index
    %c0_3 = arith.constant 0 : index
    %2 = vector.load %arg2[%c0_2, %c0_3] : memref<16x128xbf16, #tpu.memory_space<vmem>>, vector<16x128xbf16>
    %cst = arith.constant dense<0.000000e+00> : vector<176x128xf32>
    %3 = tpu.matmul %1, %2, %cst {dimension_numbers = #tpu.dot_dimension_numbers<[1], [0], [0], [1], [0, 0, 1, 1], [], []>} : vector<176x16xbf16>, vector<16x128xbf16>, vector<176x128xf32> -> vector<176x128xf32>
    %c0_4 = arith.constant 0 : index
    %c0_5 = arith.constant 0 : index
    %4 = vector.load %arg3[%c0_4, %c0_5] : memref<1x128xf32, #tpu.memory_space<vmem>>, vector<1x128xf32>
    %5 = vector.broadcast %4 : vector<1x128xf32> to vector<176x128xf32>
    %6 = arith.addf %3, %5 : vector<176x128xf32>
    %cst_6 = arith.constant 0.000000e+00 : f32
    %7 = vector.broadcast %cst_6 : f32 to vector<176x128xf32>
    %8 = arith.maximumf %6, %7 : vector<176x128xf32>
    %9 = arith.truncf %8 : vector<176x128xf32> to vector<176x128xbf16>
    %c0_7 = arith.constant 0 : index
    %c0_8 = arith.constant 0 : index
    %10 = vector.load %arg4[%c0_7, %c0_8] : memref<432x176xbf16, #tpu.memory_space<vmem>>, vector<432x176xbf16>
    %cst_9 = arith.constant dense<0.000000e+00> : vector<432x128xf32>
    %11 = tpu.matmul %10, %9, %cst_9 {dimension_numbers = #tpu.dot_dimension_numbers<[1], [0], [0], [1], [0, 0, 1, 1], [], []>} : vector<432x176xbf16>, vector<176x128xbf16>, vector<432x128xf32> -> vector<432x128xf32>
    %12 = arith.truncf %11 : vector<432x128xf32> to vector<432x128xbf16>
    %13 = vector.extract_strided_slice %12 {offsets = [0, 0], sizes = [48, 128], strides = [1, 1]} : vector<432x128xbf16> to vector<48x128xbf16>
    %14 = vector.extract_strided_slice %12 {offsets = [48, 0], sizes = [48, 128], strides = [1, 1]} : vector<432x128xbf16> to vector<48x128xbf16>
    %15 = vector.extract_strided_slice %12 {offsets = [96, 0], sizes = [48, 128], strides = [1, 1]} : vector<432x128xbf16> to vector<48x128xbf16>
    %16 = vector.extract_strided_slice %12 {offsets = [144, 0], sizes = [48, 128], strides = [1, 1]} : vector<432x128xbf16> to vector<48x128xbf16>
    %17 = vector.extract_strided_slice %12 {offsets = [192, 0], sizes = [48, 128], strides = [1, 1]} : vector<432x128xbf16> to vector<48x128xbf16>
    %18 = vector.extract_strided_slice %12 {offsets = [240, 0], sizes = [48, 128], strides = [1, 1]} : vector<432x128xbf16> to vector<48x128xbf16>
    %19 = vector.extract_strided_slice %12 {offsets = [288, 0], sizes = [48, 128], strides = [1, 1]} : vector<432x128xbf16> to vector<48x128xbf16>
    %20 = vector.extract_strided_slice %12 {offsets = [336, 0], sizes = [48, 128], strides = [1, 1]} : vector<432x128xbf16> to vector<48x128xbf16>
    %21 = vector.extract_strided_slice %12 {offsets = [384, 0], sizes = [48, 128], strides = [1, 1]} : vector<432x128xbf16> to vector<48x128xbf16>
    %22 = tpu.concatenate %13, %14, %15, %16, %17, %18, %19, %20, %21 in 1 : vector<48x128xbf16>, vector<48x128xbf16>, vector<48x128xbf16>, vector<48x128xbf16>, vector<48x128xbf16>, vector<48x128xbf16>, vector<48x128xbf16>, vector<48x128xbf16>, vector<48x128xbf16> -> vector<48x1152xbf16>
    %c0_10 = arith.constant 0 : index
    %c0_11 = arith.constant 0 : index
    %23 = vector.load %arg5[%c0_10, %c0_11] : memref<1152x256xbf16, #tpu.memory_space<vmem>>, vector<1152x256xbf16>
    %cst_12 = arith.constant dense<0.000000e+00> : vector<48x256xf32>
    %24 = tpu.matmul %22, %23, %cst_12 {dimension_numbers = #tpu.dot_dimension_numbers<[1], [0], [0], [1], [0, 0, 1, 1], [], []>} : vector<48x1152xbf16>, vector<1152x256xbf16>, vector<48x256xf32> -> vector<48x256xf32>
    %c0_13 = arith.constant 0 : index
    %c0_14 = arith.constant 0 : index
    %25 = vector.load %arg6[%c0_13, %c0_14] : memref<1x256xf32, #tpu.memory_space<vmem>>, vector<1x256xf32>
    %26 = vector.broadcast %25 : vector<1x256xf32> to vector<48x256xf32>
    %27 = arith.mulf %24, %26 : vector<48x256xf32>
    %c0_15 = arith.constant 0 : index
    %c0_16 = arith.constant 0 : index
    %28 = vector.load %arg7[%c0_15, %c0_16] : memref<1x256xf32, #tpu.memory_space<vmem>>, vector<1x256xf32>
    %29 = vector.broadcast %28 : vector<1x256xf32> to vector<48x256xf32>
    %30 = arith.addf %27, %29 : vector<48x256xf32>
    %cst_17 = arith.constant 0.000000e+00 : f32
    %31 = vector.broadcast %cst_17 : f32 to vector<48x256xf32>
    %32 = arith.maximumf %30, %31 : vector<48x256xf32>
    %33 = arith.truncf %32 : vector<48x256xf32> to vector<48x256xbf16>
    %c0_18 = arith.constant 0 : index
    %c0_19 = arith.constant 0 : index
    %34 = vector.load %arg8[%c0_18, %c0_19] : memref<144x48xbf16, #tpu.memory_space<vmem>>, vector<144x48xbf16>
    %cst_20 = arith.constant dense<0.000000e+00> : vector<144x256xf32>
    %35 = tpu.matmul %34, %33, %cst_20 {dimension_numbers = #tpu.dot_dimension_numbers<[1], [0], [0], [1], [0, 0, 1, 1], [], []>} : vector<144x48xbf16>, vector<48x256xbf16>, vector<144x256xf32> -> vector<144x256xf32>
    %36 = arith.truncf %35 : vector<144x256xf32> to vector<144x256xbf16>
    %37 = vector.extract_strided_slice %36 {offsets = [0, 0], sizes = [16, 256], strides = [1, 1]} : vector<144x256xbf16> to vector<16x256xbf16>
    %38 = vector.extract_strided_slice %36 {offsets = [16, 0], sizes = [16, 256], strides = [1, 1]} : vector<144x256xbf16> to vector<16x256xbf16>
    %39 = vector.extract_strided_slice %36 {offsets = [32, 0], sizes = [16, 256], strides = [1, 1]} : vector<144x256xbf16> to vector<16x256xbf16>
    %40 = vector.extract_strided_slice %36 {offsets = [48, 0], sizes = [16, 256], strides = [1, 1]} : vector<144x256xbf16> to vector<16x256xbf16>
    %41 = vector.extract_strided_slice %36 {offsets = [64, 0], sizes = [16, 256], strides = [1, 1]} : vector<144x256xbf16> to vector<16x256xbf16>
    %42 = vector.extract_strided_slice %36 {offsets = [80, 0], sizes = [16, 256], strides = [1, 1]} : vector<144x256xbf16> to vector<16x256xbf16>
    %43 = vector.extract_strided_slice %36 {offsets = [96, 0], sizes = [16, 256], strides = [1, 1]} : vector<144x256xbf16> to vector<16x256xbf16>
    %44 = vector.extract_strided_slice %36 {offsets = [112, 0], sizes = [16, 256], strides = [1, 1]} : vector<144x256xbf16> to vector<16x256xbf16>
    %45 = vector.extract_strided_slice %36 {offsets = [128, 0], sizes = [16, 256], strides = [1, 1]} : vector<144x256xbf16> to vector<16x256xbf16>
    %46 = tpu.concatenate %37, %38, %39, %40, %41, %42, %43, %44, %45 in 1 : vector<16x256xbf16>, vector<16x256xbf16>, vector<16x256xbf16>, vector<16x256xbf16>, vector<16x256xbf16>, vector<16x256xbf16>, vector<16x256xbf16>, vector<16x256xbf16>, vector<16x256xbf16> -> vector<16x2304xbf16>
    %c0_21 = arith.constant 0 : index
    %c0_22 = arith.constant 0 : index
    %47 = vector.load %arg9[%c0_21, %c0_22] : memref<2304x512xbf16, #tpu.memory_space<vmem>>, vector<2304x512xbf16>
    %cst_23 = arith.constant dense<0.000000e+00> : vector<16x512xf32>
    %48 = tpu.matmul %46, %47, %cst_23 {dimension_numbers = #tpu.dot_dimension_numbers<[1], [0], [0], [1], [0, 0, 1, 1], [], []>} : vector<16x2304xbf16>, vector<2304x512xbf16>, vector<16x512xf32> -> vector<16x512xf32>
    %c0_24 = arith.constant 0 : index
    %c0_25 = arith.constant 0 : index
    %49 = vector.load %arg10[%c0_24, %c0_25] : memref<1x512xf32, #tpu.memory_space<vmem>>, vector<1x512xf32>
    %50 = vector.broadcast %49 : vector<1x512xf32> to vector<16x512xf32>
    %51 = arith.mulf %48, %50 : vector<16x512xf32>
    %c0_26 = arith.constant 0 : index
    %c0_27 = arith.constant 0 : index
    %52 = vector.load %arg11[%c0_26, %c0_27] : memref<1x512xf32, #tpu.memory_space<vmem>>, vector<1x512xf32>
    %53 = vector.broadcast %52 : vector<1x512xf32> to vector<16x512xf32>
    %54 = arith.addf %51, %53 : vector<16x512xf32>
    %cst_28 = arith.constant 0.000000e+00 : f32
    %55 = vector.broadcast %cst_28 : f32 to vector<16x512xf32>
    %56 = arith.maximumf %54, %55 : vector<16x512xf32>
    %c0_29 = arith.constant 0 : index
    %c0_30 = arith.constant 0 : index
    %57 = vector.load %arg12[%c0_29, %c0_30] : memref<16x512xf32, #tpu.memory_space<vmem>>, vector<16x512xf32>
    %58 = arith.mulf %56, %57 : vector<16x512xf32>
    %cst_31 = arith.constant dense<0.000000e+00> : vector<16xf32>
    %59 = vector.multi_reduction <add>, %58, %cst_31 [1] : vector<16x512xf32> to vector<16xf32>
    %60 = vector.shape_cast %59 : vector<16xf32> to vector<16x1xf32>
    %cst_32 = arith.constant dense<0.000000e+00> : vector<1xf32>
    %61 = vector.multi_reduction <add>, %60, %cst_32 [0] : vector<16x1xf32> to vector<1xf32>
    %62 = vector.shape_cast %61 : vector<1xf32> to vector<1x1xf32>
    %c0_33 = arith.constant 0 : index
    %c0_34 = arith.constant 0 : index
    %63 = vector.load %arg13[%c0_33, %c0_34] : memref<1x1xf32, #tpu.memory_space<vmem>>, vector<1x1xf32>
    %64 = arith.addf %62, %63 : vector<1x1xf32>
    %65 = math.absf %64 : vector<1x1xf32>
    %cst_35 = arith.constant 0.000000e+00 : f32
    %66 = vector.broadcast %cst_35 : f32 to vector<1x1xf32>
    %67 = arith.subf %66, %65 : vector<1x1xf32>
    %68 = math.exp %67 : vector<1x1xf32>
    %cst_36 = arith.constant 1.000000e+00 : f32
    %69 = vector.broadcast %cst_36 : f32 to vector<1x1xf32>
    %70 = arith.addf %69, %68 : vector<1x1xf32>
    %cst_37 = arith.constant 1.000000e+00 : f32
    %71 = vector.broadcast %cst_37 : f32 to vector<1x1xf32>
    %72 = arith.divf %71, %70 : vector<1x1xf32>
    %cst_38 = arith.constant 0.000000e+00 : f32
    %73 = vector.broadcast %cst_38 : f32 to vector<1x1xf32>
    %74 = arith.cmpf oge, %64, %73 : vector<1x1xf32>
    %cst_39 = arith.constant 1.000000e+00 : f32
    %75 = vector.broadcast %cst_39 : f32 to vector<1x1xf32>
    %76 = arith.subf %75, %72 : vector<1x1xf32>
    %77 = arith.select %74, %72, %76 : vector<1x1xi1>, vector<1x1xf32>
    %78 = vector.shape_cast %77 : vector<1x1xf32> to vector<1x1xf32>
    %79 = vector.broadcast %78 : vector<1x1xf32> to vector<8x128xf32>
    %c0_40 = arith.constant 0 : index
    %c0_41 = arith.constant 0 : index
    %c0_42 = arith.constant 0 : index
    %80 = vector.load %arg14[%c0_40, %c0_41, %c0_42] : memref<1x8x128xf32, #tpu.memory_space<vmem>>, vector<1x8x128xf32>
    %81 = vector.shape_cast %80 : vector<1x8x128xf32> to vector<8x128xf32>
    %82 = vector.shape_cast %79 : vector<8x128xf32> to vector<1x8x128xf32>
    tpu.vector_store %arg14[%c0_40, %c0_41, %c0_42], %82 {strides = array<i32>} : memref<1x8x128xf32, #tpu.memory_space<vmem>>, vector<1x8x128xf32>,
    return
  }
  func.func @transform_0(%arg0: i32) -> (i32, i32, i32) {
    %c0_i32 = arith.constant 0 : i32
    %c0_i32_0 = arith.constant 0 : i32
    %c0_i32_1 = arith.constant 0 : i32
    return %arg0, %c0_i32, %c0_i32_0 : i32, i32, i32
  }
  func.func @transform_1(%arg0: i32) -> (i32, i32) {
    %c0_i32 = arith.constant 0 : i32
    %c0_i32_0 = arith.constant 0 : i32
    %c0_i32_1 = arith.constant 0 : i32
    return %c0_i32, %c0_i32_0 : i32, i32
  }
  func.func @transform_2(%arg0: i32) -> (i32, i32) {
    %c0_i32 = arith.constant 0 : i32
    %c0_i32_0 = arith.constant 0 : i32
    %c0_i32_1 = arith.constant 0 : i32
    return %c0_i32, %c0_i32_0 : i32, i32
  }
  func.func @transform_3(%arg0: i32) -> (i32, i32) {
    %c0_i32 = arith.constant 0 : i32
    %c0_i32_0 = arith.constant 0 : i32
    %c0_i32_1 = arith.constant 0 : i32
    return %c0_i32, %c0_i32_0 : i32, i32
  }
  func.func @transform_4(%arg0: i32) -> (i32, i32) {
    %c0_i32 = arith.constant 0 : i32
    %c0_i32_0 = arith.constant 0 : i32
    %c0_i32_1 = arith.constant 0 : i32
    return %c0_i32, %c0_i32_0 : i32, i32
  }
  func.func @transform_5(%arg0: i32) -> (i32, i32) {
    %c0_i32 = arith.constant 0 : i32
    %c0_i32_0 = arith.constant 0 : i32
    %c0_i32_1 = arith.constant 0 : i32
    return %c0_i32, %c0_i32_0 : i32, i32
  }
  func.func @transform_6(%arg0: i32) -> (i32, i32) {
    %c0_i32 = arith.constant 0 : i32
    %c0_i32_0 = arith.constant 0 : i32
    %c0_i32_1 = arith.constant 0 : i32
    return %c0_i32, %c0_i32_0 : i32, i32
  }
  func.func @transform_7(%arg0: i32) -> (i32, i32) {
    %c0_i32 = arith.constant 0 : i32
    %c0_i32_0 = arith.constant 0 : i32
    %c0_i32_1 = arith.constant 0 : i32
    return %c0_i32, %c0_i32_0 : i32, i32
  }
  func.func @transform_8(%arg0: i32) -> (i32, i32) {
    %c0_i32 = arith.constant 0 : i32
    %c0_i32_0 = arith.constant 0 : i32
    %c0_i32_1 = arith.constant 0 : i32
    return %c0_i32, %c0_i32_0 : i32, i32
  }
  func.func @transform_9(%arg0: i32) -> (i32, i32) {
    %c0_i32 = arith.constant 0 : i32
    %c0_i32_0 = arith.constant 0 : i32
    %c0_i32_1 = arith.constant 0 : i32
    return %c0_i32, %c0_i32_0 : i32, i32
  }
  func.func @transform_10(%arg0: i32) -> (i32, i32) {
    %c0_i32 = arith.constant 0 : i32
    %c0_i32_0 = arith.constant 0 : i32
    %c0_i32_1 = arith.constant 0 : i32
    return %c0_i32, %c0_i32_0 : i32, i32
  }
  func.func @transform_11(%arg0: i32) -> (i32, i32) {
    %c0_i32 = arith.constant 0 : i32
    %c0_i32_0 = arith.constant 0 : i32
    %c0_i32_1 = arith.constant 0 : i32
    return %c0_i32, %c0_i32_0 : i32, i32
  }
  func.func @transform_12(%arg0: i32) -> (i32, i32) {
    %c0_i32 = arith.constant 0 : i32
    %c0_i32_0 = arith.constant 0 : i32
    %c0_i32_1 = arith.constant 0 : i32
    return %c0_i32, %c0_i32_0 : i32, i32
  }
  func.func @transform_13(%arg0: i32) -> (i32, i32, i32) {
    %c0_i32 = arith.constant 0 : i32
    %c0_i32_0 = arith.constant 0 : i32
    %c0_i32_1 = arith.constant 0 : i32
    return %arg0, %c0_i32, %c0_i32_0 : i32, i32, i32
  }
}

</mosaic_0001>

<bundles_post_ra>
// kernel: discriminator_forward.1
= control target key start
LH: loop header
LB: loop body
LE: loop exit
PB: predicated region body
PF: predicated region fallthrough
CT: control target
= control target key end

     0   :  { %s10943_s0 = inlined_call_operand.vmem [shape: bf16[2,176,16], index: 0, kind: input, shape index: {}]   ;;  %s10944_s1 = inlined_call_operand.hbm [shape: bf16[16,128], index: 1, kind: input, shape index: {}]   ;;  %s10945_s2 = inlined_call_operand.hbm [shape: f32[1,128], index: 2, kind: input, shape index: {}]   ;;  %s10946_s3 = inlined_call_operand.vmem [shape: bf16[432,176], index: 3, kind: input, shape index: {}]   ;;  %s10947_s4 = inlined_call_operand.hbm [shape: bf16[1152,256], index: 4, kind: input, shape index: {}]   ;;  %s10948_s5 = inlined_call_operand.hbm [shape: f32[1,256], index: 5, kind: input, shape index: {}]   ;;  %s10949_s6 = inlined_call_operand.hbm [shape: f32[1,256], index: 6, kind: input, shape index: {}]   ;;  %s10950_s7 = inlined_call_operand.vmem [shape: bf16[144,48], index: 7, kind: input, shape index: {}]   ;;  %s10951_s8 = inlined_call_operand.hbm [shape: bf16[2304,512], index: 8, kind: input, shape index: {}]   ;;  %s10952_s9 = inlined_call_operand.hbm [shape: f32[1,512], index: 9, kind: input, shape index: {}]   ;;  %s10953_s10 = inlined_call_operand.hbm [shape: f32[1,512], index: 10, kind: input, shape index: {}]   ;;  %s10954_s11 = inlined_call_operand.hbm [shape: f32[16,512], index: 11, kind: input, shape index: {}]   ;;  %s10955_s12 = inlined_call_operand.<no memory space> [shape: f32[1,1], index: 12, kind: input, shape index: {}]   ;;  %s10956_s13 = inlined_call_operand.vmem [shape: f32[2,8,128], index: 13, kind: output, shape index: {}]  }
   0x1   :  { %10959 = sst [smem:[#allocation22_spill]] %s10944_s1  ;;  %v18_v0 = vstv %s10955_s12 }
   0x2   :  { %10960 = sst [smem:[#allocation23_spill]] %s10945_s2  ;;  %19 = vst [vmem:[#allocation2] sm:$0x1] %v18_v0 }
   0x3   :  { %10961 = sst [smem:[#allocation24_spill]] %s10948_s5 }
   0x4   :  { %20 = vsyncpa [#allocation4], 0 }
   0x5   :  { %21 = vsyncpa [#allocation6], 0 }
   0x6   :  { %22 = vsyncpa [#allocation9], 0 }
   0x7   :  { %23 = vsyncpa [#allocation12], 0 }
   0x8   :  { %24 = vsyncpa [#allocation15], 0  ;;  %s10182_s27 = smov 0  }
   0x9 LB: > { %s10089_s28 = smov [#allocation5]   ;;  %s10188_s30 = sadd.s32 4294967295, %s10087_s27   ;;  %s10087_s27 = sphi %s10182_s27, %s30_s27  }
   0xa   : > { %s365_s29 = sshll.u32 %s10089_s28, 4  ;;  %p7470_p0 = scmp.ge.s32.totalorder %s10087_s27, 1  ;;  %s10193_s29 = int_to_ptr.vmem [resolvable:$true] %s365_s29 }
   0xb   : > { %p339_p1 = scmp.lt.s32.totalorder %s10087_s27, 3  ;;  %p10957_p2 = scmp.eq.s32.totalorder %s10188_s30, 0 }
   0xc   : > { %s10090_s14 = smov [#allocation8]   ;;  %s10091_s16 = smov [#allocation11]  }
   0xd   : > { %p10195_p3 = pnand %p7470_p0, %p339_p1  ;;  %s392_s15 = sshll.u32 %s10090_s14, 4  ;;  %s10201_s15 = int_to_ptr.vmem [resolvable:$true] %s392_s15 }
   0xe   : > { %s416_s17 = sshll.u32 %s10091_s16, 4  ;;  %s10092_s19 = smov [#allocation14]   ;;  %s10209_s17 = int_to_ptr.vmem [resolvable:$true] %s416_s17 }
   0xf   : > { %s10962_s12 = scalar_select %p10195_p3, 1, 0 }
  0x10   : > { %p8547_p4 = pneg %p10195_p3  ;;  %s10211_s20 = sshll.u32 %s10092_s19, 4  ;;  %s442_s20 = int_to_ptr.vmem [resolvable:$true] %s10211_s20 }
  0x11   : > { %s10964_s2 = sld [smem:[#allocation23_spill]] }
  0x12   : > { %p10205_p5 = pnand %p10957_p2, %p8547_p4 }
  0x14   : > { %p10221_p7 = pneg %p10205_p5 }
  0x17   : > { %s9809_s23 = scalar_lea.hbm %s10964_s2, 16 }
  0x18   : > { %p9810_p6 = scmp.ne.s32.totalorder %s10964_s2, %s9809_s23  ;;  %p9816_p10 = scmp.lt.u32.totalorder %s9809_s23, %s10964_s2 }
  0x1a   : > { %p9812_p8 = pnand %p10221_p7, %p9810_p6 }
  0x1c   : > { %p9813_p9 = pneg %p9812_p8 }
  0x1e   : > { %p9818_p11 = pnand %p9816_p10, %p9813_p9 }
  0x20   : > { %9821 = shalt.err (!%p9818_p11)
}
  0x21   : > { %s9822_s16 = scalar_lea.vmem %s10193_s29, 16  ;;  %s9829_s19 = scalar_lea.vmem %s10193_s29, 32 }
  0x22   : > { %p9823_p12 = scmp.ne.s32.totalorder %s10193_s29, %s9822_s16  ;;  %p9830_p1 = scmp.lt.s32.totalorder %s10193_s29, %s10193_s29 }
  0x23   : > { %p9831_p4 = scmp.lt.s32.totalorder %s9829_s19, %s9822_s16 }
  0x24   : > { %p9825_p13 = pnand %p9823_p12, %p10221_p7 }
  0x25   : > { %p9832_p6 = por %p9831_p4, %p9830_p1 }
  0x26   : > { %p9826_p0 = pneg %p9825_p13 }
  0x28   : > { %p9833_p8 = pnand %p9832_p6, %p9826_p0 }
  0x2a   : > { %9836 = shalt.err (!%p9833_p8)
}
  0x2b   : > { %8553 = dma.hbm_to_vmem [thread:$0]  (!%p10205_p5), %s10964_s2, 16, %s10193_s29, [#allocation6]  }
  0x2c   : > { %s10966_s5 = sld [smem:[#allocation24_spill]] }
  0x32   : > { %s9837_s25 = scalar_lea.hbm %s10966_s5, 32 }
  0x33   : > { %p9838_p9 = scmp.ne.s32.totalorder %s10966_s5, %s9837_s25  ;;  %p9844_p12 = scmp.lt.u32.totalorder %s9837_s25, %s10966_s5 }
  0x35   : > { %p9840_p10 = pnand %p9838_p9, %p10221_p7 }
  0x37   : > { %p9841_p11 = pneg %p9840_p10 }
  0x39   : > { %p9846_p13 = pnand %p9844_p12, %p9841_p11 }
  0x3b   : > { %9849 = shalt.err (!%p9846_p13)
}
  0x3c   : > { %s9850_s29 = scalar_lea.vmem %s10201_s15, 32  ;;  %p9858_p6 = scmp.lt.s32.totalorder %s10201_s15, %s10201_s15 }
  0x3d   : > { %p9851_p0 = scmp.ne.s32.totalorder %s10201_s15, %s9850_s29  ;;  %p9859_p8 = scmp.lt.s32.totalorder %s9850_s29, %s9850_s29 }
  0x3f   : > { %p9853_p1 = pnand %p9851_p0, %p10221_p7  ;;  %p9860_p9 = por %p9859_p8, %p9858_p6 }
  0x41   : > { %p9854_p4 = pneg %p9853_p1 }
  0x43   : > { %p9861_p10 = pnand %p9860_p9, %p9854_p4 }
  0x45   : > { %9864 = shalt.err (!%p9861_p10)
}
  0x46   : > { %8559 = dma.hbm_to_vmem [thread:$0]  (!%p10205_p5), %s10966_s5, 32, %s10201_s15, [#allocation9]  }
  0x47   : > { %s9865_s25 = scalar_lea.hbm %s10951_s8, 73728 }
  0x48   : > { %p9866_p11 = scmp.ne.s32.totalorder %s10951_s8, %s9865_s25  ;;  %p9872_p0 = scmp.lt.u32.totalorder %s9865_s25, %s10951_s8 }
  0x4a   : > { %p9868_p12 = pnand %p9866_p11, %p10221_p7 }
  0x4c   : > { %p9869_p13 = pneg %p9868_p12 }
  0x4e   : > { %p9874_p1 = pnand %p9872_p0, %p9869_p13 }
  0x50   : > { %9877 = shalt.err (!%p9874_p1)
}
  0x51   : > { %s9878_s15 = scalar_lea.vmem %s10209_s17, 73728  ;;  %p9886_p9 = scmp.lt.s32.totalorder %s10209_s17, %s10209_s17 }
  0x52   : > { %p9879_p4 = scmp.ne.s32.totalorder %s10209_s17, %s9878_s15  ;;  %p9887_p10 = scmp.lt.s32.totalorder %s9878_s15, %s9878_s15 }
  0x54   : > { %p9881_p6 = pnand %p9879_p4, %p10221_p7  ;;  %p9888_p11 = por %p9887_p10, %p9886_p9 }
  0x56   : > { %p9882_p8 = pneg %p9881_p6 }
  0x58   : > { %p9889_p12 = pnand %p9888_p11, %p9882_p8 }
  0x5a   : > { %9892 = shalt.err (!%p9889_p12)
}
  0x5b   : > { %s10093_s29 = smov 256   ;;  %s10094_s21 = smov 16  }
  0x5c   : > { %8565 = dma.hbm_to_vmem [thread:$0]  (!%p10205_p5), %s10951_s8, 73728, %s10209_s17, [#allocation12], %s10093_s29, %s10093_s29, %s10094_s21  }
  0x5d   : > { %s9893_s28 = scalar_lea.hbm %s10953_s10, 64 }
  0x5e   : > { %p9894_p13 = scmp.ne.s32.totalorder %s10953_s10, %s9893_s28  ;;  %p9900_p4 = scmp.lt.u32.totalorder %s9893_s28, %s10953_s10 }
  0x60   : > { %p9896_p0 = pnand %p9894_p13, %p10221_p7 }
  0x62   : > { %p9897_p1 = pneg %p9896_p0 }
  0x64   : > { %p9902_p6 = pnand %p9900_p4, %p9897_p1 }
  0x66   : > { %9905 = shalt.err (!%p9902_p6)
}
  0x67   : > { %s9906_s22 = scalar_lea.vmem %s442_s20, 64  ;;  %p9914_p11 = scmp.lt.s32.totalorder %s442_s20, %s442_s20 }
  0x68   : > { %p9907_p8 = scmp.ne.s32.totalorder %s442_s20, %s9906_s22  ;;  %p9915_p12 = scmp.lt.s32.totalorder %s9906_s22, %s9906_s22 }
  0x6a   : > { %p9909_p9 = pnand %p9907_p8, %p10221_p7  ;;  %p9916_p2 = por %p9915_p12, %p9914_p11 }
  0x6c   : > { %p9910_p10 = pneg %p9909_p9 }
  0x6e   : > { %p9917_p3 = pnand %p9916_p2, %p9910_p10 }
  0x70   : > { %9920 = shalt.err (!%p9917_p3)
}
  0x71   : > { %8571 = dma.hbm_to_vmem [thread:$0]  (!%p10205_p5), %s10953_s10, 64, %s442_s20, [#allocation15]  }
  0x72   : > { %s10095_s21 = smov [#allocation3]   ;;  %s10967_s1 = sld [smem:[#allocation22_spill]] }
  0x73   : > { %s351_s23 = sshll.u32 %s10095_s21, 4  ;;  %s352_s23 = int_to_ptr.vmem [resolvable:$true] %s351_s23 }
  0x78   : > { %s9921_s28 = scalar_lea.hbm %s10967_s1, 128 }
  0x79   : > { %p9922_p13 = scmp.ne.s32.totalorder %s10967_s1, %s9921_s28  ;;  %p9928_p0 = scmp.lt.u32.totalorder %s9921_s28, %s10967_s1 }
  0x7b   : > { %p9924_p2 = pnand %p9922_p13, %p10221_p7 }
  0x7d   : > { %p9925_p3 = pneg %p9924_p2 }
  0x7f   : > { %p9930_p1 = pnand %p9928_p0, %p9925_p3 }
  0x81   : > { %9933 = shalt.err (!%p9930_p1)
}
  0x82   : > { %s9934_s20 = scalar_lea.vmem %s352_s23, 128  ;;  %p9942_p9 = scmp.lt.s32.totalorder %s352_s23, %s352_s23 }
  0x83   : > { %p9935_p4 = scmp.ne.s32.totalorder %s352_s23, %s9934_s20  ;;  %p9943_p10 = scmp.lt.s32.totalorder %s9934_s20, %s9934_s20 }
  0x85   : > { %p9937_p6 = pnand %p9935_p4, %p10221_p7  ;;  %p9944_p11 = por %p9943_p10, %p9942_p9 }
  0x87   : > { %p9938_p8 = pneg %p9937_p6 }
  0x89   : > { %p9945_p12 = pnand %p9944_p11, %p9938_p8 }
  0x8b   : > { %9948 = shalt.err (!%p9945_p12)
}
  0x8c   : > { %s10096_s22 = smov 64   ;;  %s10097_s17 = smov 4  }
  0x8d   : > { %8550 = dma.hbm_to_vmem [thread:$0]  (!%p10205_p5), %s10967_s1, 128, %s352_s23, [#allocation4], %s10096_s22, %s10096_s22, %s10097_s17  }
  0x8e   : > { %s10098_s24 = smov [#allocation7]   ;;  %s9949_s16 = scalar_lea.hbm %s10947_s4, 18432 }
  0x8f   : > { %s378_s25 = sshll.u32 %s10098_s24, 4  ;;  %p9950_p13 = scmp.ne.s32.totalorder %s10947_s4, %s9949_s16  ;;  %s379_s25 = int_to_ptr.vmem [resolvable:$true] %s378_s25 }
  0x90   : > { %p9956_p0 = scmp.lt.u32.totalorder %s9949_s16, %s10947_s4 }
  0x91   : > { %p9952_p2 = pnand %p9950_p13, %p10221_p7 }
  0x93   : > { %p9953_p3 = pneg %p9952_p2 }
  0x95   : > { %p9958_p1 = pnand %p9956_p0, %p9953_p3 }
  0x97   : > { %9961 = shalt.err (!%p9958_p1)
}
  0x98   : > { %s9962_s23 = scalar_lea.vmem %s379_s25, 18432  ;;  %p9970_p9 = scmp.lt.s32.totalorder %s379_s25, %s379_s25 }
  0x99   : > { %p9963_p4 = scmp.ne.s32.totalorder %s379_s25, %s9962_s23  ;;  %p9971_p10 = scmp.lt.s32.totalorder %s9962_s23, %s9962_s23 }
  0x9b   : > { %p9965_p6 = pnand %p9963_p4, %p10221_p7  ;;  %p9972_p11 = por %p9971_p10, %p9970_p9 }
  0x9d   : > { %p9966_p8 = pneg %p9965_p6 }
  0x9f   : > { %p9973_p12 = pnand %p9972_p11, %p9966_p8 }
  0xa1   : > { %9976 = shalt.err (!%p9973_p12)
}
  0xa2   : > { %s10099_s22 = smov 128   ;;  %s10100_s17 = smov 8  }
  0xa3   : > { %8556 = dma.hbm_to_vmem [thread:$0]  (!%p10205_p5), %s10947_s4, 18432, %s379_s25, [#allocation6], %s10099_s22, %s10099_s22, %s10100_s17  }
  0xa4   : > { %s10101_s21 = smov [#allocation10]   ;;  %s10102_s28 = smov [#allocation13]  }
  0xa5   : > { %s403_s24 = sshll.u32 %s10101_s21, 4  ;;  %s430_s14 = sshll.u32 %s10102_s28, 4  ;;  %s404_s24 = int_to_ptr.vmem [resolvable:$true] %s403_s24  ;;  %s431_s14 = int_to_ptr.vmem [resolvable:$true] %s430_s14 }
  0xa6   : > { %s9977_s15 = scalar_lea.hbm %s10949_s6, 32 }
  0xa7   : > { %p9978_p13 = scmp.ne.s32.totalorder %s10949_s6, %s9977_s15  ;;  %p9984_p0 = scmp.lt.u32.totalorder %s9977_s15, %s10949_s6 }
  0xa9   : > { %p9980_p2 = pnand %p9978_p13, %p10221_p7 }
  0xab   : > { %p9981_p3 = pneg %p9980_p2 }
  0xad   : > { %p9986_p1 = pnand %p9984_p0, %p9981_p3 }
  0xaf   : > { %9989 = shalt.err (!%p9986_p1)
}
  0xb0   : > { %s9990_s25 = scalar_lea.vmem %s404_s24, 32  ;;  %p9998_p9 = scmp.lt.s32.totalorder %s404_s24, %s404_s24 }
  0xb1   : > { %p9991_p4 = scmp.ne.s32.totalorder %s404_s24, %s9990_s25  ;;  %p9999_p10 = scmp.lt.s32.totalorder %s9990_s25, %s9990_s25 }
  0xb3   : > { %p9993_p6 = pnand %p9991_p4, %p10221_p7  ;;  %p10000_p11 = por %p9999_p10, %p9998_p9 }
  0xb5   : > { %p9994_p8 = pneg %p9993_p6 }
  0xb7   : > { %p10001_p12 = pnand %p10000_p11, %p9994_p8 }
  0xb9   : > { %10004 = shalt.err (!%p10001_p12)
}
  0xba   : > { %8562 = dma.hbm_to_vmem [thread:$0]  (!%p10205_p5), %s10949_s6, 32, %s404_s24, [#allocation9]  }
  0xbb   : > { %s10005_s2 = scalar_lea.hbm %s10952_s9, 64 }
  0xbc   : > { %p10006_p13 = scmp.ne.s32.totalorder %s10952_s9, %s10005_s2  ;;  %p10012_p0 = scmp.lt.u32.totalorder %s10005_s2, %s10952_s9 }
  0xbe   : > { %p10008_p2 = pnand %p10006_p13, %p10221_p7 }
  0xc0   : > { %p10009_p3 = pneg %p10008_p2 }
  0xc2   : > { %p10014_p1 = pnand %p10012_p0, %p10009_p3 }
  0xc4   : > { %10017 = shalt.err (!%p10014_p1)
}
  0xc5   : > { %s10018_s19 = scalar_lea.vmem %s431_s14, 64  ;;  %p10026_p9 = scmp.lt.s32.totalorder %s431_s14, %s431_s14 }
  0xc6   : > { %p10019_p4 = scmp.ne.s32.totalorder %s431_s14, %s10018_s19  ;;  %p10027_p10 = scmp.lt.s32.totalorder %s10018_s19, %s10018_s19 }
  0xc8   : > { %p10021_p6 = pnand %p10019_p4, %p10221_p7  ;;  %p10028_p11 = por %p10027_p10, %p10026_p9 }
  0xca   : > { %p10022_p8 = pneg %p10021_p6 }
  0xcc   : > { %p10029_p12 = pnand %p10028_p11, %p10022_p8 }
  0xce   : > { %10032 = shalt.err (!%p10029_p12)
}
  0xcf   : > { %8568 = dma.hbm_to_vmem [thread:$0]  (!%p10205_p5), %s10952_s9, 64, %s431_s14, [#allocation12]  }
  0xd0   : > { %s10103_s20 = smov [#allocation16]   ;;  %s10033_s17 = scalar_lea.hbm %s10954_s11, 1024 }
  0xd1   : > { %s451_s23 = sshll.u32 %s10103_s20, 4  ;;  %p10034_p13 = scmp.ne.s32.totalorder %s10954_s11, %s10033_s17  ;;  %s452_s23 = int_to_ptr.vmem [resolvable:$true] %s451_s23 }
  0xd2   : > { %p10040_p0 = scmp.lt.u32.totalorder %s10033_s17, %s10954_s11 }
  0xd3   : > { %p10036_p2 = pnand %p10034_p13, %p10221_p7 }
  0xd5   : > { %p10037_p3 = pneg %p10036_p2 }
  0xd7   : > { %p10042_p1 = pnand %p10040_p0, %p10037_p3 }
  0xd9   : > { %10045 = shalt.err (!%p10042_p1)
}
  0xda   : > { %s10046_s14 = scalar_lea.vmem %s452_s23, 1024  ;;  %p10054_p9 = scmp.lt.s32.totalorder %s452_s23, %s452_s23 }
  0xdb   : > { %p10047_p4 = scmp.ne.s32.totalorder %s452_s23, %s10046_s14  ;;  %p10055_p10 = scmp.lt.s32.totalorder %s10046_s14, %s10046_s14 }
  0xdd   : > { %p10049_p6 = pnand %p10047_p4, %p10221_p7  ;;  %p10056_p11 = por %p10055_p10, %p10054_p9 }
  0xdf   : > { %p10050_p8 = pneg %p10049_p6 }
  0xe1   : > { %p10057_p12 = pnand %p10056_p11, %p10050_p8 }
  0xe3   : > { %10060 = shalt.err (!%p10057_p12)
}
  0xe4   : > { %s10104_s21 = smov 512   ;;  %s10105_s28 = smov 32  }
  0xe5   : > { %8574 = dma.hbm_to_vmem [thread:$0]  (!%p10205_p5), %s10954_s11, 1024, %s452_s23, [#allocation15], %s10104_s21, %s10104_s21, %s10105_s28  }
  0xe6   : > { %p10968_p13 = scmp.ne.s32.totalorder %s10962_s12, 0 }
  0xe7   : > { %p10969_p2 = scmp.eq.s32.totalorder (!%p10968_p13), %s10188_s30, 0 }
  0xe8   : > { %478 = sbr.rel (%p10968_p13) target bundleno = 2542 (0x9ee), region = 72 }
  0xef   : > { %10066 = dma.done.wait (%p10969_p2), [#allocation4], 128   ;;  %p10970_p7 = pmov %p10969_p2 }
  0xf0   : > { %p10971_p3 = pmov %p10969_p2 }
  0xf1   : > { %10068 = vsyncadd (%p10970_p7), [#allocation4], 4294967168 }
  0xf2   : > { %10070 = dma.done.wait (%p10971_p3), [#allocation6], 18448   ;;  %p10972_p0 = pmov %p10969_p2 }
  0xf4   : > { %10072 = vsyncadd (%p10972_p0), [#allocation6], 4294948848  ;;  %p10973_p1 = pmov %p10972_p0 }
  0xf5   : > { %p10974_p5 = pmov %p10972_p0 }
  0xf6   : > { %10074 = dma.done.wait (%p10973_p1), [#allocation9], 64  }
  0xf7   : > { %10076 = vsyncadd (%p10974_p5), [#allocation9], 4294967232  ;;  %p10975_p4 = pmov %p10972_p0 }
  0xf8   : > { %p10976_p6 = pmov %p10972_p0 }
  0xf9   : > { %10078 = dma.done.wait (%p10975_p4), [#allocation12], 73792  }
  0xfa   : > { %10080 = vsyncadd (%p10976_p6), [#allocation12], 4294893504  ;;  %p10977_p8 = pmov %p10972_p0 }
  0xfb   : > { %p10978_p9 = pmov %p10972_p0 }
  0xfc   : > { %10082 = dma.done.wait (%p10977_p8), [#allocation15], 1088  }
  0xfd   : > { %10084 = vsyncadd (%p10978_p9), [#allocation15], 4294966208  ;;  %p553_p10 = scmp.lt.s32.totalorder %s10188_s30, 1  ;;  %v10106_v1 = vmov 0.0   ;;  %vm10107_vm0 = vmmov 0   ;;  %v8623_v2 = vld [vmem:[#allocation3] sm:$0xff]  }
  0xfe   : > { %8350 = vmatprep.subr.bf16.mxu0 %v10106_v1  ;;  %8352 = vmatprep.mubr.msk.bf16.mxu0 %vm10107_vm0, %v10106_v1  ;;  %vm655_vm1 = vcmask 130048   ;;  %v10108_v14 = vmov 0   ;;  %v8637_v15 = vld [vmem:[%s10946_s3 + $0x4] ss:$8 sps:$4 sm:$0xff]   ;;  %vm1140_vm2 = vcmask 392192  }
  0xff   : > { %s10980_s30 = smov (!%p553_p10, %s10188_s30), 1  ;;  %8396 = vmatprep.subr.bf16.mxu1 %v10106_v1  ;;  %8384 = vmatprep.mubr.msk.bf16.mxu1 %vm10107_vm0, %v10106_v1  ;;  %v10470_v16 = vld [vmem:[#allocation5] ss:$0 sm:$0xff] }
 0x100   : > { %s8510_s12 = smul.u32 88, %s10980_s30  ;;  %8351 = vmatpush3.bf16.msra.mxu0 %v8623_v2  ;;  %8397 = vmatpush3.bf16.msra.mxu1 %v8623_v2  ;;  %s7492_s28 = sshll.u32 %s10980_s30, 3 }
 0x101   : > { %1222 = vmatprep.subr.bf16.mxu1 %v10108_v14  ;;  %8621 = vset.pattern.permute.xlu1 %v10108_v14 }
 0x102   : > { %s10430_s24 = scalar_lea.vmem %s10943_s0, %s8510_s12  ;;  %8622 = vset.pattern.permute.xlu0 %v10108_v14  ;;  %s561_s12 = scalar_lea.vmem %s10956_s13, %s7492_s28 }
 0x103   : > { %v8624_v3 = vld [vmem:[%s10430_s24] sm:$0xff]   ;;  %v8625_v5 = vld [vmem:[%s10430_s24 + $0x8] sm:$0xff]   ;;  %v8626_v7 = vld [vmem:[%s10430_s24 + $0x10] sm:$0xff]  }
 0x104   : > { %8353 = vmatmul.mubr.msk.bf16.vlgmr.msra.gmra.mrb[0].mxu0 %vm655_vm1, %v8624_v3  ;;  %v8631_v4 = vld [vmem:[%s10430_s24 + $0x40] sm:$0xff]   ;;  %v8633_v6 = vld [vmem:[%s10430_s24 + $0x48] sm:$0xff]   ;;  %v8634_v8 = vld [vmem:[%s10430_s24 + $0x50] sm:$0xff]  }
 0x105   : > { %8356 = vmatprep.mubr.msk.bf16.mxu0 %vm10107_vm0, %v10106_v1  ;;  %8385 = vmatmul.mubr.msk.bf16.vlgmr.msra.gmra.mrb[0].mxu1 %vm655_vm1, %v8631_v4  ;;  %v8627_v9 = vld [vmem:[%s10430_s24 + $0x18] sm:$0xff]   ;;  %v8628_v10 = vld [vmem:[%s10430_s24 + $0x20] sm:$0xff]   ;;  %v8629_v11 = vld [vmem:[%s10430_s24 + $0x28] sm:$0xff]  }
 0x106   : > { %8388 = vmatprep.mubr.msk.bf16.mxu1 %vm10107_vm0, %v10106_v1  ;;  %v8630_v12 = vld [vmem:[%s10430_s24 + $0x30] sm:$0xff]   ;;  %v8632_v13 = vld [vmem:[%s10430_s24 + $0x38] sm:$0xff]  }
 0x10c   : > { %8357 = vmatmul.mubr.msk.bf16.gmra.mrb[4].mxu0 %vm655_vm1, %v8625_v5 }
 0x10d   : > { %8360 = vmatprep.mubr.msk.bf16.mxu0 %vm10107_vm0, %v10106_v1  ;;  %8389 = vmatmul.mubr.msk.bf16.gmra.mrb[4].mxu1 %vm655_vm1, %v8633_v6 }
 0x10e   : > { %8392 = vmatprep.mubr.msk.bf16.mxu1 %vm10107_vm0, %v10106_v1 }
 0x114   : > { %8361 = vmatmul.mubr.msk.bf16.gmra.mrb[8].mxu0 %vm655_vm1, %v8626_v7 }
 0x115   : > { %8364 = vmatprep.mubr.msk.bf16.mxu0 %vm10107_vm0, %v10106_v1  ;;  %8393 = vmatmul.mubr.msk.bf16.gmra.mrb[8].mxu1 %vm655_vm1, %v8634_v8 }
 0x116   : > { %7571 = vmatprep.mubr.msk.bf16.mxu1 %vm1140_vm2, %v8637_v15 }
 0x11c   : > { %8365 = vmatmul.mubr.msk.bf16.gmra.mrb[12].mxu0 %vm655_vm1, %v8627_v9 }
 0x11d   : > { %8368 = vmatprep.mubr.msk.bf16.mxu0 %vm10107_vm0, %v10106_v1 }
 0x124   : > { %8369 = vmatmul.mubr.msk.bf16.gmra.mrb[16].mxu0 %vm655_vm1, %v8628_v10 }
 0x125   : > { %8372 = vmatprep.mubr.msk.bf16.mxu0 %vm10107_vm0, %v10106_v1 }
 0x12c   : > { %8373 = vmatmul.mubr.msk.bf16.gmra.mrb[20].mxu0 %vm655_vm1, %v8629_v11 }
 0x12d   : > { %8376 = vmatprep.mubr.msk.bf16.mxu0 %vm10107_vm0, %v10106_v1 }
 0x134   : > { %8377 = vmatmul.mubr.msk.bf16.gmra.mrb[24].mxu0 %vm655_vm1, %v8630_v12 }
 0x135   : > { %8380 = vmatprep.mubr.msk.bf16.mxu0 %vm10107_vm0, %v10106_v1 }
 0x13c   : > { %8381 = vmatmul.mubr.msk.bf16.gmra.mrb[28].mxu0 %vm655_vm1, %v8632_v13 }
 0x1d7   : > { %v723_v17 = vpop.f32.mrb[0].mxu0 }
 0x1d8   : > { %v724_v18 = vadd.f32 %v10470_v16, %v723_v17  ;;  %v8354_v19 = vpop.f32.mrb[1].mxu0  ;;  %v787_v25 = vpop.f32.mrb[0].mxu1 }
 0x1d9   : > { %v726_v20 = vpop.f32.mrb[2].mxu0  ;;  %v788_v26 = vadd.f32 %v10470_v16, %v787_v25  ;;  %v8386_v27 = vpop.f32.mrb[1].mxu1 }
 0x1da   : > { %v727_v21 = vadd.f32 %v10470_v16, %v726_v20  ;;  %v8355_v22 = vpop.f32.mrb[3].mxu0  ;;  %v810_v23 = vmax.f32 %v724_v18, 0.0  ;;  %v790_v29 = vpop.f32.mrb[2].mxu1 }
 0x1db   : > { %v826_v31 = vmax.f32 %v788_v26, 0.0  ;;  %v791_v32 = vadd.f32 %v10470_v16, %v790_v29  ;;  %v8387_v33 = vpop.f32.mrb[3].mxu1 }
 0x1dc   : > { %v811_v24 = vmax.f32 %v727_v21, 0.0 }
 0x1dd   : > { %v827_v37 = vmax.f32 %v791_v32, 0.0 }
 0x1de   : > { %v832_v28 = vpack.c.bf16 %v811_v24, %v810_v23 }
 0x1df   : > { %v731_v30 = vpop.f32.mrb[4].mxu0  ;;  %v10479_v40 = vpack.c.bf16 %v827_v37, %v826_v31 }
 0x1e0   : > { %v732_v34 = vadd.f32 %v10470_v16, %v731_v30  ;;  %v8358_v35 = vpop.f32.mrb[5].mxu0  ;;  %1223 = vmatpush1.bf16.msra.mxu1 %v832_v28  ;;  %v795_v43 = vpop.f32.mrb[4].mxu1 }
 0x1e1   : > { %v734_v36 = vpop.f32.mrb[6].mxu0  ;;  %1224 = vmatprep.subr.bf16.mxu1 %v10108_v14  ;;  %v796_v44 = vadd.f32 %v10470_v16, %v795_v43  ;;  %v8390_v45 = vpop.f32.mrb[5].mxu1 }
 0x1e2   : > { %v735_v38 = vadd.f32 %v10470_v16, %v734_v36  ;;  %v8359_v39 = vpop.f32.mrb[7].mxu0  ;;  %v812_v41 = vmax.f32 %v732_v34, 0.0  ;;  %v798_v47 = vpop.f32.mrb[6].mxu1 }
 0x1e3   : > { %v828_v49 = vmax.f32 %v796_v44, 0.0  ;;  %v799_v50 = vadd.f32 %v10470_v16, %v798_v47  ;;  %v8391_v51 = vpop.f32.mrb[7].mxu1 }
 0x1e4   : > { %v813_v42 = vmax.f32 %v735_v38, 0.0 }
 0x1e5   : > { %v829_v55 = vmax.f32 %v799_v50, 0.0 }
 0x1e6   : > { %v833_v46 = vpack.c.bf16 %v813_v42, %v812_v41 }
 0x1e7   : > { %v739_v48 = vpop.f32.mrb[8].mxu0  ;;  %v10486_v58 = vpack.c.bf16 %v829_v55, %v828_v49  ;;  %v8635_v55 = vld [vmem:[%s10946_s3] ss:$8 sps:$4 sm:$0xff]  }
 0x1e8   : > { %v740_v52 = vadd.f32 %v10470_v16, %v739_v48  ;;  %v8362_v53 = vpop.f32.mrb[9].mxu0  ;;  %1225 = vmatpush1.bf16.msra.mxu1 %v833_v46  ;;  %v803_v61 = vpop.f32.mrb[8].mxu1 }
 0x1e9   : > { %v742_v54 = vpop.f32.mrb[10].mxu0  ;;  %1226 = vmatprep.subr.bf16.mxu1 %v10108_v14  ;;  %v804_v62 = vadd.f32 %v10470_v16, %v803_v61  ;;  %v8394_v63 = vpop.f32.mrb[9].mxu1  ;;  %v8643_v61 = vld [vmem:[%s10946_s3 + $0x20] ss:$8 sps:$4 sm:$0xff]  }
 0x1ea   : > { %v743_v56 = vadd.f32 %v10470_v16, %v742_v54  ;;  %v8363_v57 = vpop.f32.mrb[11].mxu0  ;;  %v814_v59 = vmax.f32 %v740_v52, 0.0  ;;  %v806_v1 = vpop.f32.mrb[10].mxu1  ;;  %v8644_v63 = vld [vmem:[%s10946_s3 + $0x34] ss:$8 sps:$4 sm:$0xff]  }
 0x1eb   : > { %v830_v3 = vmax.f32 %v804_v62, 0.0  ;;  %v807_v4 = vadd.f32 %v10470_v16, %v806_v1  ;;  %v8395_v5 = vpop.f32.mrb[11].mxu1  ;;  %v8689_v57 = vld [vmem:[#allocation7] ss:$8 sps:$4 sm:$0xff]   ;;  %v8697_v62 = vld [vmem:[#allocation7 + $0x24] ss:$8 sps:$4 sm:$0xff]  }
 0x1ec   : > { %v815_v60 = vmax.f32 %v743_v56, 0.0  ;;  %v8641_v56 = vld [vmem:[%s10946_s3 + $0x24] ss:$8 sps:$4 sm:$0xff]  }
 0x1ed   : > { %v831_v9 = vmax.f32 %v807_v4, 0.0  ;;  %v8702_v1 = vld [vmem:[#allocation7 + $0x34] ss:$8 sps:$4 sm:$0xff]   ;;  %v8706_v4 = vld [vmem:[#allocation7 + $0x44] ss:$8 sps:$4 sm:$0xff]  }
 0x1ee   : > { %v834_v0 = vpack.c.bf16 %v815_v60, %v814_v59  ;;  %v8694_v59 = vld [vmem:[#allocation7 + $0x14] ss:$8 sps:$4 sm:$0xff]   ;;  %v8692_v60 = vld [vmem:[#allocation7 + $0x10] ss:$8 sps:$4 sm:$0xff]  }
 0x1ef   : > { %v747_v2 = vpop.f32.mrb[12].mxu0  ;;  %v842_v12 = vpack.c.bf16 %v831_v9, %v830_v3  ;;  %v8646_v3 = vld [vmem:[%s10946_s3 + $0x30] ss:$8 sps:$4 sm:$0xff]   ;;  %v8647_v5 = vld [vmem:[%s10946_s3 + $0x44] ss:$8 sps:$4 sm:$0xff]  }
 0x1f0   : > { %v748_v6 = vadd.f32 %v10470_v16, %v747_v2  ;;  %v8366_v7 = vpop.f32.mrb[13].mxu0  ;;  %1227 = vmatpush1.bf16.msra.mxu1 %v834_v0  ;;  %v8695_v0 = vld [vmem:[#allocation7 + $0x20] ss:$8 sps:$4 sm:$0xff]   ;;  %v8700_v2 = vld [vmem:[#allocation7 + $0x30] ss:$8 sps:$4 sm:$0xff]  }
 0x1f1   : > { %v750_v8 = vpop.f32.mrb[14].mxu0  ;;  %1228 = vmatprep.subr.bf16.mxu1 %v10108_v14  ;;  %v8711_v7 = vld [vmem:[#allocation7 + $0x54] ss:$8 sps:$4 sm:$0xff]  }
 0x1f2   : > { %v751_v10 = vadd.f32 %v10470_v16, %v750_v8  ;;  %v8367_v11 = vpop.f32.mrb[15].mxu0  ;;  %v816_v13 = vmax.f32 %v748_v6, 0.0  ;;  %v8704_v6 = vld [vmem:[#allocation7 + $0x40] ss:$8 sps:$4 sm:$0xff]   ;;  %v8709_v8 = vld [vmem:[#allocation7 + $0x50] ss:$8 sps:$4 sm:$0xff]  }
 0x1f3   : > { %v8649_v9 = vld [vmem:[%s10946_s3 + $0x40] ss:$8 sps:$4 sm:$0xff]   ;;  %v8650_v11 = vld [vmem:[%s10946_s3 + $0x54] ss:$8 sps:$4 sm:$0xff]  }
 0x1f4   : > { %v817_v15 = vmax.f32 %v751_v10, 0.0  ;;  %v8715_v10 = vld [vmem:[#allocation7 + $0x64] ss:$8 sps:$4 sm:$0xff]  }
 0x1f6   : > { %v835_v17 = vpack.c.bf16 %v817_v15, %v816_v13  ;;  %v8720_v13 = vld [vmem:[#allocation7 + $0x74] ss:$8 sps:$4 sm:$0xff]   ;;  %v8718_v15 = vld [vmem:[#allocation7 + $0x70] ss:$8 sps:$4 sm:$0xff]  }
 0x1f7   : > { %v755_v18 = vpop.f32.mrb[16].mxu0 }
 0x1f8   : > { %v756_v19 = vadd.f32 %v10470_v16, %v755_v18  ;;  %v8370_v20 = vpop.f32.mrb[17].mxu0  ;;  %1229 = vmatpush1.bf16.msra.mxu1 %v835_v17  ;;  %v8652_v17 = vld [vmem:[%s10946_s3 + $0x50] ss:$8 sps:$4 sm:$0xff]  }
 0x1f9   : > { %v758_v21 = vpop.f32.mrb[18].mxu0  ;;  %1230 = vmatprep.subr.bf16.mxu1 %v10108_v14  ;;  %v8724_v18 = vld [vmem:[#allocation7 + $0x84] ss:$8 sps:$4 sm:$0xff]   ;;  %v8722_v20 = vld [vmem:[#allocation7 + $0x80] ss:$8 sps:$4 sm:$0xff]  }
 0x1fa   : > { %v759_v22 = vadd.f32 %v10470_v16, %v758_v21  ;;  %v8371_v23 = vpop.f32.mrb[19].mxu0  ;;  %v818_v24 = vmax.f32 %v756_v19, 0.0  ;;  %v8653_v19 = vld [vmem:[%s10946_s3 + $0x64] ss:$8 sps:$4 sm:$0xff]   ;;  %v8655_v21 = vld [vmem:[%s10946_s3 + $0x60] ss:$8 sps:$4 sm:$0xff]  }
 0x1fb   : > { %v8658_v23 = vld [vmem:[%s10946_s3 + $0x70] ss:$8 sps:$4 sm:$0xff]  }
 0x1fc   : > { %v819_v25 = vmax.f32 %v759_v22, 0.0  ;;  %v8656_v22 = vld [vmem:[%s10946_s3 + $0x74] ss:$8 sps:$4 sm:$0xff]  }
 0x1fe   : > { %v836_v26 = vpack.c.bf16 %v819_v25, %v818_v24  ;;  %v8659_v24 = vld [vmem:[%s10946_s3 + $0x84] ss:$8 sps:$4 sm:$0xff]   ;;  %v8661_v25 = vld [vmem:[%s10946_s3 + $0x80] ss:$8 sps:$4 sm:$0xff]  }
 0x1ff   : > { %v763_v27 = vpop.f32.mrb[20].mxu0 }
 0x200   : > { %v764_v28 = vadd.f32 %v10470_v16, %v763_v27  ;;  %v8374_v29 = vpop.f32.mrb[21].mxu0  ;;  %1231 = vmatpush1.bf16.msra.mxu1 %v836_v26  ;;  %v8662_v26 = vld [vmem:[%s10946_s3 + $0x94] ss:$8 sps:$4 sm:$0xff]   ;;  %v8664_v27 = vld [vmem:[%s10946_s3 + $0x90] ss:$8 sps:$4 sm:$0xff]  }
 0x201   : > { %v766_v30 = vpop.f32.mrb[22].mxu0  ;;  %1232 = vmatprep.subr.bf16.mxu1 %v10108_v14  ;;  %v8667_v29 = vld [vmem:[%s10946_s3 + $0xa0] ss:$8 sps:$4 sm:$0xff]  }
 0x202   : > { %v767_v31 = vadd.f32 %v10470_v16, %v766_v30  ;;  %v8375_v32 = vpop.f32.mrb[23].mxu0  ;;  %v820_v33 = vmax.f32 %v764_v28, 0.0  ;;  %v8665_v28 = vld [vmem:[%s10946_s3 + $0xa4] ss:$8 sps:$4 sm:$0xff]   ;;  %v8668_v30 = vld [vmem:[%s10946_s3 + $0xb4] ss:$8 sps:$4 sm:$0xff]  }
 0x203   : > { %v8727_v32 = vld [vmem:[#allocation7 + $0x90] ss:$8 sps:$4 sm:$0xff]  }
 0x204   : > { %v821_v34 = vmax.f32 %v767_v31, 0.0  ;;  %v8729_v31 = vld [vmem:[#allocation7 + $0x94] ss:$8 sps:$4 sm:$0xff]  }
 0x206   : > { %v837_v35 = vpack.c.bf16 %v821_v34, %v820_v33  ;;  %v8670_v33 = vld [vmem:[%s10946_s3 + $0xb0] ss:$8 sps:$4 sm:$0xff]   ;;  %v8671_v34 = vld [vmem:[%s10946_s3 + $0xc4] ss:$8 sps:$4 sm:$0xff]  }
 0x207   : > { %v771_v36 = vpop.f32.mrb[24].mxu0 }
 0x208   : > { %v772_v37 = vadd.f32 %v10470_v16, %v771_v36  ;;  %v8378_v38 = vpop.f32.mrb[25].mxu0  ;;  %1233 = vmatpush1.bf16.msra.mxu1 %v837_v35  ;;  %v8731_v35 = vld [vmem:[#allocation7 + $0xa0] ss:$8 sps:$4 sm:$0xff]   ;;  %v8733_v36 = vld [vmem:[#allocation7 + $0xa4] ss:$8 sps:$4 sm:$0xff]  }
 0x209   : > { %v774_v39 = vpop.f32.mrb[26].mxu0  ;;  %1234 = vmatprep.subr.bf16.mxu1 %v10108_v14  ;;  %v8734_v38 = vld [vmem:[#allocation7 + $0xb0] ss:$8 sps:$4 sm:$0xff]  }
 0x20a   : > { %v775_v41 = vadd.f32 %v10470_v16, %v774_v39  ;;  %v8379_v42 = vpop.f32.mrb[27].mxu0  ;;  %v822_v43 = vmax.f32 %v772_v37, 0.0  ;;  %v8736_v37 = vld [vmem:[#allocation7 + $0xb4] ss:$8 sps:$4 sm:$0xff]  }
 0x20b   : > { %v8673_v39 = vld [vmem:[%s10946_s3 + $0xc0] ss:$8 sps:$4 sm:$0xff]  }
 0x20c   : > { %v823_v44 = vmax.f32 %v775_v41, 0.0  ;;  %v8674_v41 = vld [vmem:[%s10946_s3 + $0xd4] ss:$8 sps:$4 sm:$0xff]  }
 0x20d   : > { %v8740_v42 = vld [vmem:[#allocation7 + $0xc0] ss:$8 sps:$4 sm:$0xff]  }
 0x20e   : > { %v838_v45 = vpack.c.bf16 %v823_v44, %v822_v43  ;;  %v8742_v43 = vld [vmem:[#allocation7 + $0xc4] ss:$8 sps:$4 sm:$0xff]   ;;  %v8745_v44 = vld [vmem:[#allocation7 + $0xd4] ss:$8 sps:$4 sm:$0xff]  }
 0x20f   : > { %v779_v46 = vpop.f32.mrb[28].mxu0 }
 0x210   : > { %v780_v47 = vadd.f32 %v10470_v16, %v779_v46  ;;  %v8382_v48 = vpop.f32.mrb[29].mxu0  ;;  %1235 = vmatpush1.bf16.msra.mxu1 %v838_v45  ;;  %v8743_v45 = vld [vmem:[#allocation7 + $0xd0] ss:$8 sps:$4 sm:$0xff]  }
 0x211   : > { %v782_v49 = vpop.f32.mrb[30].mxu0  ;;  %1236 = vmatprep.subr.bf16.mxu1 %v10108_v14  ;;  %v8676_v46 = vld [vmem:[%s10946_s3 + $0xd0] ss:$8 sps:$4 sm:$0xff]  }
 0x212   : > { %v783_v50 = vadd.f32 %v10470_v16, %v782_v49  ;;  %v8383_v51 = vpop.f32.mrb[31].mxu0  ;;  %v824_v52 = vmax.f32 %v780_v47, 0.0  ;;  %v8638_v16 = vld [vmem:[%s10946_s3 + $0x14] ss:$8 sps:$4 sm:$0xff]   ;;  %v8677_v47 = vld [vmem:[%s10946_s3 + $0xe4] ss:$8 sps:$4 sm:$0xff]  }
 0x213   : > { %v8749_v48 = vld [vmem:[#allocation7 + $0xe0] ss:$8 sps:$4 sm:$0xff]   ;;  %v8751_v49 = vld [vmem:[#allocation7 + $0xe4] ss:$8 sps:$4 sm:$0xff]   ;;  %v8752_v51 = vld [vmem:[#allocation7 + $0xf0] ss:$8 sps:$4 sm:$0xff]  }
 0x214   : > { %v825_v53 = vmax.f32 %v783_v50, 0.0  ;;  %v8754_v50 = vld [vmem:[#allocation7 + $0xf4] ss:$8 sps:$4 sm:$0xff]  }
 0x216   : > { %v839_v54 = vpack.c.bf16 %v825_v53, %v824_v52  ;;  %v8679_v52 = vld [vmem:[%s10946_s3 + $0xe0] ss:$8 sps:$4 sm:$0xff]   ;;  %v8680_v53 = vld [vmem:[%s10946_s3 + $0xf4] ss:$8 sps:$4 sm:$0xff]  }
 0x218   : > { %1237 = vmatpush1.bf16.msra.mxu1 %v839_v54  ;;  %v8757_v54 = vld [vmem:[#allocation7 + $0x104] ss:$8 sps:$4 sm:$0xff]  }
 0x219   : > { %1238 = vmatprep.subr.bf16.mxu1 %v10108_v14 }
 0x21c   : > { %1239 = vmatpush1.bf16.msra.mxu1 %v10479_v40  ;;  %v8640_v40 = vld [vmem:[%s10946_s3 + $0x10] ss:$8 sps:$4 sm:$0xff]  }
 0x21d   : > { %1240 = vmatprep.subr.bf16.mxu1 %v10108_v14 }
 0x220   : > { %1241 = vmatpush1.bf16.msra.mxu1 %v10486_v58  ;;  %v8691_v58 = vld [vmem:[#allocation7 + $0x4] ss:$8 sps:$4 sm:$0xff]  }
 0x221   : > { %1242 = vmatprep.subr.bf16.mxu1 %v10108_v14  ;;  %2362 = vmatprep.subr.bf16.mxu0 %v8691_v58  ;;  %v8698_v58 = vld [vmem:[%s10946_s3 + $0x124] ss:$8 sps:$4 sm:$0xff]  }
 0x222   : > { %2363 = vmatpush1.bf16.msra.mxu0 %v8689_v57  ;;  %v8688_v57 = vld [vmem:[%s10946_s3 + $0x110] ss:$8 sps:$4 sm:$0xff]  }
 0x223   : > { %2364 = vmatprep.subr.bf16.mxu0 %v8694_v59  ;;  %v8703_v59 = vld [vmem:[%s10946_s3 + $0x120] ss:$8 sps:$4 sm:$0xff]  }
 0x224   : > { %1243 = vmatpush1.bf16.msra.mxu1 %v842_v12  ;;  %v8713_v12 = vld [vmem:[#allocation7 + $0x60] ss:$8 sps:$4 sm:$0xff]  }
 0x226   : > { %2365 = vmatpush1.bf16.msra.mxu0 %v8692_v60  ;;  %v8707_v60 = vld [vmem:[%s10946_s3 + $0x134] ss:$8 sps:$4 sm:$0xff]  }
 0x227   : > { %1255 = vmatmul.mubr.bf16.vlgmr.msra.gmra.mrb[12].mxu1 %v8635_v55  ;;  %2366 = vmatprep.subr.bf16.mxu0 %v8697_v62  ;;  %v8682_v55 = vld [vmem:[%s10946_s3 + $0xf0] ss:$8 sps:$4 sm:$0xff]   ;;  %v8716_v62 = vld [vmem:[%s10946_s3 + $0x144] ss:$8 sps:$4 sm:$0xff]  }
 0x228   : > { %7572 = vmatprep.mubr.msk.bf16.mxu1 %vm1140_vm2, %v8638_v16  ;;  %v8683_v16 = vld [vmem:[%s10946_s3 + $0x104] ss:$8 sps:$4 sm:$0xff]  }
 0x22a   : > { %2367 = vmatpush1.bf16.msra.mxu0 %v8695_v0  ;;  %v8725_v0 = vld [vmem:[%s10946_s3 + $0x154] ss:$8 sps:$4 sm:$0xff]  }
 0x22b   : > { %2368 = vmatprep.subr.bf16.mxu0 %v8702_v1  ;;  %v8730_v1 = vld [vmem:[%s10946_s3 + $0x150] ss:$8 sps:$4 sm:$0xff]  }
 0x22e   : > { %2369 = vmatpush1.bf16.msra.mxu0 %v8700_v2  ;;  %v8737_v2 = vld [vmem:[%s10946_s3 + $0x164] ss:$8 sps:$4 sm:$0xff]  }
 0x22f   : > { %1263 = vmatmul.mubr.bf16.gmra.mrb[16].mxu1 %v8640_v40  ;;  %2370 = vmatprep.subr.bf16.mxu0 %v8706_v4  ;;  %v8685_v40 = vld [vmem:[%s10946_s3 + $0x100] ss:$8 sps:$4 sm:$0xff]   ;;  %v8746_v4 = vld [vmem:[%s10946_s3 + $0x174] ss:$8 sps:$4 sm:$0xff]  }
 0x230   : > { %7573 = vmatprep.mubr.msk.bf16.mxu1 %vm1140_vm2, %v8641_v56  ;;  %v8686_v56 = vld [vmem:[%s10946_s3 + $0x114] ss:$8 sps:$4 sm:$0xff]  }
 0x232   : > { %2371 = vmatpush1.bf16.msra.mxu0 %v8704_v6  ;;  %v8758_v6 = vld [vmem:[%s10946_s3 + $0x184] ss:$8 sps:$4 sm:$0xff]  }
 0x233   : > { %2372 = vmatprep.subr.bf16.mxu0 %v8711_v7  ;;  %v8763_v7 = vld [vmem:[%s10946_s3 + $0x180] ss:$8 sps:$4 sm:$0xff]  }
 0x236   : > { %2373 = vmatpush1.bf16.msra.mxu0 %v8709_v8  ;;  %v8770_v8 = vld [vmem:[%s10946_s3 + $0x194] ss:$8 sps:$4 sm:$0xff]  }
 0x237   : > { %1271 = vmatmul.mubr.bf16.gmra.mrb[20].mxu1 %v8643_v61  ;;  %2374 = vmatprep.subr.bf16.mxu0 %v8715_v10  ;;  %v8712_v61 = vld [vmem:[%s10946_s3 + $0x130] ss:$8 sps:$4 sm:$0xff]   ;;  %v8779_v10 = vld [vmem:[%s10946_s3 + $0x1a4] ss:$8 sps:$4 sm:$0xff]  }
 0x238   : > { %7574 = vmatprep.mubr.msk.bf16.mxu1 %vm1140_vm2, %v8644_v63  ;;  %v8721_v63 = vld [vmem:[%s10946_s3 + $0x140] ss:$8 sps:$4 sm:$0xff]  }
 0x23a   : > { %2375 = vmatpush1.bf16.msra.mxu0 %v8713_v12 }
 0x23b   : > { %2376 = vmatprep.subr.bf16.mxu0 %v8720_v13 }
 0x23e   : > { %2377 = vmatpush1.bf16.msra.mxu0 %v8718_v15 }
 0x23f   : > { %1279 = vmatmul.mubr.bf16.gmra.mrb[24].mxu1 %v8646_v3  ;;  %2378 = vmatprep.subr.bf16.mxu0 %v8724_v18  ;;  %v8739_v3 = vld [vmem:[%s10946_s3 + $0x160] ss:$8 sps:$4 sm:$0xff]  }
 0x240   : > { %7575 = vmatprep.mubr.msk.bf16.mxu1 %vm1140_vm2, %v8647_v5  ;;  %v8748_v5 = vld [vmem:[%s10946_s3 + $0x170] ss:$8 sps:$4 sm:$0xff]  }
 0x242   : > { %2379 = vmatpush1.bf16.msra.mxu0 %v8722_v20 }
 0x243   : > { %2380 = vmatprep.subr.bf16.mxu0 %v8729_v31 }
 0x246   : > { %2381 = vmatpush1.bf16.msra.mxu0 %v8727_v32 }
 0x247   : > { %1287 = vmatmul.mubr.bf16.gmra.mrb[28].mxu1 %v8649_v9  ;;  %2382 = vmatprep.subr.bf16.mxu0 %v8733_v36  ;;  %v8772_v9 = vld [vmem:[%s10946_s3 + $0x190] ss:$8 sps:$4 sm:$0xff]  }
 0x248   : > { %7576 = vmatprep.mubr.msk.bf16.mxu1 %vm1140_vm2, %v8650_v11  ;;  %v8781_v11 = vld [vmem:[%s10946_s3 + $0x1a0] ss:$8 sps:$4 sm:$0xff]  }
 0x249   : > { %v8760_v36 = vld [vmem:[#allocation7 + $0x110] ss:$8 sps:$4 sm:$0xff]  }
 0x24a   : > { %2383 = vmatpush1.bf16.msra.mxu0 %v8731_v35  ;;  %v8762_v35 = vld [vmem:[#allocation7 + $0x114] ss:$8 sps:$4 sm:$0xff]  }
 0x24b   : > { %2384 = vmatprep.subr.bf16.mxu0 %v8736_v37 }
 0x24e   : > { %2385 = vmatpush1.bf16.msra.mxu0 %v8734_v38  ;;  %v8766_v38 = vld [vmem:[#allocation7 + $0x124] ss:$8 sps:$4 sm:$0xff]  }
 0x24f   : > { %1295 = vmatmul.mubr.bf16.gmra.mrb[32].mxu1 %v8652_v17  ;;  %2386 = vmatprep.subr.bf16.mxu0 %v8742_v43  ;;  %v8764_v43 = vld [vmem:[#allocation7 + $0x120] ss:$8 sps:$4 sm:$0xff]  }
 0x250   : > { %7577 = vmatprep.mubr.msk.bf16.mxu1 %vm1140_vm2, %v8653_v19 }
 0x252   : > { %2387 = vmatpush1.bf16.msra.mxu0 %v8740_v42 }
 0x253   : > { %2388 = vmatprep.subr.bf16.mxu0 %v8745_v44 }
 0x256   : > { %2389 = vmatpush1.bf16.msra.mxu0 %v8743_v45  ;;  %v8769_v45 = vld [vmem:[#allocation7 + $0x134] ss:$8 sps:$4 sm:$0xff]  }
 0x257   : > { %1303 = vmatmul.mubr.bf16.gmra.mrb[36].mxu1 %v8655_v21  ;;  %2390 = vmatprep.subr.bf16.mxu0 %v8751_v49 }
 0x258   : > { %7578 = vmatprep.mubr.msk.bf16.mxu1 %vm1140_vm2, %v8656_v22 }
 0x25a   : > { %2391 = vmatpush1.bf16.msra.mxu0 %v8749_v48  ;;  %v8775_v48 = vld [vmem:[#allocation7 + $0x144] ss:$8 sps:$4 sm:$0xff]  }
 0x25b   : > { %2392 = vmatprep.subr.bf16.mxu0 %v8754_v50 }
 0x25e   : > { %2393 = vmatpush1.bf16.msra.mxu0 %v8752_v51 }
 0x25f   : > { %1311 = vmatmul.mubr.bf16.gmra.mrb[40].mxu1 %v8658_v23  ;;  %2425 = vmatprep.subr.bf16.mxu0 %v8757_v54  ;;  %v8778_v54 = vld [vmem:[#allocation7 + $0x154] ss:$8 sps:$4 sm:$0xff]  }
 0x260   : > { %7579 = vmatprep.mubr.msk.bf16.mxu1 %vm1140_vm2, %v8659_v24 }
 0x267   : > { %1319 = vmatmul.mubr.bf16.gmra.mrb[44].mxu1 %v8661_v25 }
 0x268   : > { %7580 = vmatprep.mubr.msk.bf16.mxu1 %vm1140_vm2, %v8662_v26 }
 0x26f   : > { %1327 = vmatmul.mubr.bf16.gmra.mrb[48].mxu1 %v8664_v27 }
 0x270   : > { %7581 = vmatprep.mubr.msk.bf16.mxu1 %vm1140_vm2, %v8665_v28 }
 0x277   : > { %1335 = vmatmul.mubr.bf16.gmra.mrb[52].mxu1 %v8667_v29 }
 0x278   : > { %7582 = vmatprep.mubr.msk.bf16.mxu1 %vm1140_vm2, %v8668_v30 }
 0x27f   : > { %1343 = vmatmul.mubr.bf16.gmra.mrb[56].mxu1 %v8670_v33 }
 0x280   : > { %7583 = vmatprep.mubr.msk.bf16.mxu1 %vm1140_vm2, %v8671_v34  ;;  %v8755_v34 = vld [vmem:[#allocation7 + $0x100] ss:$8 sps:$4 sm:$0xff]  }
 0x287   : > { %1351 = vmatmul.mubr.bf16.gmra.mrb[60].mxu1 %v8673_v39 }
 0x288   : > { %7584 = vmatprep.mubr.msk.bf16.mxu1 %vm1140_vm2, %v8674_v41 }
 0x28f   : > { %1359 = vmatmul.mubr.bf16.gmra.mrb[64].mxu1 %v8676_v46  ;;  %v8767_v46 = vld [vmem:[#allocation7 + $0x130] ss:$8 sps:$4 sm:$0xff]  }
 0x290   : > { %7585 = vmatprep.mubr.msk.bf16.mxu1 %vm1140_vm2, %v8677_v47 }
 0x297   : > { %1367 = vmatmul.mubr.bf16.gmra.mrb[68].mxu1 %v8679_v52  ;;  %v8773_v52 = vld [vmem:[#allocation7 + $0x140] ss:$8 sps:$4 sm:$0xff]  }
 0x298   : > { %7586 = vmatprep.mubr.msk.bf16.mxu1 %vm1140_vm2, %v8680_v53 }
 0x29f   : > { %1375 = vmatmul.mubr.bf16.gmra.mrb[72].mxu1 %v8682_v55  ;;  %v8776_v55 = vld [vmem:[#allocation7 + $0x150] ss:$8 sps:$4 sm:$0xff]  }
 0x2a0   : > { %7587 = vmatprep.mubr.msk.bf16.mxu1 %vm1140_vm2, %v8683_v16  ;;  %v8784_v16 = vld [vmem:[#allocation7 + $0x164] ss:$8 sps:$4 sm:$0xff]  }
 0x2a7   : > { %1383 = vmatmul.mubr.bf16.gmra.mrb[76].mxu1 %v8685_v40 }
 0x2a8   : > { %7588 = vmatprep.mubr.msk.bf16.mxu1 %vm1140_vm2, %v8686_v56 }
 0x2af   : > { %1391 = vmatmul.mubr.bf16.gmra.mrb[80].mxu1 %v8688_v57 }
 0x2b0   : > { %7589 = vmatprep.mubr.msk.bf16.mxu1 %vm1140_vm2, %v8698_v58  ;;  %v8782_v58 = vld [vmem:[#allocation7 + $0x160] ss:$8 sps:$4 sm:$0xff]  }
 0x2b7   : > { %1399 = vmatmul.mubr.bf16.gmra.mrb[84].mxu1 %v8703_v59 }
 0x2b8   : > { %7590 = vmatprep.mubr.msk.bf16.mxu1 %vm1140_vm2, %v8707_v60 }
 0x2bf   : > { %1407 = vmatmul.mubr.bf16.gmra.mrb[88].mxu1 %v8712_v61  ;;  %v8787_v61 = vld [vmem:[#allocation7 + $0x174] ss:$8 sps:$4 sm:$0xff]  }
 0x2c0   : > { %7591 = vmatprep.mubr.msk.bf16.mxu1 %vm1140_vm2, %v8716_v62  ;;  %v8785_v62 = vld [vmem:[#allocation7 + $0x170] ss:$8 sps:$4 sm:$0xff]  }
 0x2c7   : > { %1415 = vmatmul.mubr.bf16.gmra.mrb[92].mxu1 %v8721_v63  ;;  %v8790_v63 = vld [vmem:[#allocation7 + $0x184] ss:$8 sps:$4 sm:$0xff]  }
 0x2c8   : > { %7592 = vmatprep.mubr.msk.bf16.mxu1 %vm1140_vm2, %v8725_v0 }
 0x2cf   : > { %1423 = vmatmul.mubr.bf16.gmra.mrb[96].mxu1 %v8730_v1 }
 0x2d0   : > { %7593 = vmatprep.mubr.msk.bf16.mxu1 %vm1140_vm2, %v8737_v2 }
 0x2d7   : > { %1431 = vmatmul.mubr.bf16.gmra.mrb[100].mxu1 %v8739_v3  ;;  %v8788_v3 = vld [vmem:[#allocation7 + $0x180] ss:$8 sps:$4 sm:$0xff]  }
 0x2d8   : > { %7594 = vmatprep.mubr.msk.bf16.mxu1 %vm1140_vm2, %v8746_v4 }
 0x2df   : > { %1439 = vmatmul.mubr.bf16.gmra.mrb[104].mxu1 %v8748_v5 }
 0x2e0   : > { %7595 = vmatprep.mubr.msk.bf16.mxu1 %vm1140_vm2, %v8758_v6  ;;  %v8793_v6 = vld [vmem:[#allocation7 + $0x194] ss:$8 sps:$4 sm:$0xff]  }
 0x2e7   : > { %1447 = vmatmul.mubr.bf16.gmra.mrb[108].mxu1 %v8763_v7  ;;  %v8791_v7 = vld [vmem:[#allocation7 + $0x190] ss:$8 sps:$4 sm:$0xff]  }
 0x2e8   : > { %7596 = vmatprep.mubr.msk.bf16.mxu1 %vm1140_vm2, %v8770_v8  ;;  %v8796_v8 = vld [vmem:[#allocation7 + $0x1a4] ss:$8 sps:$4 sm:$0xff]  }
 0x2ef   : > { %1455 = vmatmul.mubr.bf16.gmra.mrb[112].mxu1 %v8772_v9 }
 0x2f0   : > { %7597 = vmatprep.mubr.msk.bf16.mxu1 %vm1140_vm2, %v8779_v10 }
 0x2f7   : > { %1463 = vmatmul.mubr.bf16.gmra.mrb[116].mxu1 %v8781_v11 }
 0x2f8   : > { %2865 = vmatprep.mubr.bf16.mxu1 %v10108_v14 }
 0x2fa   : > { %v1256_v12 = vpop.f32.mrb[12].mxu1 }
 0x2fb   : > { %v1258_v13 = vpop.f32.mrb[13].mxu1 }
 0x2fc   : > { %v1259_v15 = vpop.f32.mrb[14].mxu1 }
 0x2fd   : > { %v1471_v17 = vpack.c.bf16 %v1259_v15, %v1256_v12  ;;  %v1261_v18 = vpop.f32.mrb[15].mxu1  ;;  %v8794_v12 = vld [vmem:[#allocation7 + $0x1a0] ss:$8 sps:$4 sm:$0xff]  }
 0x2fe   : > { %v8797_v18 = vld [vmem:[#allocation7 + $0x1b0] ss:$8 sps:$4 sm:$0xff]  }
 0x302   : > { %v1264_v19 = vpop.f32.mrb[16].mxu1 }
 0x303   : > { %v1266_v20 = vpop.f32.mrb[17].mxu1 }
 0x304   : > { %v1267_v21 = vpop.f32.mrb[18].mxu1 }
 0x305   : > { %v1472_v22 = vpack.c.bf16 %v1267_v21, %v1264_v19  ;;  %v1269_v23 = vpop.f32.mrb[19].mxu1  ;;  %v8802_v19 = vld [vmem:[#allocation7 + $0x1c4] ss:$8 sps:$4 sm:$0xff]  }
 0x306   : > { %v8800_v23 = vld [vmem:[#allocation7 + $0x1c0] ss:$8 sps:$4 sm:$0xff]  }
 0x30a   : > { %v1272_v24 = vpop.f32.mrb[20].mxu1 }
 0x30b   : > { %v1274_v25 = vpop.f32.mrb[21].mxu1 }
 0x30c   : > { %v1275_v26 = vpop.f32.mrb[22].mxu1 }
 0x30d   : > { %v1473_v27 = vpack.c.bf16 %v1275_v26, %v1272_v24  ;;  %v1277_v28 = vpop.f32.mrb[23].mxu1  ;;  %v8805_v26 = vld [vmem:[#allocation7 + $0x1d4] ss:$8 sps:$4 sm:$0xff]  }
 0x30e   : > { %v8808_v28 = vld [vmem:[#allocation7 + $0x1e4] ss:$8 sps:$4 sm:$0xff]  }
 0x312   : > { %v1280_v29 = vpop.f32.mrb[24].mxu1 }
 0x313   : > { %v1282_v30 = vpop.f32.mrb[25].mxu1 }
 0x314   : > { %v1283_v31 = vpop.f32.mrb[26].mxu1 }
 0x315   : > { %v1474_v32 = vpack.c.bf16 %v1283_v31, %v1280_v29  ;;  %v1285_v33 = vpop.f32.mrb[27].mxu1 }
 0x317   : > { %2394 = vmatprep.mubr.bf16.mxu0 %v1474_v32  ;;  %v8806_v32 = vld [vmem:[#allocation7 + $0x1e0] ss:$8 sps:$4 sm:$0xff]  }
 0x318   : > { %2395 = vmatmul.mubr.bf16.vlgmr.msra.gmra.mrb[32].mxu0 %v1471_v17  ;;  %v8799_v17 = vld [vmem:[#allocation7 + $0x1b4] ss:$8 sps:$4 sm:$0xff]  }
 0x319   : > { %2426 = vmatpush1.bf16.msra.mxu0 %v8755_v34 }
 0x31a   : > { %v1288_v37 = vpop.f32.mrb[28].mxu1  ;;  %2427 = vmatprep.subr.bf16.mxu0 %v8762_v35  ;;  %v8811_v35 = vld [vmem:[#allocation7 + $0x1f4] ss:$8 sps:$4 sm:$0xff]  }
 0x31b   : > { %v1290_v39 = vpop.f32.mrb[29].mxu1 }
 0x31c   : > { %v1291_v41 = vpop.f32.mrb[30].mxu1 }
 0x31d   : > { %v1475_v42 = vpack.c.bf16 %v1291_v41, %v1288_v37  ;;  %2428 = vmatpush1.bf16.msra.mxu0 %v8760_v36  ;;  %v1293_v44 = vpop.f32.mrb[31].mxu1  ;;  %v8809_v36 = vld [vmem:[#allocation7 + $0x1f0] ss:$8 sps:$4 sm:$0xff]   ;;  %v8814_v37 = vld [vmem:[#allocation7 + $0x204] ss:$8 sps:$4 sm:$0xff]  }
 0x31e   : > { %2429 = vmatprep.subr.bf16.mxu0 %v8766_v38 }
 0x31f   : > { %2404 = vmatprep.mubr.bf16.mxu0 %v1475_v42  ;;  %v8812_v42 = vld [vmem:[#allocation7 + $0x200] ss:$8 sps:$4 sm:$0xff]  }
 0x320   : > { %2405 = vmatmul.mubr.bf16.gmra.mrb[36].mxu0 %v1472_v22 }
 0x321   : > { %2430 = vmatpush1.bf16.msra.mxu0 %v8764_v43 }
 0x322   : > { %v1296_v47 = vpop.f32.mrb[32].mxu1  ;;  %2431 = vmatprep.subr.bf16.mxu0 %v8769_v45  ;;  %v8817_v45 = vld [vmem:[#allocation7 + $0x214] ss:$8 sps:$4 sm:$0xff]  }
 0x323   : > { %v1298_v49 = vpop.f32.mrb[33].mxu1 }
 0x324   : > { %v1299_v50 = vpop.f32.mrb[34].mxu1 }
 0x325   : > { %v1476_v51 = vpack.c.bf16 %v1299_v50, %v1296_v47  ;;  %2432 = vmatpush1.bf16.msra.mxu0 %v8767_v46  ;;  %v1301_v53 = vpop.f32.mrb[35].mxu1  ;;  %v8815_v46 = vld [vmem:[#allocation7 + $0x210] ss:$8 sps:$4 sm:$0xff]   ;;  %v8820_v47 = vld [vmem:[#allocation7 + $0x224] ss:$8 sps:$4 sm:$0xff]  }
 0x326   : > { %2433 = vmatprep.subr.bf16.mxu0 %v8775_v48 }
 0x327   : > { %2414 = vmatprep.mubr.bf16.mxu0 %v1476_v51  ;;  %v8818_v51 = vld [vmem:[#allocation7 + $0x220] ss:$8 sps:$4 sm:$0xff]  }
 0x328   : > { %2415 = vmatmul.mubr.bf16.gmra.mrb[40].mxu0 %v1473_v27  ;;  %v8803_v27 = vld [vmem:[#allocation7 + $0x1d0] ss:$8 sps:$4 sm:$0xff]  }
 0x329   : > { %2434 = vmatpush1.bf16.msra.mxu0 %v8773_v52 }
 0x32a   : > { %2435 = vmatprep.subr.bf16.mxu0 %v8778_v54  ;;  %v10696_v40 = vpop.f32.mrb[36].mxu1  ;;  %v8823_v54 = vld [vmem:[#allocation7 + $0x234] ss:$8 sps:$4 sm:$0xff]  }
 0x32b   : > { %v1306_v56 = vpop.f32.mrb[37].mxu1 }
 0x32c   : > { %v10698_v57 = vpop.f32.mrb[38].mxu1 }
 0x32d   : > { %2436 = vmatpush1.bf16.msra.mxu0 %v8776_v55  ;;  %v1477_v59 = vpack.c.bf16 %v10698_v57, %v10696_v40  ;;  %v1309_v60 = vpop.f32.mrb[39].mxu1  ;;  %v8821_v55 = vld [vmem:[#allocation7 + $0x230] ss:$8 sps:$4 sm:$0xff]  }
 0x32e   : > { %2437 = vmatprep.subr.bf16.mxu0 %v8784_v16  ;;  %v8826_v16 = vld [vmem:[#allocation7 + $0x244] ss:$8 sps:$4 sm:$0xff]  }
 0x331   : > { %2438 = vmatpush1.bf16.msra.mxu0 %v8782_v58  ;;  %v8824_v58 = vld [vmem:[#allocation7 + $0x240] ss:$8 sps:$4 sm:$0xff]  }
 0x332   : > { %2439 = vmatprep.subr.bf16.mxu0 %v8787_v61  ;;  %v10702_v0 = vpop.f32.mrb[40].mxu1  ;;  %v8829_v61 = vld [vmem:[#allocation7 + $0x254] ss:$8 sps:$4 sm:$0xff]  }
 0x333   : > { %v1314_v1 = vpop.f32.mrb[41].mxu1 }
 0x334   : > { %v10704_v2 = vpop.f32.mrb[42].mxu1 }
 0x335   : > { %2440 = vmatpush1.bf16.msra.mxu0 %v8785_v62  ;;  %v1478_v4 = vpack.c.bf16 %v10704_v2, %v10702_v0  ;;  %v1317_v5 = vpop.f32.mrb[43].mxu1  ;;  %v8827_v62 = vld [vmem:[#allocation7 + $0x250] ss:$8 sps:$4 sm:$0xff]  }
 0x336   : > { %2441 = vmatprep.subr.bf16.mxu0 %v8790_v63  ;;  %v8832_v63 = vld [vmem:[#allocation7 + $0x264] ss:$8 sps:$4 sm:$0xff]  }
 0x339   : > { %2442 = vmatpush1.bf16.msra.mxu0 %v8788_v3  ;;  %v8830_v3 = vld [vmem:[#allocation7 + $0x260] ss:$8 sps:$4 sm:$0xff]  }
 0x33a   : > { %2443 = vmatprep.subr.bf16.mxu0 %v8793_v6  ;;  %v10708_v9 = vpop.f32.mrb[44].mxu1  ;;  %v8835_v6 = vld [vmem:[#allocation7 + $0x274] ss:$8 sps:$4 sm:$0xff]  }
 0x33b   : > { %v1322_v10 = vpop.f32.mrb[45].mxu1 }
 0x33c   : > { %v10710_v11 = vpop.f32.mrb[46].mxu1 }
 0x33d   : > { %2444 = vmatpush1.bf16.msra.mxu0 %v8791_v7  ;;  %v1479_v13 = vpack.c.bf16 %v10710_v11, %v10708_v9  ;;  %v1325_v15 = vpop.f32.mrb[47].mxu1  ;;  %v8833_v7 = vld [vmem:[#allocation7 + $0x270] ss:$8 sps:$4 sm:$0xff]  }
 0x33e   : > { %2445 = vmatprep.subr.bf16.mxu0 %v8796_v8  ;;  %v8838_v8 = vld [vmem:[#allocation7 + $0x284] ss:$8 sps:$4 sm:$0xff]  }
 0x341   : > { %2446 = vmatpush1.bf16.msra.mxu0 %v8794_v12  ;;  %v8836_v12 = vld [vmem:[#allocation7 + $0x280] ss:$8 sps:$4 sm:$0xff]  }
 0x342   : > { %2447 = vmatprep.subr.bf16.mxu0 %v8799_v17  ;;  %v1328_v20 = vpop.f32.mrb[48].mxu1  ;;  %v8841_v17 = vld [vmem:[#allocation7 + $0x294] ss:$8 sps:$4 sm:$0xff]  }
 0x343   : > { %v1330_v21 = vpop.f32.mrb[49].mxu1 }
 0x344   : > { %v1331_v22 = vpop.f32.mrb[50].mxu1 }
 0x345   : > { %2448 = vmatpush1.bf16.msra.mxu0 %v8797_v18  ;;  %v1480_v24 = vpack.c.bf16 %v1331_v22, %v1328_v20  ;;  %v1333_v25 = vpop.f32.mrb[51].mxu1  ;;  %v8839_v18 = vld [vmem:[#allocation7 + $0x290] ss:$8 sps:$4 sm:$0xff]  }
 0x346   : > { %2449 = vmatprep.subr.bf16.mxu0 %v8802_v19  ;;  %v8844_v19 = vld [vmem:[#allocation7 + $0x2a4] ss:$8 sps:$4 sm:$0xff]  }
 0x347   : > { %2457 = vmatprep.mubr.bf16.mxu0 %v1480_v24 }
 0x349   : > { %2450 = vmatpush1.bf16.msra.mxu0 %v8800_v23  ;;  %v8842_v23 = vld [vmem:[#allocation7 + $0x2a0] ss:$8 sps:$4 sm:$0xff]  }
 0x34a   : > { %2451 = vmatprep.subr.bf16.mxu0 %v8805_v26  ;;  %v1336_v29 = vpop.f32.mrb[52].mxu1  ;;  %v8847_v26 = vld [vmem:[#allocation7 + $0x2b4] ss:$8 sps:$4 sm:$0xff]  }
 0x34b   : > { %v1338_v30 = vpop.f32.mrb[53].mxu1 }
 0x34c   : > { %v1339_v31 = vpop.f32.mrb[54].mxu1 }
 0x34d   : > { %2452 = vmatpush1.bf16.msra.mxu0 %v8803_v27  ;;  %v1481_v33 = vpack.c.bf16 %v1339_v31, %v1336_v29  ;;  %v1341_v34 = vpop.f32.mrb[55].mxu1  ;;  %v8845_v27 = vld [vmem:[#allocation7 + $0x2b0] ss:$8 sps:$4 sm:$0xff]  }
 0x34e   : > { %2453 = vmatprep.subr.bf16.mxu0 %v8808_v28  ;;  %v8850_v28 = vld [vmem:[#allocation7 + $0x2c4] ss:$8 sps:$4 sm:$0xff]  }
 0x351   : > { %2454 = vmatpush1.bf16.msra.mxu0 %v8806_v32  ;;  %v8848_v32 = vld [vmem:[#allocation7 + $0x2c0] ss:$8 sps:$4 sm:$0xff]  }
 0x352   : > { %2455 = vmatprep.subr.bf16.mxu0 %v8811_v35  ;;  %v1344_v38 = vpop.f32.mrb[56].mxu1  ;;  %v8853_v35 = vld [vmem:[#allocation7 + $0x2d4] ss:$8 sps:$4 sm:$0xff]  }
 0x353   : > { %v1346_v39 = vpop.f32.mrb[57].mxu1 }
 0x354   : > { %v1347_v41 = vpop.f32.mrb[58].mxu1 }
 0x355   : > { %2456 = vmatpush1.bf16.msra.mxu0 %v8809_v36  ;;  %v1482_v43 = vpack.c.bf16 %v1347_v41, %v1344_v38  ;;  %v1349_v44 = vpop.f32.mrb[59].mxu1  ;;  %v8851_v36 = vld [vmem:[#allocation7 + $0x2d0] ss:$8 sps:$4 sm:$0xff]  }
 0x356   : > { %2488 = vmatprep.subr.bf16.mxu0 %v8814_v37  ;;  %v8856_v37 = vld [vmem:[#allocation7 + $0x2e4] ss:$8 sps:$4 sm:$0xff]  }
 0x358   : > { %2458 = vmatmul.mubr.bf16.vlgmr.msra.gmra.mrb[32].mxu0 %v1477_v59 }
 0x359   : > { %2489 = vmatpush1.bf16.msra.mxu0 %v8812_v42  ;;  %2467 = vmatprep.mubr.bf16.mxu0 %v1481_v33  ;;  %v8854_v42 = vld [vmem:[#allocation7 + $0x2e0] ss:$8 sps:$4 sm:$0xff]  }
 0x35a   : > { %2490 = vmatprep.subr.bf16.mxu0 %v8817_v45  ;;  %v10717_v48 = vpop.f32.mrb[60].mxu1  ;;  %v8859_v45 = vld [vmem:[#allocation7 + $0x2f4] ss:$8 sps:$4 sm:$0xff]  }
 0x35b   : > { %v1354_v49 = vpop.f32.mrb[61].mxu1 }
 0x35c   : > { %v10719_v50 = vpop.f32.mrb[62].mxu1 }
 0x35d   : > { %2491 = vmatpush1.bf16.msra.mxu0 %v8815_v46  ;;  %v1483_v52 = vpack.c.bf16 %v10719_v50, %v10717_v48  ;;  %v1357_v53 = vpop.f32.mrb[63].mxu1  ;;  %v8857_v46 = vld [vmem:[#allocation7 + $0x2f0] ss:$8 sps:$4 sm:$0xff]   ;;  %v8874_v50 = vld [vmem:[#allocation7 + $0x344] ss:$8 sps:$4 sm:$0xff]  }
 0x35e   : > { %2492 = vmatprep.subr.bf16.mxu0 %v8820_v47  ;;  %v8862_v47 = vld [vmem:[#allocation7 + $0x304] ss:$8 sps:$4 sm:$0xff]   ;;  %v8869_v48 = vld [vmem:[#allocation7 + $0x330] ss:$8 sps:$4 sm:$0xff]  }
 0x360   : > { %2468 = vmatmul.mubr.bf16.gmra.mrb[36].mxu0 %v1478_v4 }
 0x361   : > { %2493 = vmatpush1.bf16.msra.mxu0 %v8818_v51  ;;  %2477 = vmatprep.mubr.bf16.mxu0 %v1482_v43 }
 0x362   : > { %2494 = vmatprep.subr.bf16.mxu0 %v8823_v54  ;;  %v10726_v40 = vpop.f32.mrb[64].mxu1  ;;  %v8860_v54 = vld [vmem:[#allocation7 + $0x300] ss:$8 sps:$4 sm:$0xff]  }
 0x363   : > { %v1362_v56 = vpop.f32.mrb[65].mxu1 }
 0x364   : > { %v10728_v57 = vpop.f32.mrb[66].mxu1  ;;  %v8865_v56 = vld [vmem:[#allocation7 + $0x314] ss:$8 sps:$4 sm:$0xff]  }
 0x365   : > { %2495 = vmatpush1.bf16.msra.mxu0 %v8821_v55  ;;  %v1484_v59 = vpack.c.bf16 %v10728_v57, %v10726_v40  ;;  %v1365_v60 = vpop.f32.mrb[67].mxu1  ;;  %v8875_v40 = vld [vmem:[#allocation7 + $0x350] ss:$8 sps:$4 sm:$0xff]   ;;  %v8880_v57 = vld [vmem:[#allocation7 + $0x364] ss:$8 sps:$4 sm:$0xff]  }
 0x366   : > { %2496 = vmatprep.subr.bf16.mxu0 %v8826_v16  ;;  %v8868_v60 = vld [vmem:[#allocation7 + $0x324] ss:$8 sps:$4 sm:$0xff]  }
 0x368   : > { %2478 = vmatmul.mubr.bf16.gmra.mrb[40].mxu0 %v1479_v13 }
 0x369   : > { %2497 = vmatpush1.bf16.msra.mxu0 %v8824_v58  ;;  %v8863_v58 = vld [vmem:[#allocation7 + $0x310] ss:$8 sps:$4 sm:$0xff]  }
 0x36a   : > { %2498 = vmatprep.subr.bf16.mxu0 %v8829_v61  ;;  %v10735_v0 = vpop.f32.mrb[68].mxu1 }
 0x36b   : > { %v1370_v1 = vpop.f32.mrb[69].mxu1 }
 0x36c   : > { %v10737_v2 = vpop.f32.mrb[70].mxu1  ;;  %v8866_v1 = vld [vmem:[#allocation7 + $0x320] ss:$8 sps:$4 sm:$0xff]  }
 0x36d   : > { %2499 = vmatpush1.bf16.msra.mxu0 %v8827_v62  ;;  %v1485_v4 = vpack.c.bf16 %v10737_v2, %v10735_v0  ;;  %v1373_v5 = vpop.f32.mrb[71].mxu1  ;;  %v8881_v0 = vld [vmem:[#allocation7 + $0x370] ss:$8 sps:$4 sm:$0xff]   ;;  %v8886_v2 = vld [vmem:[#allocation7 + $0x384] ss:$8 sps:$4 sm:$0xff]  }
 0x36e   : > { %2500 = vmatprep.subr.bf16.mxu0 %v8832_v63 }
 0x371   : > { %2501 = vmatpush1.bf16.msra.mxu0 %v8830_v3 }
 0x372   : > { %2502 = vmatprep.subr.bf16.mxu0 %v8835_v6  ;;  %v1376_v9 = vpop.f32.mrb[72].mxu1  ;;  %v8871_v6 = vld [vmem:[#allocation7 + $0x334] ss:$8 sps:$4 sm:$0xff]  }
 0x373   : > { %v1378_v10 = vpop.f32.mrb[73].mxu1 }
 0x374   : > { %v1379_v11 = vpop.f32.mrb[74].mxu1 }
 0x375   : > { %2503 = vmatpush1.bf16.msra.mxu0 %v8833_v7  ;;  %v1486_v13 = vpack.c.bf16 %v1379_v11, %v1376_v9  ;;  %v1381_v15 = vpop.f32.mrb[75].mxu1  ;;  %v8872_v9 = vld [vmem:[#allocation7 + $0x340] ss:$8 sps:$4 sm:$0xff]  }
 0x376   : > { %2504 = vmatprep.subr.bf16.mxu0 %v8838_v8 }
 0x377   : > { %2520 = vmatprep.mubr.bf16.mxu0 %v1486_v13 }
 0x379   : > { %2505 = vmatpush1.bf16.msra.mxu0 %v8836_v12  ;;  %v8877_v12 = vld [vmem:[#allocation7 + $0x354] ss:$8 sps:$4 sm:$0xff]  }
 0x37a   : > { %2506 = vmatprep.subr.bf16.mxu0 %v8841_v17  ;;  %v1384_v20 = vpop.f32.mrb[76].mxu1  ;;  %v8878_v17 = vld [vmem:[#allocation7 + $0x360] ss:$8 sps:$4 sm:$0xff]  }
 0x37b   : > { %v1386_v21 = vpop.f32.mrb[77].mxu1 }
 0x37c   : > { %v1387_v22 = vpop.f32.mrb[78].mxu1 }
 0x37d   : > { %2507 = vmatpush1.bf16.msra.mxu0 %v8839_v18  ;;  %v1487_v24 = vpack.c.bf16 %v1387_v22, %v1384_v20  ;;  %v1389_v25 = vpop.f32.mrb[79].mxu1  ;;  %v8883_v20 = vld [vmem:[#allocation7 + $0x374] ss:$8 sps:$4 sm:$0xff]  }
 0x37e   : > { %2508 = vmatprep.subr.bf16.mxu0 %v8844_v19 }
 0x381   : > { %2509 = vmatpush1.bf16.msra.mxu0 %v8842_v23  ;;  %v8884_v23 = vld [vmem:[#allocation7 + $0x380] ss:$8 sps:$4 sm:$0xff]  }
 0x382   : > { %2510 = vmatprep.subr.bf16.mxu0 %v8847_v26  ;;  %v1392_v29 = vpop.f32.mrb[80].mxu1  ;;  %v8889_v26 = vld [vmem:[#allocation7 + $0x394] ss:$8 sps:$4 sm:$0xff]  }
 0x383   : > { %v1394_v30 = vpop.f32.mrb[81].mxu1 }
 0x384   : > { %v1395_v31 = vpop.f32.mrb[82].mxu1 }
 0x385   : > { %2511 = vmatpush1.bf16.msra.mxu0 %v8845_v27  ;;  %v1488_v33 = vpack.c.bf16 %v1395_v31, %v1392_v29  ;;  %v1397_v34 = vpop.f32.mrb[83].mxu1  ;;  %v8887_v27 = vld [vmem:[#allocation7 + $0x390] ss:$8 sps:$4 sm:$0xff]  }
 0x386   : > { %2512 = vmatprep.subr.bf16.mxu0 %v8850_v28  ;;  %v8892_v28 = vld [vmem:[#allocation7 + $0x3a4] ss:$8 sps:$4 sm:$0xff]  }
 0x389   : > { %2513 = vmatpush1.bf16.msra.mxu0 %v8848_v32  ;;  %v8890_v32 = vld [vmem:[#allocation7 + $0x3a0] ss:$8 sps:$4 sm:$0xff]  }
 0x38a   : > { %2514 = vmatprep.subr.bf16.mxu0 %v8853_v35  ;;  %v10741_v38 = vpop.f32.mrb[84].mxu1  ;;  %v8895_v35 = vld [vmem:[#allocation7 + $0x3b4] ss:$8 sps:$4 sm:$0xff]  }
 0x38b   : > { %v1402_v39 = vpop.f32.mrb[85].mxu1 }
 0x38c   : > { %v10743_v41 = vpop.f32.mrb[86].mxu1 }
 0x38d   : > { %2515 = vmatpush1.bf16.msra.mxu0 %v8851_v36  ;;  %v1489_v43 = vpack.c.bf16 %v10743_v41, %v10741_v38  ;;  %v1405_v44 = vpop.f32.mrb[87].mxu1  ;;  %v8893_v36 = vld [vmem:[#allocation7 + $0x3b0] ss:$8 sps:$4 sm:$0xff]   ;;  %v8922_v38 = vld [vmem:[#allocation7 + $0x444] ss:$8 sps:$4 sm:$0xff]  }
 0x38e   : > { %2516 = vmatprep.subr.bf16.mxu0 %v8856_v37  ;;  %v8898_v37 = vld [vmem:[#allocation7 + $0x3c4] ss:$8 sps:$4 sm:$0xff]   ;;  %v8920_v41 = vld [vmem:[#allocation7 + $0x440] ss:$8 sps:$4 sm:$0xff]  }
 0x391   : > { %2517 = vmatpush1.bf16.msra.mxu0 %v8854_v42 }
 0x392   : > { %2518 = vmatprep.subr.bf16.mxu0 %v8859_v45  ;;  %v10747_v49 = vpop.f32.mrb[88].mxu1  ;;  %v8896_v45 = vld [vmem:[#allocation7 + $0x3c0] ss:$8 sps:$4 sm:$0xff]  }
 0x393   : > { %v1410_v51 = vpop.f32.mrb[89].mxu1 }
 0x394   : > { %v10749_v53 = vpop.f32.mrb[90].mxu1  ;;  %v8901_v51 = vld [vmem:[#allocation7 + $0x3d4] ss:$8 sps:$4 sm:$0xff]  }
 0x395   : > { %2519 = vmatpush1.bf16.msra.mxu0 %v8857_v46  ;;  %v1490_v55 = vpack.c.bf16 %v10749_v53, %v10747_v49  ;;  %v1413_v16 = vpop.f32.mrb[91].mxu1  ;;  %v8928_v49 = vld [vmem:[#allocation7 + $0x464] ss:$8 sps:$4 sm:$0xff]   ;;  %v8926_v53 = vld [vmem:[#allocation7 + $0x460] ss:$8 sps:$4 sm:$0xff]  }
 0x396   : > { %2551 = vmatprep.subr.bf16.mxu0 %v8862_v47  ;;  %v8904_v16 = vld [vmem:[#allocation7 + $0x3e4] ss:$8 sps:$4 sm:$0xff]  }
 0x398   : > { %2521 = vmatmul.mubr.bf16.vlgmr.msra.gmra.mrb[32].mxu0 %v1483_v52 }
 0x399   : > { %2552 = vmatpush1.bf16.msra.mxu0 %v8860_v54  ;;  %2530 = vmatprep.mubr.bf16.mxu0 %v1487_v24  ;;  %v8899_v54 = vld [vmem:[#allocation7 + $0x3d0] ss:$8 sps:$4 sm:$0xff]  }
 0x39a   : > { %2553 = vmatprep.subr.bf16.mxu0 %v8865_v56  ;;  %v10756_v61 = vpop.f32.mrb[92].mxu1 }
 0x39b   : > { %v1418_v62 = vpop.f32.mrb[93].mxu1 }
 0x39c   : > { %v10758_v63 = vpop.f32.mrb[94].mxu1  ;;  %v8902_v62 = vld [vmem:[#allocation7 + $0x3e0] ss:$8 sps:$4 sm:$0xff]  }
 0x39d   : > { %2554 = vmatpush1.bf16.msra.mxu0 %v8863_v58  ;;  %v1491_v3 = vpack.c.bf16 %v10758_v63, %v10756_v61  ;;  %v1421_v5 = vpop.f32.mrb[95].mxu1  ;;  %v8938_v61 = vld [vmem:[#allocation11 + $0x8] ss:$16 sps:$4 sm:$0xff]   ;;  %v8940_v63 = vld [vmem:[#allocation11 + $0xc] ss:$16 sps:$4 sm:$0xff]  }
 0x39e   : > { %2555 = vmatprep.subr.bf16.mxu0 %v8868_v60 }
 0x3a0   : > { %2531 = vmatmul.mubr.bf16.gmra.mrb[36].mxu0 %v1484_v59 }
 0x3a1   : > { %2556 = vmatpush1.bf16.msra.mxu0 %v8866_v1  ;;  %2540 = vmatprep.mubr.bf16.mxu0 %v1488_v33 }
 0x3a2   : > { %2557 = vmatprep.subr.bf16.mxu0 %v8871_v6  ;;  %v1424_v52 = vpop.f32.mrb[96].mxu1  ;;  %v8907_v6 = vld [vmem:[#allocation7 + $0x3f4] ss:$8 sps:$4 sm:$0xff]  }
 0x3a3   : > { %v1426_v7 = vpop.f32.mrb[97].mxu1 }
 0x3a4   : > { %v1427_v8 = vpop.f32.mrb[98].mxu1  ;;  %v8913_v7 = vld [vmem:[#allocation7 + $0x414] ss:$8 sps:$4 sm:$0xff]  }
 0x3a5   : > { %2558 = vmatpush1.bf16.msra.mxu0 %v8869_v48  ;;  %v1492_v10 = vpack.c.bf16 %v1427_v8, %v1424_v52  ;;  %v1429_v11 = vpop.f32.mrb[99].mxu1  ;;  %v8905_v48 = vld [vmem:[#allocation7 + $0x3f0] ss:$8 sps:$4 sm:$0xff]   ;;  %v8908_v52 = vld [vmem:[#allocation7 + $0x400] ss:$8 sps:$4 sm:$0xff]  }
 0x3a6   : > { %2559 = vmatprep.subr.bf16.mxu0 %v8874_v50  ;;  %v8910_v50 = vld [vmem:[#allocation7 + $0x404] ss:$8 sps:$4 sm:$0xff]   ;;  %v8911_v8 = vld [vmem:[#allocation7 + $0x410] ss:$8 sps:$4 sm:$0xff]   ;;  %v8919_v11 = vld [vmem:[#allocation7 + $0x434] ss:$8 sps:$4 sm:$0xff]  }
 0x3a8   : > { %2541 = vmatmul.mubr.bf16.gmra.mrb[40].mxu0 %v1485_v4 }
 0x3a9   : > { %2560 = vmatpush1.bf16.msra.mxu0 %v8872_v9  ;;  %2583 = vmatprep.mubr.bf16.mxu0 %v1492_v10  ;;  %v8916_v9 = vld [vmem:[#allocation7 + $0x424] ss:$8 sps:$4 sm:$0xff]   ;;  %v8914_v10 = vld [vmem:[#allocation7 + $0x420] ss:$8 sps:$4 sm:$0xff]  }
 0x3aa   : > { %2561 = vmatprep.subr.bf16.mxu0 %v8877_v12  ;;  %v10768_v59 = vpop.f32.mrb[100].mxu1  ;;  %v8917_v12 = vld [vmem:[#allocation7 + $0x430] ss:$8 sps:$4 sm:$0xff]  }
 0x3ab   : > { %v1434_v13 = vpop.f32.mrb[101].mxu1 }
 0x3ac   : > { %v10770_v15 = vpop.f32.mrb[102].mxu1  ;;  %v8952_v13 = vld [vmem:[#allocation11 + $0x4c] ss:$16 sps:$4 sm:$0xff]  }
 0x3ad   : > { %2562 = vmatpush1.bf16.msra.mxu0 %v8875_v40  ;;  %v1493_v18 = vpack.c.bf16 %v10770_v15, %v10768_v59  ;;  %v1437_v19 = vpop.f32.mrb[103].mxu1  ;;  %v8923_v40 = vld [vmem:[#allocation7 + $0x450] ss:$8 sps:$4 sm:$0xff]   ;;  %v8944_v59 = vld [vmem:[#allocation11 + $0x28] ss:$16 sps:$4 sm:$0xff]  }
 0x3ae   : > { %2563 = vmatprep.subr.bf16.mxu0 %v8880_v57  ;;  %v8929_v57 = vld [vmem:[#allocation7 + $0x470] ss:$8 sps:$4 sm:$0xff]   ;;  %v8950_v15 = vld [vmem:[#allocation11 + $0x48] ss:$16 sps:$4 sm:$0xff]  }
 0x3af   : > { %v8964_v19 = vld [vmem:[#allocation11 + $0x8c] ss:$16 sps:$4 sm:$0xff]  }
 0x3b1   : > { %2564 = vmatpush1.bf16.msra.mxu0 %v8878_v17  ;;  %v8958_v17 = vld [vmem:[#allocation11 + $0x6c] ss:$16 sps:$4 sm:$0xff]  }
 0x3b2   : > { %2565 = vmatprep.subr.bf16.mxu0 %v8883_v20  ;;  %v10774_v4 = vpop.f32.mrb[104].mxu1  ;;  %v8962_v20 = vld [vmem:[#allocation11 + $0x88] ss:$16 sps:$4 sm:$0xff]  }
 0x3b3   : > { %v1442_v21 = vpop.f32.mrb[105].mxu1 }
 0x3b4   : > { %v10776_v22 = vpop.f32.mrb[106].mxu1  ;;  %v8975_v21 = vld [vmem:[#allocation11 + $0xc8] ss:$16 sps:$4 sm:$0xff]  }
 0x3b5   : > { %2566 = vmatpush1.bf16.msra.mxu0 %v8881_v0  ;;  %v1494_v24 = vpack.c.bf16 %v10776_v22, %v10774_v4  ;;  %v1445_v25 = vpop.f32.mrb[107].mxu1  ;;  %v8971_v0 = vld [vmem:[#allocation11 + $0xac] ss:$16 sps:$4 sm:$0xff]  }
 0x3b6   : > { %2567 = vmatprep.subr.bf16.mxu0 %v8886_v2  ;;  %v8969_v2 = vld [vmem:[#allocation11 + $0xa8] ss:$16 sps:$4 sm:$0xff]   ;;  %v8977_v4 = vld [vmem:[#allocation11 + $0xcc] ss:$16 sps:$4 sm:$0xff]  }
 0x3b7   : > { %v8984_v22 = vld [vmem:[#allocation11 + $0xec] ss:$16 sps:$4 sm:$0xff]   ;;  %v8988_v25 = vld [vmem:[#allocation11 + $0x108] ss:$16 sps:$4 sm:$0xff]  }
 0x3b9   : > { %2568 = vmatpush1.bf16.msra.mxu0 %v8884_v23  ;;  %v8982_v23 = vld [vmem:[#allocation11 + $0xe8] ss:$16 sps:$4 sm:$0xff]  }
 0x3ba   : > { %2569 = vmatprep.subr.bf16.mxu0 %v8889_v26  ;;  %v10780_v29 = vpop.f32.mrb[108].mxu1  ;;  %v8997_v26 = vld [vmem:[#allocation11 + $0x12c] ss:$16 sps:$4 sm:$0xff]  }
 0x3bb   : > { %v1450_v30 = vpop.f32.mrb[109].mxu1 }
 0x3bc   : > { %v10782_v31 = vpop.f32.mrb[110].mxu1  ;;  %v9010_v30 = vld [vmem:[#allocation11 + $0x16c] ss:$16 sps:$4 sm:$0xff]  }
 0x3bd   : > { %2570 = vmatpush1.bf16.msra.mxu0 %v8887_v27  ;;  %v1495_v33 = vpack.c.bf16 %v10782_v31, %v10780_v29  ;;  %v1453_v34 = vpop.f32.mrb[111].mxu1  ;;  %v8995_v27 = vld [vmem:[#allocation11 + $0x128] ss:$16 sps:$4 sm:$0xff]  }
 0x3be   : > { %2571 = vmatprep.subr.bf16.mxu0 %v8892_v28  ;;  %v9003_v28 = vld [vmem:[#allocation11 + $0x14c] ss:$16 sps:$4 sm:$0xff]   ;;  %v9001_v29 = vld [vmem:[#allocation11 + $0x148] ss:$16 sps:$4 sm:$0xff]  }
 0x3bf   : > { %v9008_v31 = vld [vmem:[#allocation11 + $0x168] ss:$16 sps:$4 sm:$0xff]   ;;  %v9023_v34 = vld [vmem:[#allocation11 + $0x1ac] ss:$16 sps:$4 sm:$0xff]  }
 0x3c1   : > { %2572 = vmatpush1.bf16.msra.mxu0 %v8890_v32  ;;  %v9016_v32 = vld [vmem:[#allocation11 + $0x18c] ss:$16 sps:$4 sm:$0xff]  }
 0x3c2   : > { %2573 = vmatprep.subr.bf16.mxu0 %v8895_v35  ;;  %v10786_v39 = vpop.f32.mrb[112].mxu1  ;;  %v9021_v35 = vld [vmem:[#allocation11 + $0x1a8] ss:$16 sps:$4 sm:$0xff]  }
 0x3c3   : > { %v1458_v42 = vpop.f32.mrb[113].mxu1 }
 0x3c4   : > { %v10788_v44 = vpop.f32.mrb[114].mxu1 }
 0x3c5   : > { %2574 = vmatpush1.bf16.msra.mxu0 %v8893_v36  ;;  %v1496_v46 = vpack.c.bf16 %v10788_v44, %v10786_v39  ;;  %v1461_v47 = vpop.f32.mrb[115].mxu1  ;;  %v9029_v36 = vld [vmem:[#allocation11 + $0x1cc] ss:$16 sps:$4 sm:$0xff]   ;;  %v2679_v39 = vlaneseq }
 0x3c6   : > { %2575 = vmatprep.subr.bf16.mxu0 %v8898_v37  ;;  %v9027_v37 = vld [vmem:[#allocation11 + $0x1c8] ss:$16 sps:$4 sm:$0xff]   ;;  %v2701_v47 = vld [vmem:[#allocation10] sm:$0x3] }
 0x3c7   : > { %v10813_v42 = vshrl.u32 %v2679_v39, 7 }
 0x3c9   : > { %2576 = vmatpush1.bf16.msra.mxu0 %v8896_v45  ;;  %v10816_v44 = vsub.s32 0, %v10813_v42  ;;  %v2677_v45 = vld [vmem:[#allocation8] sm:$0x3] }
 0x3ca   : > { %2577 = vmatprep.subr.bf16.mxu0 %v8901_v51  ;;  %v1464_v56 = vpop.f32.mrb[116].mxu1 }
 0x3cb   : > { %v1466_v58 = vpop.f32.mrb[117].mxu1  ;;  %v2682_v51 = vrot.slane %v2677_v45, %v10816_v44 }
 0x3cc   : > { %v1467_v60 = vpop.f32.mrb[118].mxu1 }
 0x3cd   : > { %2578 = vmatpush1.bf16.msra.mxu0 %v8899_v54  ;;  %v1497_v1 = vpack.c.bf16 %v1467_v60, %v1464_v56  ;;  %v1469_v5 = vpop.f32.mrb[119].mxu1 }
 0x3ce   : > { %2579 = vmatprep.subr.bf16.mxu0 %v8904_v16  ;;  %v2706_v16 = vrot.slane %v2701_v47, %v10816_v44 }
 0x3d1   : > { %2580 = vmatpush1.bf16.msra.mxu0 %v8902_v62 }
 0x3d2   : > { %2581 = vmatprep.subr.bf16.mxu0 %v8907_v6 }
 0x3d5   : > { %2582 = vmatpush1.bf16.msra.mxu0 %v8905_v48 }
 0x3d6   : > { %2614 = vmatprep.subr.bf16.mxu0 %v8910_v50 }
 0x3d8   : > { %2584 = vmatmul.mubr.bf16.vlgmr.msra.gmra.mrb[32].mxu0 %v1489_v43  ;;  %v8925_v43 = vld [vmem:[#allocation7 + $0x454] ss:$8 sps:$4 sm:$0xff]  }
 0x3d9   : > { %2615 = vmatpush1.bf16.msra.mxu0 %v8908_v52  ;;  %2593 = vmatprep.mubr.bf16.mxu0 %v1493_v18  ;;  %v8956_v18 = vld [vmem:[#allocation11 + $0x68] ss:$16 sps:$4 sm:$0xff]  }
 0x3da   : > { %2616 = vmatprep.subr.bf16.mxu0 %v8913_v7 }
 0x3dd   : > { %2617 = vmatpush1.bf16.msra.mxu0 %v8911_v8 }
 0x3de   : > { %2618 = vmatprep.subr.bf16.mxu0 %v8916_v9 }
 0x3e0   : > { %2594 = vmatmul.mubr.bf16.gmra.mrb[36].mxu0 %v1490_v55  ;;  %v8931_v55 = vld [vmem:[#allocation7 + $0x474] ss:$8 sps:$4 sm:$0xff]  }
 0x3e1   : > { %2619 = vmatpush1.bf16.msra.mxu0 %v8914_v10  ;;  %2603 = vmatprep.mubr.bf16.mxu0 %v1494_v24  ;;  %v8990_v24 = vld [vmem:[#allocation11 + $0x10c] ss:$16 sps:$4 sm:$0xff]  }
 0x3e2   : > { %2620 = vmatprep.subr.bf16.mxu0 %v8919_v11 }
 0x3e5   : > { %2621 = vmatpush1.bf16.msra.mxu0 %v8917_v12 }
 0x3e6   : > { %2622 = vmatprep.subr.bf16.mxu0 %v8922_v38 }
 0x3e8   : > { %2604 = vmatmul.mubr.bf16.gmra.mrb[40].mxu0 %v1491_v3  ;;  %v8946_v3 = vld [vmem:[#allocation11 + $0x2c] ss:$16 sps:$4 sm:$0xff]  }
 0x3e9   : > { %2623 = vmatpush1.bf16.msra.mxu0 %v8920_v41  ;;  %2646 = vmatprep.mubr.bf16.mxu0 %v10108_v14 }
 0x3ea   : > { %2624 = vmatprep.subr.bf16.mxu0 %v8925_v43 }
 0x3ed   : > { %2625 = vmatpush1.bf16.msra.mxu0 %v8923_v40 }
 0x3ee   : > { %2626 = vmatprep.subr.bf16.mxu0 %v8928_v49 }
 0x3f1   : > { %2627 = vmatpush1.bf16.msra.mxu0 %v8926_v53 }
 0x3f2   : > { %2628 = vmatprep.subr.bf16.mxu0 %v8931_v55 }
 0x3f5   : > { %2629 = vmatpush1.bf16.msra.mxu0 %v8929_v57 }
 0x3f6   : > { %6817 = vmatprep.subr.bf16.mxu0 %v8940_v63 }
 0x3f8   : > { %2647 = vmatmul.mubr.bf16.vlgmr.msra.gmra.mrb[32].mxu0 %v1495_v33  ;;  %v9014_v33 = vld [vmem:[#allocation11 + $0x188] ss:$16 sps:$4 sm:$0xff]  }
 0x3f9   : > { %2656 = vmatprep.mubr.bf16.mxu0 %v10108_v14  ;;  %6818 = vmatpush1.bf16.msra.mxu0 %v8938_v61 }
 0x3fa   : > { %6819 = vmatprep.subr.bf16.mxu0 %v8946_v3 }
 0x3fd   : > { %6820 = vmatpush1.bf16.msra.mxu0 %v8944_v59 }
 0x3fe   : > { %6821 = vmatprep.subr.bf16.mxu0 %v8952_v13 }
 0x400   : > { %2657 = vmatmul.mubr.bf16.gmra.mrb[36].mxu0 %v1496_v46  ;;  %v10819_v46 = vsub.s32 1, %v10813_v42 }
 0x401   : > { %2666 = vmatprep.mubr.bf16.mxu0 %v10108_v14  ;;  %6822 = vmatpush1.bf16.msra.mxu0 %v8950_v15 }
 0x402   : > { %6823 = vmatprep.subr.bf16.mxu0 %v8958_v17  ;;  %v2686_v54 = vrot.slane %v2677_v45, %v10819_v46  ;;  %v2710_v58 = vrot.slane %v2701_v47, %v10819_v46  ;;  %v8937_v45 = vld [vmem:[#allocation11 + $0x4] ss:$16 sps:$4 sm:$0xff]  }
 0x403   : > { %v8932_v47 = vld [vmem:[%s10950_s7] sm:$0xff]  }
 0x405   : > { %6824 = vmatpush1.bf16.msra.mxu0 %v8956_v18 }
 0x406   : > { %6825 = vmatprep.subr.bf16.mxu0 %v8964_v19 }
 0x408   : > { %2667 = vmatmul.mubr.bf16.gmra.mrb[40].mxu0 %v1497_v1 }
 0x409   : > { %6826 = vmatpush1.bf16.msra.mxu0 %v8962_v20 }
 0x40a   : > { %6827 = vmatprep.subr.bf16.mxu0 %v8971_v0 }
 0x40d   : > { %6828 = vmatpush1.bf16.msra.mxu0 %v8969_v2 }
 0x40e   : > { %6829 = vmatprep.subr.bf16.mxu0 %v8977_v4 }
 0x411   : > { %6830 = vmatpush1.bf16.msra.mxu0 %v8975_v21 }
 0x412   : > { %6831 = vmatprep.subr.bf16.mxu0 %v8984_v22 }
 0x415   : > { %6832 = vmatpush1.bf16.msra.mxu0 %v8982_v23 }
 0x416   : > { %6833 = vmatprep.subr.bf16.mxu0 %v8990_v24 }
 0x419   : > { %6834 = vmatpush1.bf16.msra.mxu0 %v8988_v25 }
 0x41a   : > { %6835 = vmatprep.subr.bf16.mxu0 %v8997_v26 }
 0x41d   : > { %6836 = vmatpush1.bf16.msra.mxu0 %v8995_v27 }
 0x41e   : > { %6837 = vmatprep.subr.bf16.mxu0 %v9003_v28 }
 0x421   : > { %6838 = vmatpush1.bf16.msra.mxu0 %v9001_v29 }
 0x422   : > { %6839 = vmatprep.subr.bf16.mxu0 %v9010_v30 }
 0x425   : > { %6840 = vmatpush1.bf16.msra.mxu0 %v9008_v31 }
 0x426   : > { %6841 = vmatprep.subr.bf16.mxu0 %v9016_v32 }
 0x429   : > { %6842 = vmatpush1.bf16.msra.mxu0 %v9014_v33 }
 0x42a   : > { %6843 = vmatprep.subr.bf16.mxu0 %v9023_v34 }
 0x42d   : > { %6844 = vmatpush1.bf16.msra.mxu0 %v9021_v35 }
 0x42e   : > { %6845 = vmatprep.subr.bf16.mxu0 %v9029_v36 }
 0x431   : > { %6846 = vmatpush1.bf16.msra.mxu0 %v9027_v37 }
 0x4cb   : > { %v2648_v56 = vpop.f32.mrb[32].mxu0 }
 0x4cc   : > { %v2689_v60 = vmul.f32 %v2682_v51, %v2648_v56  ;;  %v2650_v62 = vpop.f32.mrb[33].mxu0  ;;  %v8949_v56 = vld [vmem:[#allocation11 + $0x44] ss:$16 sps:$4 sm:$0xff]  }
 0x4cd   : > { %v2690_v1 = vmul.f32 %v2686_v54, %v2650_v62  ;;  %v2652_v5 = vpop.f32.mrb[34].mxu0  ;;  %v8955_v62 = vld [vmem:[#allocation11 + $0x64] ss:$16 sps:$4 sm:$0xff]  }
 0x4ce   : > { %v2713_v6 = vadd.f32 %v2706_v16, %v2689_v60  ;;  %v2691_v48 = vmul.f32 %v2682_v51, %v2652_v5  ;;  %v2654_v50 = vpop.f32.mrb[35].mxu0  ;;  %v8947_v60 = vld [vmem:[#allocation11 + $0x40] ss:$16 sps:$4 sm:$0xff]   ;;  %v8961_v5 = vld [vmem:[#allocation11 + $0x84] ss:$16 sps:$4 sm:$0xff]  }
 0x4cf   : > { %v2714_v52 = vadd.f32 %v2710_v58, %v2690_v1  ;;  %v2692_v7 = vmul.f32 %v2686_v54, %v2654_v50  ;;  %v8953_v1 = vld [vmem:[#allocation11 + $0x60] ss:$16 sps:$4 sm:$0xff]   ;;  %v8968_v50 = vld [vmem:[#allocation11 + $0xa4] ss:$16 sps:$4 sm:$0xff]  }
 0x4d0   : > { %v2715_v8 = vadd.f32 %v2706_v16, %v2691_v48  ;;  %v2725_v10 = vmax.f32 %v2713_v6, 0.0  ;;  %v8934_v6 = vld [vmem:[%s10950_s7 + $0x10] sm:$0xff]  }
 0x4d1   : > { %v2716_v9 = vadd.f32 %v2710_v58, %v2692_v7  ;;  %v2726_v12 = vmax.f32 %v2714_v52, 0.0  ;;  %v8959_v48 = vld [vmem:[#allocation11 + $0x80] ss:$16 sps:$4 sm:$0xff]   ;;  %v8974_v7 = vld [vmem:[#allocation11 + $0xc4] ss:$16 sps:$4 sm:$0xff]  }
 0x4d2   : > { %v2727_v11 = vmax.f32 %v2715_v8, 0.0  ;;  %v8966_v52 = vld [vmem:[#allocation11 + $0xa0] ss:$16 sps:$4 sm:$0xff]  }
 0x4d3   : > { %v2728_v38 = vmax.f32 %v2716_v9, 0.0  ;;  %v2658_v41 = vpop.f32.mrb[36].mxu0  ;;  %v8965_v8 = vld [vmem:[%s10950_s7 + $0x18] sm:$0xff]  }
 0x4d4   : > { %v2737_v43 = vpack.c.bf16 %v2727_v11, %v2725_v10  ;;  %v2693_v40 = vmul.f32 %v2682_v51, %v2658_v41  ;;  %v2660_v49 = vpop.f32.mrb[37].mxu0  ;;  %v8972_v9 = vld [vmem:[#allocation11 + $0xc0] ss:$16 sps:$4 sm:$0xff]   ;;  %v8981_v10 = vld [vmem:[#allocation11 + $0xe4] ss:$16 sps:$4 sm:$0xff]  }
 0x4d5   : > { %v2694_v53 = vmul.f32 %v2686_v54, %v2660_v49  ;;  %v2662_v55 = vpop.f32.mrb[38].mxu0  ;;  %v2738_v57 = vpack.c.bf16 %v2728_v38, %v2726_v12  ;;  %v8979_v11 = vld [vmem:[#allocation11 + $0xe0] ss:$16 sps:$4 sm:$0xff]   ;;  %v8987_v12 = vld [vmem:[#allocation11 + $0x104] ss:$16 sps:$4 sm:$0xff]  }
 0x4d6   : > { %v2717_v61 = vadd.f32 %v2706_v16, %v2693_v40  ;;  %v2695_v63 = vmul.f32 %v2682_v51, %v2662_v55  ;;  %v2664_v3 = vpop.f32.mrb[39].mxu0  ;;  %v8978_v38 = vld [vmem:[%s10950_s7 + $0x20] sm:$0xff]  }
 0x4d7   : > { %v2718_v59 = vadd.f32 %v2710_v58, %v2694_v53  ;;  %v2696_v13 = vmul.f32 %v2686_v54, %v2664_v3  ;;  %2833 = vmatprep.subr.bf16.mxu1 %v2738_v57  ;;  %v8985_v41 = vld [vmem:[#allocation11 + $0x100] ss:$16 sps:$4 sm:$0xff]   ;;  %v9000_v49 = vld [vmem:[#allocation11 + $0x144] ss:$16 sps:$4 sm:$0xff]  }
 0x4d8   : > { %v2719_v15 = vadd.f32 %v2706_v16, %v2695_v63  ;;  %2834 = vmatpush1.bf16.msra.mxu1 %v2737_v43  ;;  %v2729_v18 = vmax.f32 %v2717_v61, 0.0  ;;  %v8994_v43 = vld [vmem:[#allocation11 + $0x124] ss:$16 sps:$4 sm:$0xff]   ;;  %v8992_v40 = vld [vmem:[#allocation11 + $0x120] ss:$16 sps:$4 sm:$0xff]  }
 0x4d9   : > { %v2720_v17 = vadd.f32 %v2710_v58, %v2696_v13  ;;  %v2730_v20 = vmax.f32 %v2718_v59, 0.0  ;;  %v8991_v53 = vld [vmem:[%s10950_s7 + $0x28] sm:$0xff]   ;;  %v9007_v57 = vld [vmem:[#allocation11 + $0x164] ss:$16 sps:$4 sm:$0xff]  }
 0x4da   : > { %v2731_v19 = vmax.f32 %v2719_v15, 0.0  ;;  %v8998_v55 = vld [vmem:[#allocation11 + $0x140] ss:$16 sps:$4 sm:$0xff]   ;;  %v9013_v63 = vld [vmem:[#allocation11 + $0x184] ss:$16 sps:$4 sm:$0xff]  }
 0x4db   : > { %v2732_v0 = vmax.f32 %v2720_v17, 0.0  ;;  %v2668_v2 = vpop.f32.mrb[40].mxu0  ;;  %v9005_v61 = vld [vmem:[#allocation11 + $0x160] ss:$16 sps:$4 sm:$0xff]   ;;  %v9020_v13 = vld [vmem:[#allocation11 + $0x1a4] ss:$16 sps:$4 sm:$0xff]  }
 0x4dc   : > { %v2739_v4 = vpack.c.bf16 %v2731_v19, %v2729_v18  ;;  %v2697_v21 = vmul.f32 %v2682_v51, %v2668_v2  ;;  %v2670_v22 = vpop.f32.mrb[41].mxu0  ;;  %v9004_v3 = vld [vmem:[%s10950_s7 + $0x30] sm:$0xff]   ;;  %v9017_v18 = vld [vmem:[%s10950_s7 + $0x38] sm:$0xff]  }
 0x4dd   : > { %v2698_v23 = vmul.f32 %v2686_v54, %v2670_v22  ;;  %v2672_v24 = vpop.f32.mrb[42].mxu0  ;;  %v2740_v25 = vpack.c.bf16 %v2732_v0, %v2730_v20  ;;  %v9011_v59 = vld [vmem:[#allocation11 + $0x180] ss:$16 sps:$4 sm:$0xff]   ;;  %v9026_v17 = vld [vmem:[#allocation11 + $0x1c4] ss:$16 sps:$4 sm:$0xff]  }
 0x4de   : > { %v2721_v26 = vadd.f32 %v2706_v16, %v2697_v21  ;;  %v2699_v27 = vmul.f32 %v2682_v51, %v2672_v24  ;;  %v2674_v28 = vpop.f32.mrb[43].mxu0  ;;  %v8935_v51 = vld [vmem:[#allocation11] ss:$16 sps:$4 sm:$0xff]   ;;  %v9033_v0 = vld [vmem:[#allocation11 + $0x1e4] ss:$16 sps:$4 sm:$0xff]  }
 0x4df   : > { %v2722_v29 = vadd.f32 %v2710_v58, %v2698_v23  ;;  %v2700_v30 = vmul.f32 %v2686_v54, %v2674_v28  ;;  %2835 = vmatprep.subr.bf16.mxu1 %v2740_v25  ;;  %v8943_v54 = vld [vmem:[#allocation11 + $0x24] ss:$16 sps:$4 sm:$0xff]   ;;  %v9018_v15 = vld [vmem:[#allocation11 + $0x1a0] ss:$16 sps:$4 sm:$0xff]   ;;  %v9036_v2 = vld [vmem:[#allocation11 + $0x1ec] ss:$16 sps:$4 sm:$0xff]  }
 0x4e0   : > { %v2723_v31 = vadd.f32 %v2706_v16, %v2699_v27  ;;  %2836 = vmatpush1.bf16.msra.mxu1 %v2739_v4  ;;  %v2733_v33 = vmax.f32 %v2721_v26, 0.0  ;;  %v8941_v16 = vld [vmem:[#allocation11 + $0x20] ss:$16 sps:$4 sm:$0xff]   ;;  %v9034_v21 = vld [vmem:[#allocation11 + $0x1e8] ss:$16 sps:$4 sm:$0xff]   ;;  %6847 = vmatprep.subr.bf16.mxu0 %v9036_v2 }
 0x4e1   : > { %v2724_v32 = vadd.f32 %v2710_v58, %v2700_v30  ;;  %v2734_v35 = vmax.f32 %v2722_v29, 0.0  ;;  %v8933_v58 = vld [vmem:[%s10950_s7 + $0x8] sm:$0xff]   ;;  %v9030_v20 = vld [vmem:[%s10950_s7 + $0x40] sm:$0xff]   ;;  %6848 = vmatpush1.bf16.msra.mxu0 %v9034_v21 }
 0x4e2   : > { %v2735_v34 = vmax.f32 %v2723_v31, 0.0  ;;  %v9024_v19 = vld [vmem:[#allocation11 + $0x1c0] ss:$16 sps:$4 sm:$0xff]   ;;  %v9039_v22 = vld [vmem:[#allocation11 + $0x204] ss:$16 sps:$4 sm:$0xff]  }
 0x4e3   : > { %v2736_v36 = vmax.f32 %v2724_v32, 0.0  ;;  %v9031_v4 = vld [vmem:[#allocation11 + $0x1e0] ss:$16 sps:$4 sm:$0xff]   ;;  %v9042_v23 = vld [vmem:[#allocation11 + $0x20c] ss:$16 sps:$4 sm:$0xff]  }
 0x4e4   : > { %v2741_v37 = vpack.c.bf16 %v2735_v34, %v2733_v33  ;;  %6860 = vmatprep.subr.bf16.mxu0 %v9042_v23  ;;  %v9037_v29 = vld [vmem:[#allocation11 + $0x200] ss:$16 sps:$4 sm:$0xff]   ;;  %v9040_v30 = vld [vmem:[#allocation11 + $0x208] ss:$16 sps:$4 sm:$0xff]   ;;  %v9045_v31 = vld [vmem:[#allocation11 + $0x224] ss:$16 sps:$4 sm:$0xff]  }
 0x4e5   : > { %v2742_v39 = vpack.c.bf16 %v2736_v36, %v2734_v35  ;;  %v9048_v32 = vld [vmem:[#allocation11 + $0x22c] ss:$16 sps:$4 sm:$0xff]   ;;  %v9043_v33 = vld [vmem:[#allocation11 + $0x220] ss:$16 sps:$4 sm:$0xff]   ;;  %v9046_v34 = vld [vmem:[#allocation11 + $0x228] ss:$16 sps:$4 sm:$0xff]  }
 0x4e6   : > { %v9051_v36 = vld [vmem:[#allocation11 + $0x244] ss:$16 sps:$4 sm:$0xff]   ;;  %v9102_v21 = vld [vmem:[#allocation11 + $0x34c] ss:$16 sps:$4 sm:$0xff]  }
 0x4e7   : > { %2837 = vmatprep.subr.bf16.mxu1 %v2742_v39 }
 0x4e8   : > { %2838 = vmatpush1.bf16.msra.mxu1 %v2741_v37  ;;  %v9054_v37 = vld [vmem:[#allocation11 + $0x24c] ss:$16 sps:$4 sm:$0xff]  }
 0x4e9   : > { %6430 = vmatprep.subr.bf16.mxu1 %v8937_v45 }
 0x4eb   : > { %7751 = vmatmul.mubr.msk.bf16.vlgmr.msra.gmra.mrb[120].mxu1 %vm1140_vm2, %v8932_v47 }
 0x4ec   : > { %2875 = vmatprep.mubr.bf16.mxu1 %v10108_v14  ;;  %6431 = vmatpush1.bf16.msra.mxu1 %v8935_v51 }
 0x4ed   : > { %6432 = vmatprep.subr.bf16.mxu1 %v8943_v54  ;;  %v9049_v54 = vld [vmem:[#allocation11 + $0x240] ss:$16 sps:$4 sm:$0xff]  }
 0x4f0   : > { %6433 = vmatpush1.bf16.msra.mxu1 %v8941_v16  ;;  %v9052_v16 = vld [vmem:[#allocation11 + $0x248] ss:$16 sps:$4 sm:$0xff]  }
 0x4f1   : > { %6434 = vmatprep.subr.bf16.mxu1 %v8949_v56 }
 0x4f3   : > { %7752 = vmatmul.mubr.msk.bf16.gmra.mrb[124].mxu1 %vm1140_vm2, %v8933_v58  ;;  %v9057_v58 = vld [vmem:[#allocation11 + $0x264] ss:$16 sps:$4 sm:$0xff]  }
 0x4f4   : > { %2885 = vmatprep.mubr.bf16.mxu1 %v10108_v14  ;;  %6435 = vmatpush1.bf16.msra.mxu1 %v8947_v60  ;;  %v9060_v60 = vld [vmem:[#allocation11 + $0x26c] ss:$16 sps:$4 sm:$0xff]  }
 0x4f5   : > { %6436 = vmatprep.subr.bf16.mxu1 %v8955_v62  ;;  %v9055_v62 = vld [vmem:[#allocation11 + $0x260] ss:$16 sps:$4 sm:$0xff]  }
 0x4f8   : > { %6437 = vmatpush1.bf16.msra.mxu1 %v8953_v1  ;;  %v9058_v1 = vld [vmem:[#allocation11 + $0x268] ss:$16 sps:$4 sm:$0xff]  }
 0x4f9   : > { %6438 = vmatprep.subr.bf16.mxu1 %v8961_v5 }
 0x4fb   : > { %7753 = vmatmul.mubr.msk.bf16.gmra.mrb[128].mxu1 %vm1140_vm2, %v8934_v6  ;;  %v9063_v6 = vld [vmem:[#allocation11 + $0x284] ss:$16 sps:$4 sm:$0xff]  }
 0x4fc   : > { %2895 = vmatprep.mubr.bf16.mxu1 %v10108_v14  ;;  %6439 = vmatpush1.bf16.msra.mxu1 %v8959_v48  ;;  %v9066_v48 = vld [vmem:[#allocation11 + $0x28c] ss:$16 sps:$4 sm:$0xff]  }
 0x4fd   : > { %6440 = vmatprep.subr.bf16.mxu1 %v8968_v50 }
 0x500   : > { %6441 = vmatpush1.bf16.msra.mxu1 %v8966_v52 }
 0x501   : > { %6442 = vmatprep.subr.bf16.mxu1 %v8974_v7 }
 0x503   : > { %7754 = vmatmul.mubr.msk.bf16.gmra.mrb[132].mxu1 %vm1140_vm2, %v8965_v8 }
 0x504   : > { %2905 = vmatprep.mubr.bf16.mxu1 %v10108_v14  ;;  %6443 = vmatpush1.bf16.msra.mxu1 %v8972_v9  ;;  %v9061_v9 = vld [vmem:[#allocation11 + $0x280] ss:$16 sps:$4 sm:$0xff]  }
 0x505   : > { %6444 = vmatprep.subr.bf16.mxu1 %v8981_v10  ;;  %v9064_v10 = vld [vmem:[#allocation11 + $0x288] ss:$16 sps:$4 sm:$0xff]  }
 0x508   : > { %6445 = vmatpush1.bf16.msra.mxu1 %v8979_v11 }
 0x509   : > { %6446 = vmatprep.subr.bf16.mxu1 %v8987_v12  ;;  %v9069_v12 = vld [vmem:[#allocation11 + $0x2a4] ss:$16 sps:$4 sm:$0xff]  }
 0x50b   : > { %7755 = vmatmul.mubr.msk.bf16.gmra.mrb[136].mxu1 %vm1140_vm2, %v8978_v38  ;;  %v9072_v38 = vld [vmem:[#allocation11 + $0x2ac] ss:$16 sps:$4 sm:$0xff]  }
 0x50c   : > { %2915 = vmatprep.mubr.bf16.mxu1 %v10108_v14  ;;  %6447 = vmatpush1.bf16.msra.mxu1 %v8985_v41  ;;  %v9067_v41 = vld [vmem:[#allocation11 + $0x2a0] ss:$16 sps:$4 sm:$0xff]  }
 0x50d   : > { %6448 = vmatprep.subr.bf16.mxu1 %v8994_v43  ;;  %v9070_v43 = vld [vmem:[#allocation11 + $0x2a8] ss:$16 sps:$4 sm:$0xff]  }
 0x510   : > { %6449 = vmatpush1.bf16.msra.mxu1 %v8992_v40  ;;  %v9075_v40 = vld [vmem:[#allocation11 + $0x2c4] ss:$16 sps:$4 sm:$0xff]  }
 0x511   : > { %6450 = vmatprep.subr.bf16.mxu1 %v9000_v49  ;;  %v9078_v49 = vld [vmem:[#allocation11 + $0x2cc] ss:$16 sps:$4 sm:$0xff]  }
 0x513   : > { %7756 = vmatmul.mubr.msk.bf16.gmra.mrb[140].mxu1 %vm1140_vm2, %v8991_v53  ;;  %v9073_v53 = vld [vmem:[#allocation11 + $0x2c0] ss:$16 sps:$4 sm:$0xff]  }
 0x514   : > { %2925 = vmatprep.mubr.bf16.mxu1 %v10108_v14  ;;  %6451 = vmatpush1.bf16.msra.mxu1 %v8998_v55  ;;  %v9076_v55 = vld [vmem:[#allocation11 + $0x2c8] ss:$16 sps:$4 sm:$0xff]  }
 0x515   : > { %6452 = vmatprep.subr.bf16.mxu1 %v9007_v57  ;;  %v9081_v57 = vld [vmem:[#allocation11 + $0x2e4] ss:$16 sps:$4 sm:$0xff]  }
 0x518   : > { %6453 = vmatpush1.bf16.msra.mxu1 %v9005_v61  ;;  %v9084_v61 = vld [vmem:[#allocation11 + $0x2ec] ss:$16 sps:$4 sm:$0xff]  }
 0x519   : > { %6454 = vmatprep.subr.bf16.mxu1 %v9013_v63  ;;  %v9079_v63 = vld [vmem:[#allocation11 + $0x2e0] ss:$16 sps:$4 sm:$0xff]  }
 0x51b   : > { %7757 = vmatmul.mubr.msk.bf16.gmra.mrb[144].mxu1 %vm1140_vm2, %v9004_v3  ;;  %v9082_v3 = vld [vmem:[#allocation11 + $0x2e8] ss:$16 sps:$4 sm:$0xff]  }
 0x51c   : > { %2935 = vmatprep.mubr.bf16.mxu1 %v10108_v14  ;;  %6455 = vmatpush1.bf16.msra.mxu1 %v9011_v59  ;;  %v9087_v59 = vld [vmem:[#allocation11 + $0x304] ss:$16 sps:$4 sm:$0xff]  }
 0x51d   : > { %6456 = vmatprep.subr.bf16.mxu1 %v9020_v13  ;;  %v9090_v13 = vld [vmem:[#allocation11 + $0x30c] ss:$16 sps:$4 sm:$0xff]  }
 0x520   : > { %6457 = vmatpush1.bf16.msra.mxu1 %v9018_v15  ;;  %v9085_v15 = vld [vmem:[#allocation11 + $0x300] ss:$16 sps:$4 sm:$0xff]  }
 0x521   : > { %6458 = vmatprep.subr.bf16.mxu1 %v9026_v17  ;;  %v9088_v17 = vld [vmem:[#allocation11 + $0x308] ss:$16 sps:$4 sm:$0xff]  }
 0x523   : > { %7758 = vmatmul.mubr.msk.bf16.gmra.mrb[148].mxu1 %vm1140_vm2, %v9017_v18  ;;  %v9093_v18 = vld [vmem:[#allocation11 + $0x324] ss:$16 sps:$4 sm:$0xff]  }
 0x524   : > { %2945 = vmatprep.mubr.bf16.mxu1 %v10108_v14  ;;  %6459 = vmatpush1.bf16.msra.mxu1 %v9024_v19  ;;  %v9096_v19 = vld [vmem:[#allocation11 + $0x32c] ss:$16 sps:$4 sm:$0xff]  }
 0x525   : > { %6460 = vmatprep.subr.bf16.mxu1 %v9033_v0  ;;  %v9094_v0 = vld [vmem:[#allocation11 + $0x328] ss:$16 sps:$4 sm:$0xff]  }
 0x528   : > { %6461 = vmatpush1.bf16.msra.mxu1 %v9031_v4  ;;  %v9099_v4 = vld [vmem:[#allocation11 + $0x344] ss:$16 sps:$4 sm:$0xff]  }
 0x529   : > { %6473 = vmatprep.subr.bf16.mxu1 %v9039_v22 }
 0x52b   : > { %7759 = vmatmul.mubr.msk.bf16.gmra.mrb[152].mxu1 %vm1140_vm2, %v9030_v20  ;;  %v9091_v20 = vld [vmem:[#allocation11 + $0x320] ss:$16 sps:$4 sm:$0xff]  }
 0x5be   : > { %v2867_v14 = vpop.f32.mrb[120].mxu1 }
 0x5bf   : > { %v2869_v24 = vpop.f32.mrb[121].mxu1 }
 0x5c0   : > { %v2871_v25 = vpop.f32.mrb[122].mxu1 }
 0x5c1   : > { %v2956_v26 = vpack.c.bf16 %v2871_v25, %v2867_v14  ;;  %v2873_v27 = vpop.f32.mrb[123].mxu1  ;;  %v9100_v25 = vld [vmem:[#allocation11 + $0x348] ss:$16 sps:$4 sm:$0xff]  }
 0x5c2   : > { %v2957_v28 = vpack.c.bf16 %v2873_v27, %v2869_v24  ;;  %v9097_v24 = vld [vmem:[#allocation11 + $0x340] ss:$16 sps:$4 sm:$0xff]  }
 0x5c4   : > { %6462 = vmatprep.mubr.bf16.mxu1 %v2957_v28  ;;  %6849 = vmatprep.mubr.bf16.mxu0 %v2957_v28  ;;  %v9105_v28 = vld [vmem:[#allocation11 + $0x364] ss:$16 sps:$4 sm:$0xff]  }
 0x5c5   : > { %6463 = vmatmul.mubr.bf16.vlgmr.msra.gmra.mrb[156].mxu1 %v2956_v26  ;;  %6850 = vmatmul.mubr.bf16.vlgmr.msra.gmra.mrb[44].mxu0 %v2956_v26 }
 0x5c6   : > { %6474 = vmatpush1.bf16.msra.mxu1 %v9037_v29  ;;  %6861 = vmatpush1.bf16.msra.mxu0 %v9040_v30  ;;  %v2877_v35 = vpop.f32.mrb[124].mxu1  ;;  %v9108_v29 = vld [vmem:[#allocation11 + $0x36c] ss:$16 sps:$4 sm:$0xff]   ;;  %v9103_v30 = vld [vmem:[#allocation11 + $0x360] ss:$16 sps:$4 sm:$0xff]  }
 0x5c7   : > { %6475 = vmatprep.subr.bf16.mxu1 %v9045_v31  ;;  %6862 = vmatprep.subr.bf16.mxu0 %v9048_v32  ;;  %v2879_v39 = vpop.f32.mrb[125].mxu1  ;;  %v9106_v31 = vld [vmem:[#allocation11 + $0x368] ss:$16 sps:$4 sm:$0xff]  }
 0x5c8   : > { %v2881_v45 = vpop.f32.mrb[126].mxu1 }
 0x5c9   : > { %v10869_v47 = vpack.c.bf16 %v2881_v45, %v2877_v35  ;;  %v2883_v51 = vpop.f32.mrb[127].mxu1  ;;  %v9112_v45 = vld [vmem:[#allocation11 + $0x388] ss:$16 sps:$4 sm:$0xff]  }
 0x5ca   : > { %6476 = vmatpush1.bf16.msra.mxu1 %v9043_v33  ;;  %6863 = vmatpush1.bf16.msra.mxu0 %v9046_v34  ;;  %v2959_v56 = vpack.c.bf16 %v2883_v51, %v2879_v39  ;;  %v9111_v33 = vld [vmem:[#allocation11 + $0x384] ss:$16 sps:$4 sm:$0xff]   ;;  %v9114_v34 = vld [vmem:[#allocation11 + $0x38c] ss:$16 sps:$4 sm:$0xff]   ;;  %v9109_v39 = vld [vmem:[#allocation11 + $0x380] ss:$16 sps:$4 sm:$0xff]  }
 0x5cb   : > { %6477 = vmatprep.subr.bf16.mxu1 %v9051_v36  ;;  %6864 = vmatprep.subr.bf16.mxu0 %v9054_v37 }
 0x5cc   : > { %6505 = vmatprep.mubr.bf16.mxu1 %v2959_v56  ;;  %6892 = vmatprep.mubr.bf16.mxu0 %v2959_v56  ;;  %v9120_v56 = vld [vmem:[#allocation11 + $0x3ac] ss:$16 sps:$4 sm:$0xff]  }
 0x5ce   : > { %6478 = vmatpush1.bf16.msra.mxu1 %v9049_v54  ;;  %6865 = vmatpush1.bf16.msra.mxu0 %v9052_v16  ;;  %v2887_v5 = vpop.f32.mrb[128].mxu1  ;;  %v9117_v16 = vld [vmem:[#allocation11 + $0x3a4] ss:$16 sps:$4 sm:$0xff]  }
 0x5cf   : > { %6479 = vmatprep.subr.bf16.mxu1 %v9057_v58  ;;  %6866 = vmatprep.subr.bf16.mxu0 %v9060_v60  ;;  %v2889_v50 = vpop.f32.mrb[129].mxu1  ;;  %v9115_v58 = vld [vmem:[#allocation11 + $0x3a0] ss:$16 sps:$4 sm:$0xff]   ;;  %v9118_v60 = vld [vmem:[#allocation11 + $0x3a8] ss:$16 sps:$4 sm:$0xff]  }
 0x5d0   : > { %v2891_v52 = vpop.f32.mrb[130].mxu1 }
 0x5d1   : > { %v10871_v7 = vpack.c.bf16 %v2891_v52, %v2887_v5  ;;  %v2893_v8 = vpop.f32.mrb[131].mxu1 }
 0x5d2   : > { %6480 = vmatpush1.bf16.msra.mxu1 %v9055_v62  ;;  %6867 = vmatpush1.bf16.msra.mxu0 %v9058_v1  ;;  %v10873_v11 = vpack.c.bf16 %v2893_v8, %v2889_v50  ;;  %v9123_v62 = vld [vmem:[#allocation11 + $0x3c4] ss:$16 sps:$4 sm:$0xff]   ;;  %v9126_v1 = vld [vmem:[#allocation11 + $0x3cc] ss:$16 sps:$4 sm:$0xff]   ;;  %v9124_v50 = vld [vmem:[#allocation11 + $0x3c8] ss:$16 sps:$4 sm:$0xff]  }
 0x5d3   : > { %6481 = vmatprep.subr.bf16.mxu1 %v9063_v6  ;;  %6868 = vmatprep.subr.bf16.mxu0 %v9066_v48  ;;  %v9121_v48 = vld [vmem:[#allocation11 + $0x3c0] ss:$16 sps:$4 sm:$0xff]   ;;  %v9129_v8 = vld [vmem:[#allocation11 + $0x3e4] ss:$16 sps:$4 sm:$0xff]  }
 0x5d6   : > { %6482 = vmatpush1.bf16.msra.mxu1 %v9061_v9  ;;  %6869 = vmatpush1.bf16.msra.mxu0 %v9064_v10  ;;  %v2897_v2 = vpop.f32.mrb[132].mxu1  ;;  %v9132_v9 = vld [vmem:[#allocation11 + $0x3ec] ss:$16 sps:$4 sm:$0xff]  }
 0x5d7   : > { %6483 = vmatprep.subr.bf16.mxu1 %v9069_v12  ;;  %6870 = vmatprep.subr.bf16.mxu0 %v9072_v38  ;;  %v2899_v22 = vpop.f32.mrb[133].mxu1 }
 0x5d8   : > { %v2901_v23 = vpop.f32.mrb[134].mxu1 }
 0x5d9   : > { %v2903_v14 = vpop.f32.mrb[135].mxu1  ;;  %v10875_v26 = vpack.c.bf16 %v2901_v23, %v2897_v2 }
 0x5da   : > { %6484 = vmatpush1.bf16.msra.mxu1 %v9067_v41  ;;  %6871 = vmatpush1.bf16.msra.mxu0 %v9070_v43  ;;  %v10877_v27 = vpack.c.bf16 %v2903_v14, %v2899_v22  ;;  %v9127_v41 = vld [vmem:[#allocation11 + $0x3e0] ss:$16 sps:$4 sm:$0xff]   ;;  %v9130_v43 = vld [vmem:[#allocation11 + $0x3e8] ss:$16 sps:$4 sm:$0xff]   ;;  %v9156_v14 = vld [vmem:[#allocation11 + $0x46c] ss:$16 sps:$4 sm:$0xff]  }
 0x5db   : > { %6485 = vmatprep.subr.bf16.mxu1 %v9075_v40  ;;  %6872 = vmatprep.subr.bf16.mxu0 %v9078_v49  ;;  %v9135_v40 = vld [vmem:[#allocation11 + $0x404] ss:$16 sps:$4 sm:$0xff]   ;;  %v9138_v49 = vld [vmem:[#allocation11 + $0x40c] ss:$16 sps:$4 sm:$0xff]   ;;  %v9148_v22 = vld [vmem:[#allocation11 + $0x448] ss:$16 sps:$4 sm:$0xff]  }
 0x5de   : > { %6486 = vmatpush1.bf16.msra.mxu1 %v9073_v53  ;;  %6873 = vmatpush1.bf16.msra.mxu0 %v9076_v55  ;;  %v2907_v32 = vpop.f32.mrb[136].mxu1 }
 0x5df   : > { %6487 = vmatprep.subr.bf16.mxu1 %v9081_v57  ;;  %6874 = vmatprep.subr.bf16.mxu0 %v9084_v61  ;;  %v2909_v35 = vpop.f32.mrb[137].mxu1  ;;  %v9133_v57 = vld [vmem:[#allocation11 + $0x400] ss:$16 sps:$4 sm:$0xff]   ;;  %v9136_v61 = vld [vmem:[#allocation11 + $0x408] ss:$16 sps:$4 sm:$0xff]  }
 0x5e0   : > { %v2911_v36 = vpop.f32.mrb[138].mxu1 }
 0x5e1   : > { %v2913_v37 = vpop.f32.mrb[139].mxu1  ;;  %v10879_v51 = vpack.c.bf16 %v2911_v36, %v2907_v32 }
 0x5e2   : > { %6488 = vmatpush1.bf16.msra.mxu1 %v9079_v63  ;;  %6875 = vmatpush1.bf16.msra.mxu0 %v9082_v3  ;;  %v10881_v54 = vpack.c.bf16 %v2913_v37, %v2909_v35  ;;  %v9141_v3 = vld [vmem:[#allocation11 + $0x424] ss:$16 sps:$4 sm:$0xff]   ;;  %v9160_v35 = vld [vmem:[#allocation11 + $0x488] ss:$16 sps:$4 sm:$0xff]  }
 0x5e3   : > { %6489 = vmatprep.subr.bf16.mxu1 %v9087_v59  ;;  %6876 = vmatprep.subr.bf16.mxu0 %v9090_v13  ;;  %v9144_v59 = vld [vmem:[#allocation11 + $0x42c] ss:$16 sps:$4 sm:$0xff]   ;;  %v9165_v37 = vld [vmem:[#allocation11 + $0x4a4] ss:$16 sps:$4 sm:$0xff]  }
 0x5e6   : > { %6490 = vmatpush1.bf16.msra.mxu1 %v9085_v15  ;;  %6877 = vmatpush1.bf16.msra.mxu0 %v9088_v17  ;;  %v2917_v5 = vpop.f32.mrb[140].mxu1 }
 0x5e7   : > { %6491 = vmatprep.subr.bf16.mxu1 %v9093_v18  ;;  %6878 = vmatprep.subr.bf16.mxu0 %v9096_v19  ;;  %v2919_v6 = vpop.f32.mrb[141].mxu1  ;;  %v9139_v18 = vld [vmem:[#allocation11 + $0x420] ss:$16 sps:$4 sm:$0xff]   ;;  %v9142_v19 = vld [vmem:[#allocation11 + $0x428] ss:$16 sps:$4 sm:$0xff]  }
 0x5e8   : > { %v2921_v52 = vpop.f32.mrb[142].mxu1 }
 0x5e9   : > { %v2923_v10 = vpop.f32.mrb[143].mxu1  ;;  %v10883_v12 = vpack.c.bf16 %v2921_v52, %v2917_v5  ;;  %v9169_v5 = vld [vmem:[#allocation11 + $0x4c0] ss:$16 sps:$4 sm:$0xff]  }
 0x5ea   : > { %6492 = vmatpush1.bf16.msra.mxu1 %v9091_v20  ;;  %6879 = vmatpush1.bf16.msra.mxu0 %v9094_v0  ;;  %v10885_v38 = vpack.c.bf16 %v2923_v10, %v2919_v6  ;;  %v9147_v20 = vld [vmem:[#allocation11 + $0x444] ss:$16 sps:$4 sm:$0xff]   ;;  %v9150_v0 = vld [vmem:[#allocation11 + $0x44c] ss:$16 sps:$4 sm:$0xff]   ;;  %v9172_v6 = vld [vmem:[#allocation11 + $0x4c8] ss:$16 sps:$4 sm:$0xff]  }
 0x5eb   : > { %6493 = vmatprep.subr.bf16.mxu1 %v9099_v4  ;;  %6880 = vmatprep.subr.bf16.mxu0 %v9102_v21  ;;  %v9145_v21 = vld [vmem:[#allocation11 + $0x440] ss:$16 sps:$4 sm:$0xff]   ;;  %v9186_v10 = vld [vmem:[#allocation11 + $0x50c] ss:$16 sps:$4 sm:$0xff]  }
 0x5ec   : > { %v9175_v52 = vld [vmem:[#allocation11 + $0x4e0] ss:$16 sps:$4 sm:$0xff]  }
 0x5ee   : > { %6494 = vmatpush1.bf16.msra.mxu1 %v9097_v24  ;;  %6881 = vmatpush1.bf16.msra.mxu0 %v9100_v25  ;;  %v2927_v53 = vpop.f32.mrb[144].mxu1 }
 0x5ef   : > { %6495 = vmatprep.subr.bf16.mxu1 %v9105_v28  ;;  %6882 = vmatprep.subr.bf16.mxu0 %v9108_v29  ;;  %v2929_v55 = vpop.f32.mrb[145].mxu1  ;;  %v9151_v29 = vld [vmem:[#allocation11 + $0x460] ss:$16 sps:$4 sm:$0xff]  }
 0x5f0   : > { %v2931_v63 = vpop.f32.mrb[146].mxu1 }
 0x5f1   : > { %v2933_v13 = vpop.f32.mrb[147].mxu1  ;;  %v10887_v15 = vpack.c.bf16 %v2931_v63, %v2927_v53  ;;  %v9187_v53 = vld [vmem:[#allocation11 + $0x520] ss:$16 sps:$4 sm:$0xff]  }
 0x5f2   : > { %6496 = vmatpush1.bf16.msra.mxu1 %v9103_v30  ;;  %6883 = vmatpush1.bf16.msra.mxu0 %v9106_v31  ;;  %v10889_v17 = vpack.c.bf16 %v2933_v13, %v2929_v55  ;;  %v9159_v30 = vld [vmem:[#allocation11 + $0x484] ss:$16 sps:$4 sm:$0xff]   ;;  %v9162_v31 = vld [vmem:[#allocation11 + $0x48c] ss:$16 sps:$4 sm:$0xff]   ;;  %v9190_v55 = vld [vmem:[#allocation11 + $0x528] ss:$16 sps:$4 sm:$0xff]  }
 0x5f3   : > { %6497 = vmatprep.subr.bf16.mxu1 %v9111_v33  ;;  %6884 = vmatprep.subr.bf16.mxu0 %v9114_v34  ;;  %v9157_v34 = vld [vmem:[#allocation11 + $0x480] ss:$16 sps:$4 sm:$0xff]   ;;  %v9204_v13 = vld [vmem:[#allocation11 + $0x56c] ss:$16 sps:$4 sm:$0xff]  }
 0x5f4   : > { %v9193_v63 = vld [vmem:[#allocation11 + $0x540] ss:$16 sps:$4 sm:$0xff]  }
 0x5f6   : > { %6498 = vmatpush1.bf16.msra.mxu1 %v9109_v39  ;;  %6885 = vmatpush1.bf16.msra.mxu0 %v9112_v45  ;;  %v2937_v2 = vpop.f32.mrb[148].mxu1  ;;  %v9168_v39 = vld [vmem:[#allocation11 + $0x4ac] ss:$16 sps:$4 sm:$0xff]  }
 0x5f7   : > { %6499 = vmatprep.subr.bf16.mxu1 %v9117_v16  ;;  %6886 = vmatprep.subr.bf16.mxu0 %v9120_v56  ;;  %v2939_v4 = vpop.f32.mrb[149].mxu1 }
 0x5f8   : > { %v2941_v23 = vpop.f32.mrb[150].mxu1 }
 0x5f9   : > { %v2943_v24 = vpop.f32.mrb[151].mxu1  ;;  %v10895_v25 = vpack.c.bf16 %v2941_v23, %v2937_v2  ;;  %v9205_v2 = vld [vmem:[#allocation11 + $0x580] ss:$16 sps:$4 sm:$0xff]  }
 0x5fa   : > { %6500 = vmatpush1.bf16.msra.mxu1 %v9115_v58  ;;  %6887 = vmatpush1.bf16.msra.mxu0 %v9118_v60  ;;  %v10897_v28 = vpack.c.bf16 %v2943_v24, %v2939_v4  ;;  %v9163_v58 = vld [vmem:[#allocation11 + $0x4a0] ss:$16 sps:$4 sm:$0xff]   ;;  %v9166_v60 = vld [vmem:[#allocation11 + $0x4a8] ss:$16 sps:$4 sm:$0xff]   ;;  %v9222_v24 = vld [vmem:[#allocation11 + $0x5cc] ss:$16 sps:$4 sm:$0xff]  }
 0x5fb   : > { %6501 = vmatprep.subr.bf16.mxu1 %v9123_v62  ;;  %6888 = vmatprep.subr.bf16.mxu0 %v9126_v1  ;;  %v9171_v62 = vld [vmem:[#allocation11 + $0x4c4] ss:$16 sps:$4 sm:$0xff]   ;;  %v9174_v1 = vld [vmem:[#allocation11 + $0x4cc] ss:$16 sps:$4 sm:$0xff]   ;;  %v9208_v4 = vld [vmem:[#allocation11 + $0x588] ss:$16 sps:$4 sm:$0xff]  }
 0x5fc   : > { %v9211_v23 = vld [vmem:[#allocation11 + $0x5a0] ss:$16 sps:$4 sm:$0xff]  }
 0x5fe   : > { %6502 = vmatpush1.bf16.msra.mxu1 %v9121_v48  ;;  %6889 = vmatpush1.bf16.msra.mxu0 %v9124_v50  ;;  %v2947_v32 = vpop.f32.mrb[152].mxu1  ;;  %v9177_v48 = vld [vmem:[#allocation11 + $0x4e4] ss:$16 sps:$4 sm:$0xff]   ;;  %v9180_v50 = vld [vmem:[#allocation11 + $0x4ec] ss:$16 sps:$4 sm:$0xff]  }
 0x5ff   : > { %6503 = vmatprep.subr.bf16.mxu1 %v9129_v8  ;;  %6890 = vmatprep.subr.bf16.mxu0 %v9132_v9  ;;  %v2949_v33 = vpop.f32.mrb[153].mxu1  ;;  %v9178_v8 = vld [vmem:[#allocation11 + $0x4e8] ss:$16 sps:$4 sm:$0xff]   ;;  %v9183_v9 = vld [vmem:[#allocation11 + $0x504] ss:$16 sps:$4 sm:$0xff]  }
 0x600   : > { %v2951_v36 = vpop.f32.mrb[154].mxu1 }
 0x601   : > { %v2953_v45 = vpop.f32.mrb[155].mxu1  ;;  %v10899_v16 = vpack.c.bf16 %v2951_v36, %v2947_v32  ;;  %v9223_v32 = vld [vmem:[#allocation11 + $0x5e0] ss:$16 sps:$4 sm:$0xff]  }
 0x602   : > { %6504 = vmatpush1.bf16.msra.mxu1 %v9127_v41  ;;  %6891 = vmatpush1.bf16.msra.mxu0 %v9130_v43  ;;  %v10901_v56 = vpack.c.bf16 %v2953_v45, %v2949_v33  ;;  %v9181_v41 = vld [vmem:[#allocation11 + $0x500] ss:$16 sps:$4 sm:$0xff]   ;;  %v9184_v43 = vld [vmem:[#allocation11 + $0x508] ss:$16 sps:$4 sm:$0xff]   ;;  %v9240_v45 = vld [vmem:[#allocation11 + $0x62c] ss:$16 sps:$4 sm:$0xff]  }
 0x603   : > { %6516 = vmatprep.subr.bf16.mxu1 %v9135_v40  ;;  %6903 = vmatprep.subr.bf16.mxu0 %v9138_v49  ;;  %v9189_v40 = vld [vmem:[#allocation11 + $0x524] ss:$16 sps:$4 sm:$0xff]   ;;  %v9192_v49 = vld [vmem:[#allocation11 + $0x52c] ss:$16 sps:$4 sm:$0xff]   ;;  %v9226_v33 = vld [vmem:[#allocation11 + $0x5e8] ss:$16 sps:$4 sm:$0xff]  }
 0x604   : > { %v9229_v36 = vld [vmem:[#allocation11 + $0x600] ss:$16 sps:$4 sm:$0xff]  }
 0x605   : > { %6506 = vmatmul.mubr.bf16.vlgmr.msra.gmra.mrb[156].mxu1 %v10869_v47  ;;  %6893 = vmatmul.mubr.bf16.vlgmr.msra.gmra.mrb[44].mxu0 %v10869_v47  ;;  %v9153_v47 = vld [vmem:[#allocation11 + $0x464] ss:$16 sps:$4 sm:$0xff]  }
 0x606   : > { %6517 = vmatpush1.bf16.msra.mxu1 %v9133_v57  ;;  %6904 = vmatpush1.bf16.msra.mxu0 %v9136_v61  ;;  %v9195_v57 = vld [vmem:[#allocation11 + $0x544] ss:$16 sps:$4 sm:$0xff]   ;;  %v9198_v61 = vld [vmem:[#allocation11 + $0x54c] ss:$16 sps:$4 sm:$0xff]  }
 0x607   : > { %6518 = vmatprep.subr.bf16.mxu1 %v9141_v3  ;;  %6905 = vmatprep.subr.bf16.mxu0 %v9144_v59  ;;  %v9196_v3 = vld [vmem:[#allocation11 + $0x548] ss:$16 sps:$4 sm:$0xff]   ;;  %v9201_v59 = vld [vmem:[#allocation11 + $0x564] ss:$16 sps:$4 sm:$0xff]  }
 0x608   : > { %6548 = vmatprep.mubr.bf16.mxu1 %v10873_v11  ;;  %6935 = vmatprep.mubr.bf16.mxu0 %v10873_v11  ;;  %v9154_v11 = vld [vmem:[#allocation11 + $0x468] ss:$16 sps:$4 sm:$0xff]  }
 0x60a   : > { %6519 = vmatpush1.bf16.msra.mxu1 %v9139_v18  ;;  %6906 = vmatpush1.bf16.msra.mxu0 %v9142_v19  ;;  %v9199_v18 = vld [vmem:[#allocation11 + $0x560] ss:$16 sps:$4 sm:$0xff]   ;;  %v9202_v19 = vld [vmem:[#allocation11 + $0x568] ss:$16 sps:$4 sm:$0xff]  }
 0x60b   : > { %6520 = vmatprep.subr.bf16.mxu1 %v9147_v20  ;;  %6907 = vmatprep.subr.bf16.mxu0 %v9150_v0  ;;  %v9207_v20 = vld [vmem:[#allocation11 + $0x584] ss:$16 sps:$4 sm:$0xff]   ;;  %v9210_v0 = vld [vmem:[#allocation11 + $0x58c] ss:$16 sps:$4 sm:$0xff]  }
 0x60e   : > { %6521 = vmatpush1.bf16.msra.mxu1 %v9145_v21  ;;  %6908 = vmatpush1.bf16.msra.mxu0 %v9148_v22  ;;  %v9213_v21 = vld [vmem:[#allocation11 + $0x5a4] ss:$16 sps:$4 sm:$0xff]   ;;  %v9216_v22 = vld [vmem:[#allocation11 + $0x5ac] ss:$16 sps:$4 sm:$0xff]  }
 0x60f   : > { %6522 = vmatprep.subr.bf16.mxu1 %v9153_v47  ;;  %6909 = vmatprep.subr.bf16.mxu0 %v9156_v14  ;;  %v9214_v47 = vld [vmem:[#allocation11 + $0x5a8] ss:$16 sps:$4 sm:$0xff]   ;;  %v9219_v14 = vld [vmem:[#allocation11 + $0x5c4] ss:$16 sps:$4 sm:$0xff]  }
 0x612   : > { %6523 = vmatpush1.bf16.msra.mxu1 %v9151_v29  ;;  %6910 = vmatpush1.bf16.msra.mxu0 %v9154_v11  ;;  %v9217_v29 = vld [vmem:[#allocation11 + $0x5c0] ss:$16 sps:$4 sm:$0xff]   ;;  %v9220_v11 = vld [vmem:[#allocation11 + $0x5c8] ss:$16 sps:$4 sm:$0xff]  }
 0x613   : > { %6524 = vmatprep.subr.bf16.mxu1 %v9159_v30  ;;  %6911 = vmatprep.subr.bf16.mxu0 %v9162_v31  ;;  %v9225_v30 = vld [vmem:[#allocation11 + $0x5e4] ss:$16 sps:$4 sm:$0xff]   ;;  %v9228_v31 = vld [vmem:[#allocation11 + $0x5ec] ss:$16 sps:$4 sm:$0xff]  }
 0x616   : > { %6525 = vmatpush1.bf16.msra.mxu1 %v9157_v34  ;;  %6912 = vmatpush1.bf16.msra.mxu0 %v9160_v35  ;;  %v9231_v34 = vld [vmem:[#allocation11 + $0x604] ss:$16 sps:$4 sm:$0xff]   ;;  %v9234_v35 = vld [vmem:[#allocation11 + $0x60c] ss:$16 sps:$4 sm:$0xff]  }
 0x617   : > { %6526 = vmatprep.subr.bf16.mxu1 %v9165_v37  ;;  %6913 = vmatprep.subr.bf16.mxu0 %v9168_v39  ;;  %v9232_v37 = vld [vmem:[#allocation11 + $0x608] ss:$16 sps:$4 sm:$0xff]   ;;  %v9237_v39 = vld [vmem:[#allocation11 + $0x624] ss:$16 sps:$4 sm:$0xff]  }
 0x61a   : > { %6527 = vmatpush1.bf16.msra.mxu1 %v9163_v58  ;;  %6914 = vmatpush1.bf16.msra.mxu0 %v9166_v60  ;;  %v9235_v58 = vld [vmem:[#allocation11 + $0x620] ss:$16 sps:$4 sm:$0xff]   ;;  %v9238_v60 = vld [vmem:[#allocation11 + $0x628] ss:$16 sps:$4 sm:$0xff]  }
 0x61b   : > { %6528 = vmatprep.subr.bf16.mxu1 %v9171_v62  ;;  %6915 = vmatprep.subr.bf16.mxu0 %v9174_v1  ;;  %v9243_v62 = vld [vmem:[#allocation11 + $0x644] ss:$16 sps:$4 sm:$0xff]   ;;  %v9246_v1 = vld [vmem:[#allocation11 + $0x64c] ss:$16 sps:$4 sm:$0xff]  }
 0x61e   : > { %6529 = vmatpush1.bf16.msra.mxu1 %v9169_v5  ;;  %6916 = vmatpush1.bf16.msra.mxu0 %v9172_v6  ;;  %v9241_v5 = vld [vmem:[#allocation11 + $0x640] ss:$16 sps:$4 sm:$0xff]   ;;  %v9244_v6 = vld [vmem:[#allocation11 + $0x648] ss:$16 sps:$4 sm:$0xff]  }
 0x61f   : > { %6530 = vmatprep.subr.bf16.mxu1 %v9177_v48  ;;  %6917 = vmatprep.subr.bf16.mxu0 %v9180_v50  ;;  %v9249_v48 = vld [vmem:[#allocation11 + $0x664] ss:$16 sps:$4 sm:$0xff]   ;;  %v9247_v50 = vld [vmem:[#allocation11 + $0x660] ss:$16 sps:$4 sm:$0xff]  }
 0x622   : > { %6531 = vmatpush1.bf16.msra.mxu1 %v9175_v52  ;;  %6918 = vmatpush1.bf16.msra.mxu0 %v9178_v8  ;;  %v9250_v52 = vld [vmem:[#allocation11 + $0x668] ss:$16 sps:$4 sm:$0xff]   ;;  %v9255_v8 = vld [vmem:[#allocation11 + $0x684] ss:$16 sps:$4 sm:$0xff]  }
 0x623   : > { %6532 = vmatprep.subr.bf16.mxu1 %v9183_v9  ;;  %6919 = vmatprep.subr.bf16.mxu0 %v9186_v10  ;;  %v9258_v9 = vld [vmem:[#allocation11 + $0x68c] ss:$16 sps:$4 sm:$0xff]   ;;  %v9253_v10 = vld [vmem:[#allocation11 + $0x680] ss:$16 sps:$4 sm:$0xff]  }
 0x626   : > { %6533 = vmatpush1.bf16.msra.mxu1 %v9181_v41  ;;  %6920 = vmatpush1.bf16.msra.mxu0 %v9184_v43  ;;  %v9261_v41 = vld [vmem:[#allocation11 + $0x6a4] ss:$16 sps:$4 sm:$0xff]   ;;  %v9264_v43 = vld [vmem:[#allocation11 + $0x6ac] ss:$16 sps:$4 sm:$0xff]  }
 0x627   : > { %6534 = vmatprep.subr.bf16.mxu1 %v9189_v40  ;;  %6921 = vmatprep.subr.bf16.mxu0 %v9192_v49  ;;  %v9259_v40 = vld [vmem:[#allocation11 + $0x6a0] ss:$16 sps:$4 sm:$0xff]   ;;  %v9262_v49 = vld [vmem:[#allocation11 + $0x6a8] ss:$16 sps:$4 sm:$0xff]  }
 0x62a   : > { %6535 = vmatpush1.bf16.msra.mxu1 %v9187_v53  ;;  %6922 = vmatpush1.bf16.msra.mxu0 %v9190_v55  ;;  %v9267_v53 = vld [vmem:[#allocation11 + $0x6c4] ss:$16 sps:$4 sm:$0xff]   ;;  %v9270_v55 = vld [vmem:[#allocation11 + $0x6cc] ss:$16 sps:$4 sm:$0xff]  }
 0x62b   : > { %6536 = vmatprep.subr.bf16.mxu1 %v9195_v57  ;;  %6923 = vmatprep.subr.bf16.mxu0 %v9198_v61  ;;  %v9265_v57 = vld [vmem:[#allocation11 + $0x6c0] ss:$16 sps:$4 sm:$0xff]   ;;  %v9268_v61 = vld [vmem:[#allocation11 + $0x6c8] ss:$16 sps:$4 sm:$0xff]  }
 0x62e   : > { %6537 = vmatpush1.bf16.msra.mxu1 %v9193_v63  ;;  %6924 = vmatpush1.bf16.msra.mxu0 %v9196_v3  ;;  %v9273_v63 = vld [vmem:[#allocation11 + $0x6e4] ss:$16 sps:$4 sm:$0xff]   ;;  %v9276_v3 = vld [vmem:[#allocation11 + $0x6ec] ss:$16 sps:$4 sm:$0xff]  }
 0x62f   : > { %6538 = vmatprep.subr.bf16.mxu1 %v9201_v59  ;;  %6925 = vmatprep.subr.bf16.mxu0 %v9204_v13  ;;  %v9271_v59 = vld [vmem:[#allocation11 + $0x6e0] ss:$16 sps:$4 sm:$0xff]   ;;  %v9274_v13 = vld [vmem:[#allocation11 + $0x6e8] ss:$16 sps:$4 sm:$0xff]  }
 0x632   : > { %6539 = vmatpush1.bf16.msra.mxu1 %v9199_v18  ;;  %6926 = vmatpush1.bf16.msra.mxu0 %v9202_v19  ;;  %v9279_v18 = vld [vmem:[#allocation11 + $0x704] ss:$16 sps:$4 sm:$0xff]   ;;  %v9282_v19 = vld [vmem:[#allocation11 + $0x70c] ss:$16 sps:$4 sm:$0xff]  }
 0x633   : > { %6540 = vmatprep.subr.bf16.mxu1 %v9207_v20  ;;  %6927 = vmatprep.subr.bf16.mxu0 %v9210_v0  ;;  %v9277_v20 = vld [vmem:[#allocation11 + $0x700] ss:$16 sps:$4 sm:$0xff]   ;;  %v9280_v0 = vld [vmem:[#allocation11 + $0x708] ss:$16 sps:$4 sm:$0xff]  }
 0x636   : > { %6541 = vmatpush1.bf16.msra.mxu1 %v9205_v2  ;;  %6928 = vmatpush1.bf16.msra.mxu0 %v9208_v4  ;;  %v9285_v2 = vld [vmem:[#allocation11 + $0x724] ss:$16 sps:$4 sm:$0xff]   ;;  %v9288_v4 = vld [vmem:[#allocation11 + $0x72c] ss:$16 sps:$4 sm:$0xff]  }
 0x637   : > { %6542 = vmatprep.subr.bf16.mxu1 %v9213_v21  ;;  %6929 = vmatprep.subr.bf16.mxu0 %v9216_v22  ;;  %v9283_v21 = vld [vmem:[#allocation11 + $0x720] ss:$16 sps:$4 sm:$0xff]   ;;  %v9286_v22 = vld [vmem:[#allocation11 + $0x728] ss:$16 sps:$4 sm:$0xff]  }
 0x63a   : > { %6543 = vmatpush1.bf16.msra.mxu1 %v9211_v23  ;;  %6930 = vmatpush1.bf16.msra.mxu0 %v9214_v47  ;;  %v9291_v23 = vld [vmem:[#allocation11 + $0x744] ss:$16 sps:$4 sm:$0xff]   ;;  %v9294_v47 = vld [vmem:[#allocation11 + $0x74c] ss:$16 sps:$4 sm:$0xff]  }
 0x63b   : > { %6544 = vmatprep.subr.bf16.mxu1 %v9219_v14  ;;  %6931 = vmatprep.subr.bf16.mxu0 %v9222_v24  ;;  %v9289_v14 = vld [vmem:[#allocation11 + $0x740] ss:$16 sps:$4 sm:$0xff]   ;;  %v9292_v24 = vld [vmem:[#allocation11 + $0x748] ss:$16 sps:$4 sm:$0xff]  }
 0x63e   : > { %6545 = vmatpush1.bf16.msra.mxu1 %v9217_v29  ;;  %6932 = vmatpush1.bf16.msra.mxu0 %v9220_v11  ;;  %v9297_v29 = vld [vmem:[#allocation11 + $0x764] ss:$16 sps:$4 sm:$0xff]   ;;  %v9300_v11 = vld [vmem:[#allocation11 + $0x76c] ss:$16 sps:$4 sm:$0xff]  }
 0x63f   : > { %6546 = vmatprep.subr.bf16.mxu1 %v9225_v30  ;;  %6933 = vmatprep.subr.bf16.mxu0 %v9228_v31  ;;  %v9295_v30 = vld [vmem:[#allocation11 + $0x760] ss:$16 sps:$4 sm:$0xff]   ;;  %v9298_v31 = vld [vmem:[#allocation11 + $0x768] ss:$16 sps:$4 sm:$0xff]  }
 0x642   : > { %6547 = vmatpush1.bf16.msra.mxu1 %v9223_v32  ;;  %6934 = vmatpush1.bf16.msra.mxu0 %v9226_v33  ;;  %v9303_v32 = vld [vmem:[#allocation11 + $0x784] ss:$16 sps:$4 sm:$0xff]   ;;  %v9306_v33 = vld [vmem:[#allocation11 + $0x78c] ss:$16 sps:$4 sm:$0xff]  }
 0x643   : > { %6559 = vmatprep.subr.bf16.mxu1 %v9231_v34  ;;  %6946 = vmatprep.subr.bf16.mxu0 %v9234_v35  ;;  %v9301_v34 = vld [vmem:[#allocation11 + $0x780] ss:$16 sps:$4 sm:$0xff]   ;;  %v9304_v35 = vld [vmem:[#allocation11 + $0x788] ss:$16 sps:$4 sm:$0xff]  }
 0x645   : > { %6549 = vmatmul.mubr.bf16.vlgmr.msra.gmra.mrb[156].mxu1 %v10871_v7  ;;  %6936 = vmatmul.mubr.bf16.vlgmr.msra.gmra.mrb[44].mxu0 %v10871_v7  ;;  %v9252_v7 = vld [vmem:[#allocation11 + $0x66c] ss:$16 sps:$4 sm:$0xff]  }
 0x646   : > { %6560 = vmatpush1.bf16.msra.mxu1 %v9229_v36  ;;  %6947 = vmatpush1.bf16.msra.mxu0 %v9232_v37  ;;  %v9309_v36 = vld [vmem:[#allocation11 + $0x7a4] ss:$16 sps:$4 sm:$0xff]   ;;  %v9312_v37 = vld [vmem:[#allocation11 + $0x7ac] ss:$16 sps:$4 sm:$0xff]  }
 0x647   : > { %6561 = vmatprep.subr.bf16.mxu1 %v9237_v39  ;;  %6948 = vmatprep.subr.bf16.mxu0 %v9240_v45  ;;  %v9307_v39 = vld [vmem:[#allocation11 + $0x7a0] ss:$16 sps:$4 sm:$0xff]   ;;  %v9310_v45 = vld [vmem:[#allocation11 + $0x7a8] ss:$16 sps:$4 sm:$0xff]  }
 0x648   : > { %6591 = vmatprep.mubr.bf16.mxu1 %v10877_v27  ;;  %6978 = vmatprep.mubr.bf16.mxu0 %v10877_v27  ;;  %v9256_v27 = vld [vmem:[#allocation11 + $0x688] ss:$16 sps:$4 sm:$0xff]  }
 0x64a   : > { %6562 = vmatpush1.bf16.msra.mxu1 %v9235_v58  ;;  %6949 = vmatpush1.bf16.msra.mxu0 %v9238_v60  ;;  %v9315_v58 = vld [vmem:[#allocation11 + $0x7c4] ss:$16 sps:$4 sm:$0xff]   ;;  %v9318_v60 = vld [vmem:[#allocation11 + $0x7cc] ss:$16 sps:$4 sm:$0xff]  }
 0x64b   : > { %6563 = vmatprep.subr.bf16.mxu1 %v9243_v62  ;;  %6950 = vmatprep.subr.bf16.mxu0 %v9246_v1  ;;  %v9313_v62 = vld [vmem:[#allocation11 + $0x7c0] ss:$16 sps:$4 sm:$0xff]   ;;  %v9316_v1 = vld [vmem:[#allocation11 + $0x7c8] ss:$16 sps:$4 sm:$0xff]  }
 0x64e   : > { %6564 = vmatpush1.bf16.msra.mxu1 %v9241_v5  ;;  %6951 = vmatpush1.bf16.msra.mxu0 %v9244_v6  ;;  %v9321_v5 = vld [vmem:[#allocation11 + $0x7e4] ss:$16 sps:$4 sm:$0xff]   ;;  %v9324_v6 = vld [vmem:[#allocation11 + $0x7ec] ss:$16 sps:$4 sm:$0xff]  }
 0x64f   : > { %6565 = vmatprep.subr.bf16.mxu1 %v9249_v48  ;;  %6952 = vmatprep.subr.bf16.mxu0 %v9252_v7  ;;  %v9319_v48 = vld [vmem:[#allocation11 + $0x7e0] ss:$16 sps:$4 sm:$0xff]   ;;  %v9322_v7 = vld [vmem:[#allocation11 + $0x7e8] ss:$16 sps:$4 sm:$0xff]  }
 0x652   : > { %6566 = vmatpush1.bf16.msra.mxu1 %v9247_v50  ;;  %6953 = vmatpush1.bf16.msra.mxu0 %v9250_v52  ;;  %v9327_v50 = vld [vmem:[#allocation11 + $0x804] ss:$16 sps:$4 sm:$0xff]   ;;  %v9330_v52 = vld [vmem:[#allocation11 + $0x80c] ss:$16 sps:$4 sm:$0xff]  }
 0x653   : > { %6567 = vmatprep.subr.bf16.mxu1 %v9255_v8  ;;  %6954 = vmatprep.subr.bf16.mxu0 %v9258_v9  ;;  %v9325_v8 = vld [vmem:[#allocation11 + $0x800] ss:$16 sps:$4 sm:$0xff]   ;;  %v9328_v9 = vld [vmem:[#allocation11 + $0x808] ss:$16 sps:$4 sm:$0xff]  }
 0x656   : > { %6568 = vmatpush1.bf16.msra.mxu1 %v9253_v10  ;;  %6955 = vmatpush1.bf16.msra.mxu0 %v9256_v27  ;;  %v9333_v10 = vld [vmem:[#allocation11 + $0x824] ss:$16 sps:$4 sm:$0xff]   ;;  %v9336_v27 = vld [vmem:[#allocation11 + $0x82c] ss:$16 sps:$4 sm:$0xff]  }
 0x657   : > { %6569 = vmatprep.subr.bf16.mxu1 %v9261_v41  ;;  %6956 = vmatprep.subr.bf16.mxu0 %v9264_v43  ;;  %v9331_v41 = vld [vmem:[#allocation11 + $0x820] ss:$16 sps:$4 sm:$0xff]   ;;  %v9334_v43 = vld [vmem:[#allocation11 + $0x828] ss:$16 sps:$4 sm:$0xff]  }
 0x65a   : > { %6570 = vmatpush1.bf16.msra.mxu1 %v9259_v40  ;;  %6957 = vmatpush1.bf16.msra.mxu0 %v9262_v49  ;;  %v9339_v40 = vld [vmem:[#allocation11 + $0x844] ss:$16 sps:$4 sm:$0xff]   ;;  %v9342_v49 = vld [vmem:[#allocation11 + $0x84c] ss:$16 sps:$4 sm:$0xff]  }
 0x65b   : > { %6571 = vmatprep.subr.bf16.mxu1 %v9267_v53  ;;  %6958 = vmatprep.subr.bf16.mxu0 %v9270_v55  ;;  %v9337_v53 = vld [vmem:[#allocation11 + $0x840] ss:$16 sps:$4 sm:$0xff]   ;;  %v9340_v55 = vld [vmem:[#allocation11 + $0x848] ss:$16 sps:$4 sm:$0xff]  }
 0x65e   : > { %6572 = vmatpush1.bf16.msra.mxu1 %v9265_v57  ;;  %6959 = vmatpush1.bf16.msra.mxu0 %v9268_v61  ;;  %v9345_v57 = vld [vmem:[#allocation11 + $0x864] ss:$16 sps:$4 sm:$0xff]   ;;  %v9343_v61 = vld [vmem:[#allocation11 + $0x860] ss:$16 sps:$4 sm:$0xff]  }
 0x65f   : > { %6573 = vmatprep.subr.bf16.mxu1 %v9273_v63  ;;  %6960 = vmatprep.subr.bf16.mxu0 %v9276_v3  ;;  %v9346_v63 = vld [vmem:[#allocation11 + $0x868] ss:$16 sps:$4 sm:$0xff]   ;;  %v9351_v3 = vld [vmem:[#allocation11 + $0x884] ss:$16 sps:$4 sm:$0xff]  }
 0x662   : > { %6574 = vmatpush1.bf16.msra.mxu1 %v9271_v59  ;;  %6961 = vmatpush1.bf16.msra.mxu0 %v9274_v13  ;;  %v9354_v59 = vld [vmem:[#allocation11 + $0x88c] ss:$16 sps:$4 sm:$0xff]   ;;  %v9349_v13 = vld [vmem:[#allocation11 + $0x880] ss:$16 sps:$4 sm:$0xff]  }
 0x663   : > { %6575 = vmatprep.subr.bf16.mxu1 %v9279_v18  ;;  %6962 = vmatprep.subr.bf16.mxu0 %v9282_v19  ;;  %v9357_v18 = vld [vmem:[#allocation11 + $0x8a4] ss:$16 sps:$4 sm:$0xff]   ;;  %v9360_v19 = vld [vmem:[#allocation11 + $0x8ac] ss:$16 sps:$4 sm:$0xff]  }
 0x666   : > { %6576 = vmatpush1.bf16.msra.mxu1 %v9277_v20  ;;  %6963 = vmatpush1.bf16.msra.mxu0 %v9280_v0  ;;  %v9355_v20 = vld [vmem:[#allocation11 + $0x8a0] ss:$16 sps:$4 sm:$0xff]   ;;  %v9358_v0 = vld [vmem:[#allocation11 + $0x8a8] ss:$16 sps:$4 sm:$0xff]  }
 0x667   : > { %6577 = vmatprep.subr.bf16.mxu1 %v9285_v2  ;;  %6964 = vmatprep.subr.bf16.mxu0 %v9288_v4  ;;  %v9363_v2 = vld [vmem:[#allocation11 + $0x8c4] ss:$16 sps:$4 sm:$0xff]   ;;  %v9366_v4 = vld [vmem:[#allocation11 + $0x8cc] ss:$16 sps:$4 sm:$0xff]  }
 0x66a   : > { %6578 = vmatpush1.bf16.msra.mxu1 %v9283_v21  ;;  %6965 = vmatpush1.bf16.msra.mxu0 %v9286_v22  ;;  %v9361_v21 = vld [vmem:[#allocation11 + $0x8c0] ss:$16 sps:$4 sm:$0xff]   ;;  %v9364_v22 = vld [vmem:[#allocation11 + $0x8c8] ss:$16 sps:$4 sm:$0xff]  }
 0x66b   : > { %6579 = vmatprep.subr.bf16.mxu1 %v9291_v23  ;;  %6966 = vmatprep.subr.bf16.mxu0 %v9294_v47  ;;  %v9369_v23 = vld [vmem:[#allocation11 + $0x8e4] ss:$16 sps:$4 sm:$0xff]   ;;  %v9372_v47 = vld [vmem:[#allocation11 + $0x8ec] ss:$16 sps:$4 sm:$0xff]  }
 0x66e   : > { %6580 = vmatpush1.bf16.msra.mxu1 %v9289_v14  ;;  %6967 = vmatpush1.bf16.msra.mxu0 %v9292_v24  ;;  %v9367_v14 = vld [vmem:[#allocation11 + $0x8e0] ss:$16 sps:$4 sm:$0xff]   ;;  %v9370_v24 = vld [vmem:[#allocation11 + $0x8e8] ss:$16 sps:$4 sm:$0xff]  }
 0x66f   : > { %6581 = vmatprep.subr.bf16.mxu1 %v9297_v29  ;;  %6968 = vmatprep.subr.bf16.mxu0 %v9300_v11  ;;  %v9375_v29 = vld [vmem:[#allocation11 + $0x904] ss:$16 sps:$4 sm:$0xff]   ;;  %v9378_v11 = vld [vmem:[#allocation11 + $0x90c] ss:$16 sps:$4 sm:$0xff]  }
 0x672   : > { %6582 = vmatpush1.bf16.msra.mxu1 %v9295_v30  ;;  %6969 = vmatpush1.bf16.msra.mxu0 %v9298_v31  ;;  %v9373_v30 = vld [vmem:[#allocation11 + $0x900] ss:$16 sps:$4 sm:$0xff]   ;;  %v9376_v31 = vld [vmem:[#allocation11 + $0x908] ss:$16 sps:$4 sm:$0xff]  }
 0x673   : > { %6583 = vmatprep.subr.bf16.mxu1 %v9303_v32  ;;  %6970 = vmatprep.subr.bf16.mxu0 %v9306_v33  ;;  %v9381_v32 = vld [vmem:[#allocation11 + $0x924] ss:$16 sps:$4 sm:$0xff]   ;;  %v9384_v33 = vld [vmem:[#allocation11 + $0x92c] ss:$16 sps:$4 sm:$0xff]  }
 0x676   : > { %6584 = vmatpush1.bf16.msra.mxu1 %v9301_v34  ;;  %6971 = vmatpush1.bf16.msra.mxu0 %v9304_v35  ;;  %v9379_v34 = vld [vmem:[#allocation11 + $0x920] ss:$16 sps:$4 sm:$0xff]   ;;  %v9382_v35 = vld [vmem:[#allocation11 + $0x928] ss:$16 sps:$4 sm:$0xff]  }
 0x677   : > { %6585 = vmatprep.subr.bf16.mxu1 %v9309_v36  ;;  %6972 = vmatprep.subr.bf16.mxu0 %v9312_v37  ;;  %v9387_v36 = vld [vmem:[#allocation11 + $0x944] ss:$16 sps:$4 sm:$0xff]   ;;  %v9390_v37 = vld [vmem:[#allocation11 + $0x94c] ss:$16 sps:$4 sm:$0xff]  }
 0x67a   : > { %6586 = vmatpush1.bf16.msra.mxu1 %v9307_v39  ;;  %6973 = vmatpush1.bf16.msra.mxu0 %v9310_v45  ;;  %v9385_v39 = vld [vmem:[#allocation11 + $0x940] ss:$16 sps:$4 sm:$0xff]   ;;  %v9388_v45 = vld [vmem:[#allocation11 + $0x948] ss:$16 sps:$4 sm:$0xff]  }
 0x67b   : > { %6587 = vmatprep.subr.bf16.mxu1 %v9315_v58  ;;  %6974 = vmatprep.subr.bf16.mxu0 %v9318_v60  ;;  %v9393_v58 = vld [vmem:[#allocation11 + $0x964] ss:$16 sps:$4 sm:$0xff]   ;;  %v9396_v60 = vld [vmem:[#allocation11 + $0x96c] ss:$16 sps:$4 sm:$0xff]  }
 0x67e   : > { %6588 = vmatpush1.bf16.msra.mxu1 %v9313_v62  ;;  %6975 = vmatpush1.bf16.msra.mxu0 %v9316_v1  ;;  %v9391_v62 = vld [vmem:[#allocation11 + $0x960] ss:$16 sps:$4 sm:$0xff]   ;;  %v9394_v1 = vld [vmem:[#allocation11 + $0x968] ss:$16 sps:$4 sm:$0xff]  }
 0x67f   : > { %6589 = vmatprep.subr.bf16.mxu1 %v9321_v5  ;;  %6976 = vmatprep.subr.bf16.mxu0 %v9324_v6  ;;  %v9399_v5 = vld [vmem:[#allocation11 + $0x984] ss:$16 sps:$4 sm:$0xff]   ;;  %v9402_v6 = vld [vmem:[#allocation11 + $0x98c] ss:$16 sps:$4 sm:$0xff]  }
 0x682   : > { %6590 = vmatpush1.bf16.msra.mxu1 %v9319_v48  ;;  %6977 = vmatpush1.bf16.msra.mxu0 %v9322_v7  ;;  %v9397_v48 = vld [vmem:[#allocation11 + $0x980] ss:$16 sps:$4 sm:$0xff]   ;;  %v9400_v7 = vld [vmem:[#allocation11 + $0x988] ss:$16 sps:$4 sm:$0xff]  }
 0x683   : > { %6602 = vmatprep.subr.bf16.mxu1 %v9327_v50  ;;  %6989 = vmatprep.subr.bf16.mxu0 %v9330_v52  ;;  %v9405_v50 = vld [vmem:[#allocation11 + $0x9a4] ss:$16 sps:$4 sm:$0xff]   ;;  %v9408_v52 = vld [vmem:[#allocation11 + $0x9ac] ss:$16 sps:$4 sm:$0xff]  }
 0x685   : > { %6592 = vmatmul.mubr.bf16.vlgmr.msra.gmra.mrb[156].mxu1 %v10875_v26  ;;  %6979 = vmatmul.mubr.bf16.vlgmr.msra.gmra.mrb[44].mxu0 %v10875_v26  ;;  %v9348_v26 = vld [vmem:[#allocation11 + $0x86c] ss:$16 sps:$4 sm:$0xff]  }
 0x686   : > { %6603 = vmatpush1.bf16.msra.mxu1 %v9325_v8  ;;  %6990 = vmatpush1.bf16.msra.mxu0 %v9328_v9  ;;  %v9403_v8 = vld [vmem:[#allocation11 + $0x9a0] ss:$16 sps:$4 sm:$0xff]   ;;  %v9406_v9 = vld [vmem:[#allocation11 + $0x9a8] ss:$16 sps:$4 sm:$0xff]  }
 0x687   : > { %6604 = vmatprep.subr.bf16.mxu1 %v9333_v10  ;;  %6991 = vmatprep.subr.bf16.mxu0 %v9336_v27  ;;  %v9411_v10 = vld [vmem:[#allocation11 + $0x9c4] ss:$16 sps:$4 sm:$0xff]   ;;  %v9414_v27 = vld [vmem:[#allocation11 + $0x9cc] ss:$16 sps:$4 sm:$0xff]  }
 0x688   : > { %6634 = vmatprep.mubr.bf16.mxu1 %v10881_v54  ;;  %7021 = vmatprep.mubr.bf16.mxu0 %v10881_v54  ;;  %v9352_v54 = vld [vmem:[#allocation11 + $0x888] ss:$16 sps:$4 sm:$0xff]  }
 0x68a   : > { %6605 = vmatpush1.bf16.msra.mxu1 %v9331_v41  ;;  %6992 = vmatpush1.bf16.msra.mxu0 %v9334_v43  ;;  %v9409_v41 = vld [vmem:[#allocation11 + $0x9c0] ss:$16 sps:$4 sm:$0xff]   ;;  %v9412_v43 = vld [vmem:[#allocation11 + $0x9c8] ss:$16 sps:$4 sm:$0xff]  }
 0x68b   : > { %6606 = vmatprep.subr.bf16.mxu1 %v9339_v40  ;;  %6993 = vmatprep.subr.bf16.mxu0 %v9342_v49  ;;  %v9417_v40 = vld [vmem:[#allocation11 + $0x9e4] ss:$16 sps:$4 sm:$0xff]   ;;  %v9420_v49 = vld [vmem:[#allocation11 + $0x9ec] ss:$16 sps:$4 sm:$0xff]  }
 0x68e   : > { %6607 = vmatpush1.bf16.msra.mxu1 %v9337_v53  ;;  %6994 = vmatpush1.bf16.msra.mxu0 %v9340_v55  ;;  %v9415_v53 = vld [vmem:[#allocation11 + $0x9e0] ss:$16 sps:$4 sm:$0xff]   ;;  %v9418_v55 = vld [vmem:[#allocation11 + $0x9e8] ss:$16 sps:$4 sm:$0xff]  }
 0x68f   : > { %6608 = vmatprep.subr.bf16.mxu1 %v9345_v57  ;;  %6995 = vmatprep.subr.bf16.mxu0 %v9348_v26  ;;  %v9423_v57 = vld [vmem:[#allocation11 + $0xa04] ss:$16 sps:$4 sm:$0xff]   ;;  %v9426_v26 = vld [vmem:[#allocation11 + $0xa0c] ss:$16 sps:$4 sm:$0xff]  }
 0x692   : > { %6609 = vmatpush1.bf16.msra.mxu1 %v9343_v61  ;;  %6996 = vmatpush1.bf16.msra.mxu0 %v9346_v63  ;;  %v9421_v61 = vld [vmem:[#allocation11 + $0xa00] ss:$16 sps:$4 sm:$0xff]   ;;  %v9424_v63 = vld [vmem:[#allocation11 + $0xa08] ss:$16 sps:$4 sm:$0xff]  }
 0x693   : > { %6610 = vmatprep.subr.bf16.mxu1 %v9351_v3  ;;  %6997 = vmatprep.subr.bf16.mxu0 %v9354_v59  ;;  %v9429_v3 = vld [vmem:[#allocation11 + $0xa24] ss:$16 sps:$4 sm:$0xff]   ;;  %v9432_v59 = vld [vmem:[#allocation11 + $0xa2c] ss:$16 sps:$4 sm:$0xff]  }
 0x696   : > { %6611 = vmatpush1.bf16.msra.mxu1 %v9349_v13  ;;  %6998 = vmatpush1.bf16.msra.mxu0 %v9352_v54  ;;  %v9427_v13 = vld [vmem:[#allocation11 + $0xa20] ss:$16 sps:$4 sm:$0xff]   ;;  %v9430_v54 = vld [vmem:[#allocation11 + $0xa28] ss:$16 sps:$4 sm:$0xff]  }
 0x697   : > { %6612 = vmatprep.subr.bf16.mxu1 %v9357_v18  ;;  %6999 = vmatprep.subr.bf16.mxu0 %v9360_v19  ;;  %v9435_v18 = vld [vmem:[#allocation11 + $0xa44] ss:$16 sps:$4 sm:$0xff]   ;;  %v9438_v19 = vld [vmem:[#allocation11 + $0xa4c] ss:$16 sps:$4 sm:$0xff]  }
 0x69a   : > { %6613 = vmatpush1.bf16.msra.mxu1 %v9355_v20  ;;  %7000 = vmatpush1.bf16.msra.mxu0 %v9358_v0  ;;  %v9433_v20 = vld [vmem:[#allocation11 + $0xa40] ss:$16 sps:$4 sm:$0xff]   ;;  %v9436_v0 = vld [vmem:[#allocation11 + $0xa48] ss:$16 sps:$4 sm:$0xff]  }
 0x69b   : > { %6614 = vmatprep.subr.bf16.mxu1 %v9363_v2  ;;  %7001 = vmatprep.subr.bf16.mxu0 %v9366_v4  ;;  %v9441_v2 = vld [vmem:[#allocation11 + $0xa64] ss:$16 sps:$4 sm:$0xff]   ;;  %v9439_v4 = vld [vmem:[#allocation11 + $0xa60] ss:$16 sps:$4 sm:$0xff]  }
 0x69e   : > { %6615 = vmatpush1.bf16.msra.mxu1 %v9361_v21  ;;  %7002 = vmatpush1.bf16.msra.mxu0 %v9364_v22  ;;  %v9442_v21 = vld [vmem:[#allocation11 + $0xa68] ss:$16 sps:$4 sm:$0xff]   ;;  %v9447_v22 = vld [vmem:[#allocation11 + $0xa84] ss:$16 sps:$4 sm:$0xff]  }
 0x69f   : > { %6616 = vmatprep.subr.bf16.mxu1 %v9369_v23  ;;  %7003 = vmatprep.subr.bf16.mxu0 %v9372_v47  ;;  %v9450_v23 = vld [vmem:[#allocation11 + $0xa8c] ss:$16 sps:$4 sm:$0xff]   ;;  %v9445_v47 = vld [vmem:[#allocation11 + $0xa80] ss:$16 sps:$4 sm:$0xff]  }
 0x6a2   : > { %6617 = vmatpush1.bf16.msra.mxu1 %v9367_v14  ;;  %7004 = vmatpush1.bf16.msra.mxu0 %v9370_v24  ;;  %v9453_v14 = vld [vmem:[#allocation11 + $0xaa4] ss:$16 sps:$4 sm:$0xff]   ;;  %v9456_v24 = vld [vmem:[#allocation11 + $0xaac] ss:$16 sps:$4 sm:$0xff]  }
 0x6a3   : > { %6618 = vmatprep.subr.bf16.mxu1 %v9375_v29  ;;  %7005 = vmatprep.subr.bf16.mxu0 %v9378_v11  ;;  %v9451_v29 = vld [vmem:[#allocation11 + $0xaa0] ss:$16 sps:$4 sm:$0xff]   ;;  %v9454_v11 = vld [vmem:[#allocation11 + $0xaa8] ss:$16 sps:$4 sm:$0xff]  }
 0x6a6   : > { %6619 = vmatpush1.bf16.msra.mxu1 %v9373_v30  ;;  %7006 = vmatpush1.bf16.msra.mxu0 %v9376_v31  ;;  %v9459_v30 = vld [vmem:[#allocation11 + $0xac4] ss:$16 sps:$4 sm:$0xff]   ;;  %v9462_v31 = vld [vmem:[#allocation11 + $0xacc] ss:$16 sps:$4 sm:$0xff]  }
 0x6a7   : > { %6620 = vmatprep.subr.bf16.mxu1 %v9381_v32  ;;  %7007 = vmatprep.subr.bf16.mxu0 %v9384_v33  ;;  %v9457_v32 = vld [vmem:[#allocation11 + $0xac0] ss:$16 sps:$4 sm:$0xff]   ;;  %v9460_v33 = vld [vmem:[#allocation11 + $0xac8] ss:$16 sps:$4 sm:$0xff]  }
 0x6aa   : > { %6621 = vmatpush1.bf16.msra.mxu1 %v9379_v34  ;;  %7008 = vmatpush1.bf16.msra.mxu0 %v9382_v35  ;;  %v9465_v34 = vld [vmem:[#allocation11 + $0xae4] ss:$16 sps:$4 sm:$0xff]   ;;  %v9468_v35 = vld [vmem:[#allocation11 + $0xaec] ss:$16 sps:$4 sm:$0xff]  }
 0x6ab   : > { %6622 = vmatprep.subr.bf16.mxu1 %v9387_v36  ;;  %7009 = vmatprep.subr.bf16.mxu0 %v9390_v37  ;;  %v9463_v36 = vld [vmem:[#allocation11 + $0xae0] ss:$16 sps:$4 sm:$0xff]   ;;  %v9466_v37 = vld [vmem:[#allocation11 + $0xae8] ss:$16 sps:$4 sm:$0xff]  }
 0x6ae   : > { %6623 = vmatpush1.bf16.msra.mxu1 %v9385_v39  ;;  %7010 = vmatpush1.bf16.msra.mxu0 %v9388_v45  ;;  %v9471_v39 = vld [vmem:[#allocation11 + $0xb04] ss:$16 sps:$4 sm:$0xff]   ;;  %v9474_v45 = vld [vmem:[#allocation11 + $0xb0c] ss:$16 sps:$4 sm:$0xff]  }
 0x6af   : > { %6624 = vmatprep.subr.bf16.mxu1 %v9393_v58  ;;  %7011 = vmatprep.subr.bf16.mxu0 %v9396_v60  ;;  %v9469_v58 = vld [vmem:[#allocation11 + $0xb00] ss:$16 sps:$4 sm:$0xff]   ;;  %v9472_v60 = vld [vmem:[#allocation11 + $0xb08] ss:$16 sps:$4 sm:$0xff]  }
 0x6b2   : > { %6625 = vmatpush1.bf16.msra.mxu1 %v9391_v62  ;;  %7012 = vmatpush1.bf16.msra.mxu0 %v9394_v1  ;;  %v9477_v62 = vld [vmem:[#allocation11 + $0xb24] ss:$16 sps:$4 sm:$0xff]   ;;  %v9480_v1 = vld [vmem:[#allocation11 + $0xb2c] ss:$16 sps:$4 sm:$0xff]  }
 0x6b3   : > { %6626 = vmatprep.subr.bf16.mxu1 %v9399_v5  ;;  %7013 = vmatprep.subr.bf16.mxu0 %v9402_v6  ;;  %v9475_v5 = vld [vmem:[#allocation11 + $0xb20] ss:$16 sps:$4 sm:$0xff]   ;;  %v9478_v6 = vld [vmem:[#allocation11 + $0xb28] ss:$16 sps:$4 sm:$0xff]  }
 0x6b6   : > { %6627 = vmatpush1.bf16.msra.mxu1 %v9397_v48  ;;  %7014 = vmatpush1.bf16.msra.mxu0 %v9400_v7  ;;  %v9483_v48 = vld [vmem:[#allocation11 + $0xb44] ss:$16 sps:$4 sm:$0xff]   ;;  %v9486_v7 = vld [vmem:[#allocation11 + $0xb4c] ss:$16 sps:$4 sm:$0xff]  }
 0x6b7   : > { %6628 = vmatprep.subr.bf16.mxu1 %v9405_v50  ;;  %7015 = vmatprep.subr.bf16.mxu0 %v9408_v52  ;;  %v9481_v50 = vld [vmem:[#allocation11 + $0xb40] ss:$16 sps:$4 sm:$0xff]   ;;  %v9484_v52 = vld [vmem:[#allocation11 + $0xb48] ss:$16 sps:$4 sm:$0xff]  }
 0x6ba   : > { %6629 = vmatpush1.bf16.msra.mxu1 %v9403_v8  ;;  %7016 = vmatpush1.bf16.msra.mxu0 %v9406_v9  ;;  %v9489_v8 = vld [vmem:[#allocation11 + $0xb64] ss:$16 sps:$4 sm:$0xff]   ;;  %v9492_v9 = vld [vmem:[#allocation11 + $0xb6c] ss:$16 sps:$4 sm:$0xff]  }
 0x6bb   : > { %6630 = vmatprep.subr.bf16.mxu1 %v9411_v10  ;;  %7017 = vmatprep.subr.bf16.mxu0 %v9414_v27  ;;  %v9487_v10 = vld [vmem:[#allocation11 + $0xb60] ss:$16 sps:$4 sm:$0xff]   ;;  %v9490_v27 = vld [vmem:[#allocation11 + $0xb68] ss:$16 sps:$4 sm:$0xff]  }
 0x6be   : > { %6631 = vmatpush1.bf16.msra.mxu1 %v9409_v41  ;;  %7018 = vmatpush1.bf16.msra.mxu0 %v9412_v43  ;;  %v9495_v41 = vld [vmem:[#allocation11 + $0xb84] ss:$16 sps:$4 sm:$0xff]   ;;  %v9498_v43 = vld [vmem:[#allocation11 + $0xb8c] ss:$16 sps:$4 sm:$0xff]  }
 0x6bf   : > { %6632 = vmatprep.subr.bf16.mxu1 %v9417_v40  ;;  %7019 = vmatprep.subr.bf16.mxu0 %v9420_v49  ;;  %v9493_v40 = vld [vmem:[#allocation11 + $0xb80] ss:$16 sps:$4 sm:$0xff]   ;;  %v9496_v49 = vld [vmem:[#allocation11 + $0xb88] ss:$16 sps:$4 sm:$0xff]  }
 0x6c2   : > { %6633 = vmatpush1.bf16.msra.mxu1 %v9415_v53  ;;  %7020 = vmatpush1.bf16.msra.mxu0 %v9418_v55  ;;  %v9501_v53 = vld [vmem:[#allocation11 + $0xba4] ss:$16 sps:$4 sm:$0xff]   ;;  %v9504_v55 = vld [vmem:[#allocation11 + $0xbac] ss:$16 sps:$4 sm:$0xff]  }
 0x6c3   : > { %6645 = vmatprep.subr.bf16.mxu1 %v9423_v57  ;;  %7032 = vmatprep.subr.bf16.mxu0 %v9426_v26  ;;  %v9499_v57 = vld [vmem:[#allocation11 + $0xba0] ss:$16 sps:$4 sm:$0xff]   ;;  %v9502_v26 = vld [vmem:[#allocation11 + $0xba8] ss:$16 sps:$4 sm:$0xff]  }
 0x6c5   : > { %6635 = vmatmul.mubr.bf16.vlgmr.msra.gmra.mrb[156].mxu1 %v10879_v51  ;;  %7022 = vmatmul.mubr.bf16.vlgmr.msra.gmra.mrb[44].mxu0 %v10879_v51  ;;  %v9444_v51 = vld [vmem:[#allocation11 + $0xa6c] ss:$16 sps:$4 sm:$0xff]  }
 0x6c6   : > { %6646 = vmatpush1.bf16.msra.mxu1 %v9421_v61  ;;  %7033 = vmatpush1.bf16.msra.mxu0 %v9424_v63  ;;  %v9507_v61 = vld [vmem:[#allocation11 + $0xbc4] ss:$16 sps:$4 sm:$0xff]   ;;  %v9510_v63 = vld [vmem:[#allocation11 + $0xbcc] ss:$16 sps:$4 sm:$0xff]  }
 0x6c7   : > { %6647 = vmatprep.subr.bf16.mxu1 %v9429_v3  ;;  %7034 = vmatprep.subr.bf16.mxu0 %v9432_v59  ;;  %v9505_v3 = vld [vmem:[#allocation11 + $0xbc0] ss:$16 sps:$4 sm:$0xff]   ;;  %v9508_v59 = vld [vmem:[#allocation11 + $0xbc8] ss:$16 sps:$4 sm:$0xff]  }
 0x6c8   : > { %6677 = vmatprep.mubr.bf16.mxu1 %v10885_v38  ;;  %7064 = vmatprep.mubr.bf16.mxu0 %v10885_v38  ;;  %v9448_v38 = vld [vmem:[#allocation11 + $0xa88] ss:$16 sps:$4 sm:$0xff]  }
 0x6ca   : > { %6648 = vmatpush1.bf16.msra.mxu1 %v9427_v13  ;;  %7035 = vmatpush1.bf16.msra.mxu0 %v9430_v54  ;;  %v9513_v13 = vld [vmem:[#allocation11 + $0xbe4] ss:$16 sps:$4 sm:$0xff]   ;;  %v9516_v54 = vld [vmem:[#allocation11 + $0xbec] ss:$16 sps:$4 sm:$0xff]  }
 0x6cb   : > { %6649 = vmatprep.subr.bf16.mxu1 %v9435_v18  ;;  %7036 = vmatprep.subr.bf16.mxu0 %v9438_v19  ;;  %v9511_v18 = vld [vmem:[#allocation11 + $0xbe0] ss:$16 sps:$4 sm:$0xff]   ;;  %v9514_v19 = vld [vmem:[#allocation11 + $0xbe8] ss:$16 sps:$4 sm:$0xff]  }
 0x6ce   : > { %6650 = vmatpush1.bf16.msra.mxu1 %v9433_v20  ;;  %7037 = vmatpush1.bf16.msra.mxu0 %v9436_v0  ;;  %v9519_v20 = vld [vmem:[#allocation11 + $0xc04] ss:$16 sps:$4 sm:$0xff]   ;;  %v9522_v0 = vld [vmem:[#allocation11 + $0xc0c] ss:$16 sps:$4 sm:$0xff]  }
 0x6cf   : > { %6651 = vmatprep.subr.bf16.mxu1 %v9441_v2  ;;  %7038 = vmatprep.subr.bf16.mxu0 %v9444_v51  ;;  %v9517_v2 = vld [vmem:[#allocation11 + $0xc00] ss:$16 sps:$4 sm:$0xff]   ;;  %v9520_v51 = vld [vmem:[#allocation11 + $0xc08] ss:$16 sps:$4 sm:$0xff]  }
 0x6d2   : > { %6652 = vmatpush1.bf16.msra.mxu1 %v9439_v4  ;;  %7039 = vmatpush1.bf16.msra.mxu0 %v9442_v21  ;;  %v9525_v4 = vld [vmem:[#allocation11 + $0xc24] ss:$16 sps:$4 sm:$0xff]   ;;  %v9528_v21 = vld [vmem:[#allocation11 + $0xc2c] ss:$16 sps:$4 sm:$0xff]  }
 0x6d3   : > { %6653 = vmatprep.subr.bf16.mxu1 %v9447_v22  ;;  %7040 = vmatprep.subr.bf16.mxu0 %v9450_v23  ;;  %v9523_v22 = vld [vmem:[#allocation11 + $0xc20] ss:$16 sps:$4 sm:$0xff]   ;;  %v9526_v23 = vld [vmem:[#allocation11 + $0xc28] ss:$16 sps:$4 sm:$0xff]  }
 0x6d6   : > { %6654 = vmatpush1.bf16.msra.mxu1 %v9445_v47  ;;  %7041 = vmatpush1.bf16.msra.mxu0 %v9448_v38  ;;  %v9531_v47 = vld [vmem:[#allocation11 + $0xc44] ss:$16 sps:$4 sm:$0xff]   ;;  %v9534_v38 = vld [vmem:[#allocation11 + $0xc4c] ss:$16 sps:$4 sm:$0xff]  }
 0x6d7   : > { %6655 = vmatprep.subr.bf16.mxu1 %v9453_v14  ;;  %7042 = vmatprep.subr.bf16.mxu0 %v9456_v24  ;;  %v9529_v14 = vld [vmem:[#allocation11 + $0xc40] ss:$16 sps:$4 sm:$0xff]   ;;  %v9532_v24 = vld [vmem:[#allocation11 + $0xc48] ss:$16 sps:$4 sm:$0xff]  }
 0x6da   : > { %6656 = vmatpush1.bf16.msra.mxu1 %v9451_v29  ;;  %7043 = vmatpush1.bf16.msra.mxu0 %v9454_v11  ;;  %v9537_v29 = vld [vmem:[#allocation11 + $0xc64] ss:$16 sps:$4 sm:$0xff]   ;;  %v9535_v11 = vld [vmem:[#allocation11 + $0xc60] ss:$16 sps:$4 sm:$0xff]  }
 0x6db   : > { %6657 = vmatprep.subr.bf16.mxu1 %v9459_v30  ;;  %7044 = vmatprep.subr.bf16.mxu0 %v9462_v31  ;;  %v9538_v30 = vld [vmem:[#allocation11 + $0xc68] ss:$16 sps:$4 sm:$0xff]   ;;  %v9543_v31 = vld [vmem:[#allocation11 + $0xc84] ss:$16 sps:$4 sm:$0xff]  }
 0x6de   : > { %6658 = vmatpush1.bf16.msra.mxu1 %v9457_v32  ;;  %7045 = vmatpush1.bf16.msra.mxu0 %v9460_v33  ;;  %v9546_v32 = vld [vmem:[#allocation11 + $0xc8c] ss:$16 sps:$4 sm:$0xff]   ;;  %v9541_v33 = vld [vmem:[#allocation11 + $0xc80] ss:$16 sps:$4 sm:$0xff]  }
 0x6df   : > { %6659 = vmatprep.subr.bf16.mxu1 %v9465_v34  ;;  %7046 = vmatprep.subr.bf16.mxu0 %v9468_v35  ;;  %v9549_v34 = vld [vmem:[#allocation11 + $0xca4] ss:$16 sps:$4 sm:$0xff]   ;;  %v9552_v35 = vld [vmem:[#allocation11 + $0xcac] ss:$16 sps:$4 sm:$0xff]  }
 0x6e2   : > { %6660 = vmatpush1.bf16.msra.mxu1 %v9463_v36  ;;  %7047 = vmatpush1.bf16.msra.mxu0 %v9466_v37  ;;  %v9547_v36 = vld [vmem:[#allocation11 + $0xca0] ss:$16 sps:$4 sm:$0xff]   ;;  %v9550_v37 = vld [vmem:[#allocation11 + $0xca8] ss:$16 sps:$4 sm:$0xff]  }
 0x6e3   : > { %6661 = vmatprep.subr.bf16.mxu1 %v9471_v39  ;;  %7048 = vmatprep.subr.bf16.mxu0 %v9474_v45  ;;  %v9555_v39 = vld [vmem:[#allocation11 + $0xcc4] ss:$16 sps:$4 sm:$0xff]   ;;  %v9558_v45 = vld [vmem:[#allocation11 + $0xccc] ss:$16 sps:$4 sm:$0xff]  }
 0x6e6   : > { %6662 = vmatpush1.bf16.msra.mxu1 %v9469_v58  ;;  %7049 = vmatpush1.bf16.msra.mxu0 %v9472_v60  ;;  %v9553_v58 = vld [vmem:[#allocation11 + $0xcc0] ss:$16 sps:$4 sm:$0xff]   ;;  %v9556_v60 = vld [vmem:[#allocation11 + $0xcc8] ss:$16 sps:$4 sm:$0xff]  }
 0x6e7   : > { %6663 = vmatprep.subr.bf16.mxu1 %v9477_v62  ;;  %7050 = vmatprep.subr.bf16.mxu0 %v9480_v1  ;;  %v9561_v62 = vld [vmem:[#allocation11 + $0xce4] ss:$16 sps:$4 sm:$0xff]   ;;  %v9564_v1 = vld [vmem:[#allocation11 + $0xcec] ss:$16 sps:$4 sm:$0xff]  }
 0x6ea   : > { %6664 = vmatpush1.bf16.msra.mxu1 %v9475_v5  ;;  %7051 = vmatpush1.bf16.msra.mxu0 %v9478_v6  ;;  %v9559_v5 = vld [vmem:[#allocation11 + $0xce0] ss:$16 sps:$4 sm:$0xff]   ;;  %v9562_v6 = vld [vmem:[#allocation11 + $0xce8] ss:$16 sps:$4 sm:$0xff]  }
 0x6eb   : > { %6665 = vmatprep.subr.bf16.mxu1 %v9483_v48  ;;  %7052 = vmatprep.subr.bf16.mxu0 %v9486_v7  ;;  %v9567_v48 = vld [vmem:[#allocation11 + $0xd04] ss:$16 sps:$4 sm:$0xff]   ;;  %v9570_v7 = vld [vmem:[#allocation11 + $0xd0c] ss:$16 sps:$4 sm:$0xff]  }
 0x6ee   : > { %6666 = vmatpush1.bf16.msra.mxu1 %v9481_v50  ;;  %7053 = vmatpush1.bf16.msra.mxu0 %v9484_v52  ;;  %v9565_v50 = vld [vmem:[#allocation11 + $0xd00] ss:$16 sps:$4 sm:$0xff]   ;;  %v9568_v52 = vld [vmem:[#allocation11 + $0xd08] ss:$16 sps:$4 sm:$0xff]  }
 0x6ef   : > { %6667 = vmatprep.subr.bf16.mxu1 %v9489_v8  ;;  %7054 = vmatprep.subr.bf16.mxu0 %v9492_v9  ;;  %v9573_v8 = vld [vmem:[#allocation11 + $0xd24] ss:$16 sps:$4 sm:$0xff]   ;;  %v9576_v9 = vld [vmem:[#allocation11 + $0xd2c] ss:$16 sps:$4 sm:$0xff]  }
 0x6f2   : > { %6668 = vmatpush1.bf16.msra.mxu1 %v9487_v10  ;;  %7055 = vmatpush1.bf16.msra.mxu0 %v9490_v27  ;;  %v9571_v10 = vld [vmem:[#allocation11 + $0xd20] ss:$16 sps:$4 sm:$0xff]   ;;  %v9574_v27 = vld [vmem:[#allocation11 + $0xd28] ss:$16 sps:$4 sm:$0xff]  }
 0x6f3   : > { %6669 = vmatprep.subr.bf16.mxu1 %v9495_v41  ;;  %7056 = vmatprep.subr.bf16.mxu0 %v9498_v43  ;;  %v9579_v41 = vld [vmem:[#allocation11 + $0xd44] ss:$16 sps:$4 sm:$0xff]   ;;  %v9582_v43 = vld [vmem:[#allocation11 + $0xd4c] ss:$16 sps:$4 sm:$0xff]  }
 0x6f6   : > { %6670 = vmatpush1.bf16.msra.mxu1 %v9493_v40  ;;  %7057 = vmatpush1.bf16.msra.mxu0 %v9496_v49  ;;  %v9577_v40 = vld [vmem:[#allocation11 + $0xd40] ss:$16 sps:$4 sm:$0xff]   ;;  %v9580_v49 = vld [vmem:[#allocation11 + $0xd48] ss:$16 sps:$4 sm:$0xff]  }
 0x6f7   : > { %6671 = vmatprep.subr.bf16.mxu1 %v9501_v53  ;;  %7058 = vmatprep.subr.bf16.mxu0 %v9504_v55  ;;  %v9585_v53 = vld [vmem:[#allocation11 + $0xd64] ss:$16 sps:$4 sm:$0xff]   ;;  %v9588_v55 = vld [vmem:[#allocation11 + $0xd6c] ss:$16 sps:$4 sm:$0xff]  }
 0x6fa   : > { %6672 = vmatpush1.bf16.msra.mxu1 %v9499_v57  ;;  %7059 = vmatpush1.bf16.msra.mxu0 %v9502_v26  ;;  %v9583_v57 = vld [vmem:[#allocation11 + $0xd60] ss:$16 sps:$4 sm:$0xff]   ;;  %v9586_v26 = vld [vmem:[#allocation11 + $0xd68] ss:$16 sps:$4 sm:$0xff]  }
 0x6fb   : > { %6673 = vmatprep.subr.bf16.mxu1 %v9507_v61  ;;  %7060 = vmatprep.subr.bf16.mxu0 %v9510_v63  ;;  %v9591_v61 = vld [vmem:[#allocation11 + $0xd84] ss:$16 sps:$4 sm:$0xff]   ;;  %v9594_v63 = vld [vmem:[#allocation11 + $0xd8c] ss:$16 sps:$4 sm:$0xff]  }
 0x6fe   : > { %6674 = vmatpush1.bf16.msra.mxu1 %v9505_v3  ;;  %7061 = vmatpush1.bf16.msra.mxu0 %v9508_v59  ;;  %v9589_v3 = vld [vmem:[#allocation11 + $0xd80] ss:$16 sps:$4 sm:$0xff]   ;;  %v9592_v59 = vld [vmem:[#allocation11 + $0xd88] ss:$16 sps:$4 sm:$0xff]  }
 0x6ff   : > { %6675 = vmatprep.subr.bf16.mxu1 %v9513_v13  ;;  %7062 = vmatprep.subr.bf16.mxu0 %v9516_v54  ;;  %v9597_v13 = vld [vmem:[#allocation11 + $0xda4] ss:$16 sps:$4 sm:$0xff]   ;;  %v9600_v54 = vld [vmem:[#allocation11 + $0xdac] ss:$16 sps:$4 sm:$0xff]  }
 0x702   : > { %6676 = vmatpush1.bf16.msra.mxu1 %v9511_v18  ;;  %7063 = vmatpush1.bf16.msra.mxu0 %v9514_v19  ;;  %v9595_v18 = vld [vmem:[#allocation11 + $0xda0] ss:$16 sps:$4 sm:$0xff]   ;;  %v9598_v19 = vld [vmem:[#allocation11 + $0xda8] ss:$16 sps:$4 sm:$0xff]  }
 0x703   : > { %6688 = vmatprep.subr.bf16.mxu1 %v9519_v20  ;;  %7075 = vmatprep.subr.bf16.mxu0 %v9522_v0  ;;  %v9603_v20 = vld [vmem:[#allocation11 + $0xdc4] ss:$16 sps:$4 sm:$0xff]   ;;  %v9606_v0 = vld [vmem:[#allocation11 + $0xdcc] ss:$16 sps:$4 sm:$0xff]  }
 0x705   : > { %6678 = vmatmul.mubr.bf16.vlgmr.msra.gmra.mrb[156].mxu1 %v10883_v12  ;;  %7065 = vmatmul.mubr.bf16.vlgmr.msra.gmra.mrb[44].mxu0 %v10883_v12  ;;  %v9540_v12 = vld [vmem:[#allocation11 + $0xc6c] ss:$16 sps:$4 sm:$0xff]  }
 0x706   : > { %6689 = vmatpush1.bf16.msra.mxu1 %v9517_v2  ;;  %7076 = vmatpush1.bf16.msra.mxu0 %v9520_v51  ;;  %v9601_v2 = vld [vmem:[#allocation11 + $0xdc0] ss:$16 sps:$4 sm:$0xff]   ;;  %v9604_v51 = vld [vmem:[#allocation11 + $0xdc8] ss:$16 sps:$4 sm:$0xff]  }
 0x707   : > { %6690 = vmatprep.subr.bf16.mxu1 %v9525_v4  ;;  %7077 = vmatprep.subr.bf16.mxu0 %v9528_v21  ;;  %v9609_v4 = vld [vmem:[#allocation11 + $0xde4] ss:$16 sps:$4 sm:$0xff]   ;;  %v9612_v21 = vld [vmem:[#allocation11 + $0xdec] ss:$16 sps:$4 sm:$0xff]  }
 0x708   : > { %6720 = vmatprep.mubr.bf16.mxu1 %v10889_v17  ;;  %7107 = vmatprep.mubr.bf16.mxu0 %v10889_v17  ;;  %v9544_v17 = vld [vmem:[#allocation11 + $0xc88] ss:$16 sps:$4 sm:$0xff]  }
 0x70a   : > { %6691 = vmatpush1.bf16.msra.mxu1 %v9523_v22  ;;  %7078 = vmatpush1.bf16.msra.mxu0 %v9526_v23  ;;  %v9607_v22 = vld [vmem:[#allocation11 + $0xde0] ss:$16 sps:$4 sm:$0xff]   ;;  %v9610_v23 = vld [vmem:[#allocation11 + $0xde8] ss:$16 sps:$4 sm:$0xff]  }
 0x70b   : > { %6692 = vmatprep.subr.bf16.mxu1 %v9531_v47  ;;  %7079 = vmatprep.subr.bf16.mxu0 %v9534_v38  ;;  %v9615_v47 = vld [vmem:[#allocation11 + $0xe04] ss:$16 sps:$4 sm:$0xff]   ;;  %v9618_v38 = vld [vmem:[#allocation11 + $0xe0c] ss:$16 sps:$4 sm:$0xff]  }
 0x70e   : > { %6693 = vmatpush1.bf16.msra.mxu1 %v9529_v14  ;;  %7080 = vmatpush1.bf16.msra.mxu0 %v9532_v24  ;;  %v9613_v14 = vld [vmem:[#allocation11 + $0xe00] ss:$16 sps:$4 sm:$0xff]   ;;  %v9616_v24 = vld [vmem:[#allocation11 + $0xe08] ss:$16 sps:$4 sm:$0xff]  }
 0x70f   : > { %6694 = vmatprep.subr.bf16.mxu1 %v9537_v29  ;;  %7081 = vmatprep.subr.bf16.mxu0 %v9540_v12  ;;  %v9621_v29 = vld [vmem:[#allocation11 + $0xe24] ss:$16 sps:$4 sm:$0xff]   ;;  %v9624_v12 = vld [vmem:[#allocation11 + $0xe2c] ss:$16 sps:$4 sm:$0xff]  }
 0x712   : > { %6695 = vmatpush1.bf16.msra.mxu1 %v9535_v11  ;;  %7082 = vmatpush1.bf16.msra.mxu0 %v9538_v30  ;;  %v9619_v11 = vld [vmem:[#allocation11 + $0xe20] ss:$16 sps:$4 sm:$0xff]   ;;  %v9622_v30 = vld [vmem:[#allocation11 + $0xe28] ss:$16 sps:$4 sm:$0xff]  }
 0x713   : > { %6696 = vmatprep.subr.bf16.mxu1 %v9543_v31  ;;  %7083 = vmatprep.subr.bf16.mxu0 %v9546_v32  ;;  %v9627_v31 = vld [vmem:[#allocation11 + $0xe44] ss:$16 sps:$4 sm:$0xff]   ;;  %v9630_v32 = vld [vmem:[#allocation11 + $0xe4c] ss:$16 sps:$4 sm:$0xff]  }
 0x716   : > { %6697 = vmatpush1.bf16.msra.mxu1 %v9541_v33  ;;  %7084 = vmatpush1.bf16.msra.mxu0 %v9544_v17  ;;  %v9625_v33 = vld [vmem:[#allocation11 + $0xe40] ss:$16 sps:$4 sm:$0xff]   ;;  %v9628_v17 = vld [vmem:[#allocation11 + $0xe48] ss:$16 sps:$4 sm:$0xff]  }
 0x717   : > { %6698 = vmatprep.subr.bf16.mxu1 %v9549_v34  ;;  %7085 = vmatprep.subr.bf16.mxu0 %v9552_v35  ;;  %v9633_v34 = vld [vmem:[#allocation11 + $0xe64] ss:$16 sps:$4 sm:$0xff]   ;;  %v9631_v35 = vld [vmem:[#allocation11 + $0xe60] ss:$16 sps:$4 sm:$0xff]  }
 0x71a   : > { %6699 = vmatpush1.bf16.msra.mxu1 %v9547_v36  ;;  %7086 = vmatpush1.bf16.msra.mxu0 %v9550_v37  ;;  %v9634_v36 = vld [vmem:[#allocation11 + $0xe68] ss:$16 sps:$4 sm:$0xff]   ;;  %v9639_v37 = vld [vmem:[#allocation11 + $0xe84] ss:$16 sps:$4 sm:$0xff]  }
 0x71b   : > { %6700 = vmatprep.subr.bf16.mxu1 %v9555_v39  ;;  %7087 = vmatprep.subr.bf16.mxu0 %v9558_v45  ;;  %v9642_v39 = vld [vmem:[#allocation11 + $0xe8c] ss:$16 sps:$4 sm:$0xff]   ;;  %v9637_v45 = vld [vmem:[#allocation11 + $0xe80] ss:$16 sps:$4 sm:$0xff]  }
 0x71e   : > { %6701 = vmatpush1.bf16.msra.mxu1 %v9553_v58  ;;  %7088 = vmatpush1.bf16.msra.mxu0 %v9556_v60  ;;  %v9645_v58 = vld [vmem:[#allocation11 + $0xea4] ss:$16 sps:$4 sm:$0xff]   ;;  %v9648_v60 = vld [vmem:[#allocation11 + $0xeac] ss:$16 sps:$4 sm:$0xff]  }
 0x71f   : > { %6702 = vmatprep.subr.bf16.mxu1 %v9561_v62  ;;  %7089 = vmatprep.subr.bf16.mxu0 %v9564_v1  ;;  %v9643_v62 = vld [vmem:[#allocation11 + $0xea0] ss:$16 sps:$4 sm:$0xff]   ;;  %v9646_v1 = vld [vmem:[#allocation11 + $0xea8] ss:$16 sps:$4 sm:$0xff]  }
 0x722   : > { %6703 = vmatpush1.bf16.msra.mxu1 %v9559_v5  ;;  %7090 = vmatpush1.bf16.msra.mxu0 %v9562_v6  ;;  %v9651_v5 = vld [vmem:[#allocation11 + $0xec4] ss:$16 sps:$4 sm:$0xff]   ;;  %v9654_v6 = vld [vmem:[#allocation11 + $0xecc] ss:$16 sps:$4 sm:$0xff]  }
 0x723   : > { %6704 = vmatprep.subr.bf16.mxu1 %v9567_v48  ;;  %7091 = vmatprep.subr.bf16.mxu0 %v9570_v7  ;;  %v9649_v48 = vld [vmem:[#allocation11 + $0xec0] ss:$16 sps:$4 sm:$0xff]   ;;  %v9652_v7 = vld [vmem:[#allocation11 + $0xec8] ss:$16 sps:$4 sm:$0xff]  }
 0x726   : > { %6705 = vmatpush1.bf16.msra.mxu1 %v9565_v50  ;;  %7092 = vmatpush1.bf16.msra.mxu0 %v9568_v52  ;;  %v9657_v50 = vld [vmem:[#allocation11 + $0xee4] ss:$16 sps:$4 sm:$0xff]   ;;  %v9660_v52 = vld [vmem:[#allocation11 + $0xeec] ss:$16 sps:$4 sm:$0xff]  }
 0x727   : > { %6706 = vmatprep.subr.bf16.mxu1 %v9573_v8  ;;  %7093 = vmatprep.subr.bf16.mxu0 %v9576_v9  ;;  %v9655_v8 = vld [vmem:[#allocation11 + $0xee0] ss:$16 sps:$4 sm:$0xff]   ;;  %v9658_v9 = vld [vmem:[#allocation11 + $0xee8] ss:$16 sps:$4 sm:$0xff]  }
 0x72a   : > { %6707 = vmatpush1.bf16.msra.mxu1 %v9571_v10  ;;  %7094 = vmatpush1.bf16.msra.mxu0 %v9574_v27  ;;  %v9663_v10 = vld [vmem:[#allocation11 + $0xf04] ss:$16 sps:$4 sm:$0xff]   ;;  %v9666_v27 = vld [vmem:[#allocation11 + $0xf0c] ss:$16 sps:$4 sm:$0xff]  }
 0x72b   : > { %6708 = vmatprep.subr.bf16.mxu1 %v9579_v41  ;;  %7095 = vmatprep.subr.bf16.mxu0 %v9582_v43  ;;  %v9661_v41 = vld [vmem:[#allocation11 + $0xf00] ss:$16 sps:$4 sm:$0xff]   ;;  %v9664_v43 = vld [vmem:[#allocation11 + $0xf08] ss:$16 sps:$4 sm:$0xff]  }
 0x72e   : > { %6709 = vmatpush1.bf16.msra.mxu1 %v9577_v40  ;;  %7096 = vmatpush1.bf16.msra.mxu0 %v9580_v49  ;;  %v9669_v40 = vld [vmem:[#allocation11 + $0xf24] ss:$16 sps:$4 sm:$0xff]   ;;  %v9672_v49 = vld [vmem:[#allocation11 + $0xf2c] ss:$16 sps:$4 sm:$0xff]  }
 0x72f   : > { %6710 = vmatprep.subr.bf16.mxu1 %v9585_v53  ;;  %7097 = vmatprep.subr.bf16.mxu0 %v9588_v55  ;;  %v9667_v53 = vld [vmem:[#allocation11 + $0xf20] ss:$16 sps:$4 sm:$0xff]   ;;  %v9670_v55 = vld [vmem:[#allocation11 + $0xf28] ss:$16 sps:$4 sm:$0xff]  }
 0x732   : > { %6711 = vmatpush1.bf16.msra.mxu1 %v9583_v57  ;;  %7098 = vmatpush1.bf16.msra.mxu0 %v9586_v26  ;;  %v9675_v57 = vld [vmem:[#allocation11 + $0xf44] ss:$16 sps:$4 sm:$0xff]   ;;  %v9678_v26 = vld [vmem:[#allocation11 + $0xf4c] ss:$16 sps:$4 sm:$0xff]  }
 0x733   : > { %6712 = vmatprep.subr.bf16.mxu1 %v9591_v61  ;;  %7099 = vmatprep.subr.bf16.mxu0 %v9594_v63  ;;  %v9673_v61 = vld [vmem:[#allocation11 + $0xf40] ss:$16 sps:$4 sm:$0xff]   ;;  %v9676_v63 = vld [vmem:[#allocation11 + $0xf48] ss:$16 sps:$4 sm:$0xff]  }
 0x736   : > { %6713 = vmatpush1.bf16.msra.mxu1 %v9589_v3  ;;  %7100 = vmatpush1.bf16.msra.mxu0 %v9592_v59  ;;  %v9681_v3 = vld [vmem:[#allocation11 + $0xf64] ss:$16 sps:$4 sm:$0xff]   ;;  %v9684_v59 = vld [vmem:[#allocation11 + $0xf6c] ss:$16 sps:$4 sm:$0xff]  }
 0x737   : > { %6714 = vmatprep.subr.bf16.mxu1 %v9597_v13  ;;  %7101 = vmatprep.subr.bf16.mxu0 %v9600_v54  ;;  %v9679_v13 = vld [vmem:[#allocation11 + $0xf60] ss:$16 sps:$4 sm:$0xff]   ;;  %v9682_v54 = vld [vmem:[#allocation11 + $0xf68] ss:$16 sps:$4 sm:$0xff]  }
 0x73a   : > { %6715 = vmatpush1.bf16.msra.mxu1 %v9595_v18  ;;  %7102 = vmatpush1.bf16.msra.mxu0 %v9598_v19  ;;  %v9687_v18 = vld [vmem:[#allocation11 + $0xf84] ss:$16 sps:$4 sm:$0xff]   ;;  %v9690_v19 = vld [vmem:[#allocation11 + $0xf8c] ss:$16 sps:$4 sm:$0xff]  }
 0x73b   : > { %6716 = vmatprep.subr.bf16.mxu1 %v9603_v20  ;;  %7103 = vmatprep.subr.bf16.mxu0 %v9606_v0  ;;  %v9685_v20 = vld [vmem:[#allocation11 + $0xf80] ss:$16 sps:$4 sm:$0xff]   ;;  %v9688_v0 = vld [vmem:[#allocation11 + $0xf88] ss:$16 sps:$4 sm:$0xff]  }
 0x73e   : > { %6717 = vmatpush1.bf16.msra.mxu1 %v9601_v2  ;;  %7104 = vmatpush1.bf16.msra.mxu0 %v9604_v51  ;;  %v9693_v2 = vld [vmem:[#allocation11 + $0xfa4] ss:$16 sps:$4 sm:$0xff]   ;;  %v9696_v51 = vld [vmem:[#allocation11 + $0xfac] ss:$16 sps:$4 sm:$0xff]  }
 0x73f   : > { %6718 = vmatprep.subr.bf16.mxu1 %v9609_v4  ;;  %7105 = vmatprep.subr.bf16.mxu0 %v9612_v21  ;;  %v9691_v4 = vld [vmem:[#allocation11 + $0xfa0] ss:$16 sps:$4 sm:$0xff]   ;;  %v9694_v21 = vld [vmem:[#allocation11 + $0xfa8] ss:$16 sps:$4 sm:$0xff]  }
 0x742   : > { %6719 = vmatpush1.bf16.msra.mxu1 %v9607_v22  ;;  %7106 = vmatpush1.bf16.msra.mxu0 %v9610_v23  ;;  %v9699_v22 = vld [vmem:[#allocation11 + $0xfc4] ss:$16 sps:$4 sm:$0xff]   ;;  %v9702_v23 = vld [vmem:[#allocation11 + $0xfcc] ss:$16 sps:$4 sm:$0xff]  }
 0x743   : > { %6731 = vmatprep.subr.bf16.mxu1 %v9615_v47  ;;  %7118 = vmatprep.subr.bf16.mxu0 %v9618_v38  ;;  %v9697_v47 = vld [vmem:[#allocation11 + $0xfc0] ss:$16 sps:$4 sm:$0xff]   ;;  %v9700_v38 = vld [vmem:[#allocation11 + $0xfc8] ss:$16 sps:$4 sm:$0xff]  }
 0x745   : > { %6721 = vmatmul.mubr.bf16.vlgmr.msra.gmra.mrb[156].mxu1 %v10887_v15  ;;  %7108 = vmatmul.mubr.bf16.vlgmr.msra.gmra.mrb[44].mxu0 %v10887_v15  ;;  %v9636_v15 = vld [vmem:[#allocation11 + $0xe6c] ss:$16 sps:$4 sm:$0xff]  }
 0x746   : > { %6732 = vmatpush1.bf16.msra.mxu1 %v9613_v14  ;;  %7119 = vmatpush1.bf16.msra.mxu0 %v9616_v24  ;;  %v9705_v14 = vld [vmem:[#allocation11 + $0xfe4] ss:$16 sps:$4 sm:$0xff]   ;;  %v9708_v24 = vld [vmem:[#allocation11 + $0xfec] ss:$16 sps:$4 sm:$0xff]  }
 0x747   : > { %6733 = vmatprep.subr.bf16.mxu1 %v9621_v29  ;;  %7120 = vmatprep.subr.bf16.mxu0 %v9624_v12  ;;  %v9703_v29 = vld [vmem:[#allocation11 + $0xfe0] ss:$16 sps:$4 sm:$0xff]   ;;  %v9706_v12 = vld [vmem:[#allocation11 + $0xfe8] ss:$16 sps:$4 sm:$0xff]  }
 0x748   : > { %6763 = vmatprep.mubr.bf16.mxu1 %v10897_v28  ;;  %7150 = vmatprep.mubr.bf16.mxu0 %v10897_v28  ;;  %v9640_v28 = vld [vmem:[#allocation11 + $0xe88] ss:$16 sps:$4 sm:$0xff]  }
 0x74a   : > { %6734 = vmatpush1.bf16.msra.mxu1 %v9619_v11  ;;  %7121 = vmatpush1.bf16.msra.mxu0 %v9622_v30  ;;  %v9711_v11 = vld [vmem:[#allocation11 + $0x1004] ss:$16 sps:$4 sm:$0xff]   ;;  %v9714_v30 = vld [vmem:[#allocation11 + $0x100c] ss:$16 sps:$4 sm:$0xff]  }
 0x74b   : > { %6735 = vmatprep.subr.bf16.mxu1 %v9627_v31  ;;  %7122 = vmatprep.subr.bf16.mxu0 %v9630_v32  ;;  %v9709_v31 = vld [vmem:[#allocation11 + $0x1000] ss:$16 sps:$4 sm:$0xff]   ;;  %v9712_v32 = vld [vmem:[#allocation11 + $0x1008] ss:$16 sps:$4 sm:$0xff]  }
 0x74e   : > { %6736 = vmatpush1.bf16.msra.mxu1 %v9625_v33  ;;  %7123 = vmatpush1.bf16.msra.mxu0 %v9628_v17  ;;  %v9717_v33 = vld [vmem:[#allocation11 + $0x1024] ss:$16 sps:$4 sm:$0xff]   ;;  %v9720_v17 = vld [vmem:[#allocation11 + $0x102c] ss:$16 sps:$4 sm:$0xff]  }
 0x74f   : > { %6737 = vmatprep.subr.bf16.mxu1 %v9633_v34  ;;  %7124 = vmatprep.subr.bf16.mxu0 %v9636_v15  ;;  %v9715_v34 = vld [vmem:[#allocation11 + $0x1020] ss:$16 sps:$4 sm:$0xff]   ;;  %v9718_v15 = vld [vmem:[#allocation11 + $0x1028] ss:$16 sps:$4 sm:$0xff]  }
 0x752   : > { %6738 = vmatpush1.bf16.msra.mxu1 %v9631_v35  ;;  %7125 = vmatpush1.bf16.msra.mxu0 %v9634_v36  ;;  %v9723_v35 = vld [vmem:[#allocation11 + $0x1044] ss:$16 sps:$4 sm:$0xff]   ;;  %v9726_v36 = vld [vmem:[#allocation11 + $0x104c] ss:$16 sps:$4 sm:$0xff]  }
 0x753   : > { %6739 = vmatprep.subr.bf16.mxu1 %v9639_v37  ;;  %7126 = vmatprep.subr.bf16.mxu0 %v9642_v39  ;;  %v9721_v37 = vld [vmem:[#allocation11 + $0x1040] ss:$16 sps:$4 sm:$0xff]   ;;  %v9724_v39 = vld [vmem:[#allocation11 + $0x1048] ss:$16 sps:$4 sm:$0xff]  }
 0x756   : > { %6740 = vmatpush1.bf16.msra.mxu1 %v9637_v45  ;;  %7127 = vmatpush1.bf16.msra.mxu0 %v9640_v28  ;;  %v9729_v45 = vld [vmem:[#allocation11 + $0x1064] ss:$16 sps:$4 sm:$0xff]   ;;  %v9727_v28 = vld [vmem:[#allocation11 + $0x1060] ss:$16 sps:$4 sm:$0xff]  }
 0x757   : > { %6741 = vmatprep.subr.bf16.mxu1 %v9645_v58  ;;  %7128 = vmatprep.subr.bf16.mxu0 %v9648_v60  ;;  %v9730_v58 = vld [vmem:[#allocation11 + $0x1068] ss:$16 sps:$4 sm:$0xff]   ;;  %v9735_v60 = vld [vmem:[#allocation11 + $0x1084] ss:$16 sps:$4 sm:$0xff]  }
 0x75a   : > { %6742 = vmatpush1.bf16.msra.mxu1 %v9643_v62  ;;  %7129 = vmatpush1.bf16.msra.mxu0 %v9646_v1  ;;  %v9733_v62 = vld [vmem:[#allocation11 + $0x1080] ss:$16 sps:$4 sm:$0xff]   ;;  %v9736_v1 = vld [vmem:[#allocation11 + $0x1088] ss:$16 sps:$4 sm:$0xff]  }
 0x75b   : > { %6743 = vmatprep.subr.bf16.mxu1 %v9651_v5  ;;  %7130 = vmatprep.subr.bf16.mxu0 %v9654_v6  ;;  %v9741_v5 = vld [vmem:[#allocation11 + $0x10a4] ss:$16 sps:$4 sm:$0xff]   ;;  %v9744_v6 = vld [vmem:[#allocation11 + $0x10ac] ss:$16 sps:$4 sm:$0xff]  }
 0x75e   : > { %6744 = vmatpush1.bf16.msra.mxu1 %v9649_v48  ;;  %7131 = vmatpush1.bf16.msra.mxu0 %v9652_v7  ;;  %v9739_v48 = vld [vmem:[#allocation11 + $0x10a0] ss:$16 sps:$4 sm:$0xff]   ;;  %v9742_v7 = vld [vmem:[#allocation11 + $0x10a8] ss:$16 sps:$4 sm:$0xff]  }
 0x75f   : > { %6745 = vmatprep.subr.bf16.mxu1 %v9657_v50  ;;  %7132 = vmatprep.subr.bf16.mxu0 %v9660_v52  ;;  %v9747_v50 = vld [vmem:[#allocation11 + $0x10c4] ss:$16 sps:$4 sm:$0xff]   ;;  %v9750_v52 = vld [vmem:[#allocation11 + $0x10cc] ss:$16 sps:$4 sm:$0xff]  }
 0x762   : > { %6746 = vmatpush1.bf16.msra.mxu1 %v9655_v8  ;;  %7133 = vmatpush1.bf16.msra.mxu0 %v9658_v9  ;;  %v9745_v8 = vld [vmem:[#allocation11 + $0x10c0] ss:$16 sps:$4 sm:$0xff]   ;;  %v9748_v9 = vld [vmem:[#allocation11 + $0x10c8] ss:$16 sps:$4 sm:$0xff]  }
 0x763   : > { %6747 = vmatprep.subr.bf16.mxu1 %v9663_v10  ;;  %7134 = vmatprep.subr.bf16.mxu0 %v9666_v27  ;;  %v9753_v10 = vld [vmem:[#allocation11 + $0x10e4] ss:$16 sps:$4 sm:$0xff]   ;;  %v9756_v27 = vld [vmem:[#allocation11 + $0x10ec] ss:$16 sps:$4 sm:$0xff]  }
 0x766   : > { %6748 = vmatpush1.bf16.msra.mxu1 %v9661_v41  ;;  %7135 = vmatpush1.bf16.msra.mxu0 %v9664_v43  ;;  %v9751_v41 = vld [vmem:[#allocation11 + $0x10e0] ss:$16 sps:$4 sm:$0xff]   ;;  %v9754_v43 = vld [vmem:[#allocation11 + $0x10e8] ss:$16 sps:$4 sm:$0xff]  }
 0x767   : > { %6749 = vmatprep.subr.bf16.mxu1 %v9669_v40  ;;  %7136 = vmatprep.subr.bf16.mxu0 %v9672_v49  ;;  %v9759_v40 = vld [vmem:[#allocation11 + $0x1104] ss:$16 sps:$4 sm:$0xff]   ;;  %v9762_v49 = vld [vmem:[#allocation11 + $0x110c] ss:$16 sps:$4 sm:$0xff]  }
 0x76a   : > { %6750 = vmatpush1.bf16.msra.mxu1 %v9667_v53  ;;  %7137 = vmatpush1.bf16.msra.mxu0 %v9670_v55  ;;  %v9757_v53 = vld [vmem:[#allocation11 + $0x1100] ss:$16 sps:$4 sm:$0xff]   ;;  %v9760_v55 = vld [vmem:[#allocation11 + $0x1108] ss:$16 sps:$4 sm:$0xff]  }
 0x76b   : > { %6751 = vmatprep.subr.bf16.mxu1 %v9675_v57  ;;  %7138 = vmatprep.subr.bf16.mxu0 %v9678_v26  ;;  %v9765_v57 = vld [vmem:[#allocation11 + $0x1124] ss:$16 sps:$4 sm:$0xff]   ;;  %v9768_v26 = vld [vmem:[#allocation11 + $0x112c] ss:$16 sps:$4 sm:$0xff]  }
 0x76e   : > { %6752 = vmatpush1.bf16.msra.mxu1 %v9673_v61  ;;  %7139 = vmatpush1.bf16.msra.mxu0 %v9676_v63  ;;  %v9763_v61 = vld [vmem:[#allocation11 + $0x1120] ss:$16 sps:$4 sm:$0xff]   ;;  %v9766_v63 = vld [vmem:[#allocation11 + $0x1128] ss:$16 sps:$4 sm:$0xff]  }
 0x76f   : > { %6753 = vmatprep.subr.bf16.mxu1 %v9681_v3  ;;  %7140 = vmatprep.subr.bf16.mxu0 %v9684_v59  ;;  %v9771_v3 = vld [vmem:[#allocation11 + $0x1144] ss:$16 sps:$4 sm:$0xff]   ;;  %v9774_v59 = vld [vmem:[#allocation11 + $0x114c] ss:$16 sps:$4 sm:$0xff]  }
 0x772   : > { %6754 = vmatpush1.bf16.msra.mxu1 %v9679_v13  ;;  %7141 = vmatpush1.bf16.msra.mxu0 %v9682_v54  ;;  %v9769_v13 = vld [vmem:[#allocation11 + $0x1140] ss:$16 sps:$4 sm:$0xff]   ;;  %v9772_v54 = vld [vmem:[#allocation11 + $0x1148] ss:$16 sps:$4 sm:$0xff]  }
 0x773   : > { %6755 = vmatprep.subr.bf16.mxu1 %v9687_v18  ;;  %7142 = vmatprep.subr.bf16.mxu0 %v9690_v19  ;;  %v9777_v18 = vld [vmem:[#allocation11 + $0x1164] ss:$16 sps:$4 sm:$0xff]   ;;  %v9780_v19 = vld [vmem:[#allocation11 + $0x116c] ss:$16 sps:$4 sm:$0xff]  }
 0x776   : > { %6756 = vmatpush1.bf16.msra.mxu1 %v9685_v20  ;;  %7143 = vmatpush1.bf16.msra.mxu0 %v9688_v0  ;;  %v9775_v20 = vld [vmem:[#allocation11 + $0x1160] ss:$16 sps:$4 sm:$0xff]   ;;  %v9778_v0 = vld [vmem:[#allocation11 + $0x1168] ss:$16 sps:$4 sm:$0xff]  }
 0x777   : > { %6757 = vmatprep.subr.bf16.mxu1 %v9693_v2  ;;  %7144 = vmatprep.subr.bf16.mxu0 %v9696_v51  ;;  %v9783_v2 = vld [vmem:[#allocation11 + $0x1184] ss:$16 sps:$4 sm:$0xff]   ;;  %v9786_v51 = vld [vmem:[#allocation11 + $0x118c] ss:$16 sps:$4 sm:$0xff]  }
 0x77a   : > { %6758 = vmatpush1.bf16.msra.mxu1 %v9691_v4  ;;  %7145 = vmatpush1.bf16.msra.mxu0 %v9694_v21  ;;  %v9781_v4 = vld [vmem:[#allocation11 + $0x1180] ss:$16 sps:$4 sm:$0xff]   ;;  %v9784_v21 = vld [vmem:[#allocation11 + $0x1188] ss:$16 sps:$4 sm:$0xff]  }
 0x77b   : > { %6759 = vmatprep.subr.bf16.mxu1 %v9699_v22  ;;  %7146 = vmatprep.subr.bf16.mxu0 %v9702_v23  ;;  %v9789_v22 = vld [vmem:[#allocation11 + $0x11a4] ss:$16 sps:$4 sm:$0xff]   ;;  %v9792_v23 = vld [vmem:[#allocation11 + $0x11ac] ss:$16 sps:$4 sm:$0xff]  }
 0x77e   : > { %6760 = vmatpush1.bf16.msra.mxu1 %v9697_v47  ;;  %7147 = vmatpush1.bf16.msra.mxu0 %v9700_v38  ;;  %v9787_v47 = vld [vmem:[#allocation11 + $0x11a0] ss:$16 sps:$4 sm:$0xff]   ;;  %v9790_v38 = vld [vmem:[#allocation11 + $0x11a8] ss:$16 sps:$4 sm:$0xff]  }
 0x77f   : > { %6761 = vmatprep.subr.bf16.mxu1 %v9705_v14  ;;  %7148 = vmatprep.subr.bf16.mxu0 %v9708_v24  ;;  %v9795_v14 = vld [vmem:[#allocation11 + $0x11c4] ss:$16 sps:$4 sm:$0xff]   ;;  %v9798_v24 = vld [vmem:[#allocation11 + $0x11cc] ss:$16 sps:$4 sm:$0xff]  }
 0x782   : > { %6762 = vmatpush1.bf16.msra.mxu1 %v9703_v29  ;;  %7149 = vmatpush1.bf16.msra.mxu0 %v9706_v12  ;;  %v9793_v29 = vld [vmem:[#allocation11 + $0x11c0] ss:$16 sps:$4 sm:$0xff]   ;;  %v9796_v12 = vld [vmem:[#allocation11 + $0x11c8] ss:$16 sps:$4 sm:$0xff]  }
 0x783   : > { %6774 = vmatprep.subr.bf16.mxu1 %v9711_v11  ;;  %7161 = vmatprep.subr.bf16.mxu0 %v9714_v30  ;;  %v9801_v11 = vld [vmem:[#allocation11 + $0x11e4] ss:$16 sps:$4 sm:$0xff]   ;;  %v9804_v30 = vld [vmem:[#allocation11 + $0x11ec] ss:$16 sps:$4 sm:$0xff]  }
 0x785   : > { %6764 = vmatmul.mubr.bf16.vlgmr.msra.gmra.mrb[156].mxu1 %v10895_v25  ;;  %7151 = vmatmul.mubr.bf16.vlgmr.msra.gmra.mrb[44].mxu0 %v10895_v25  ;;  %v9732_v25 = vld [vmem:[#allocation11 + $0x106c] ss:$16 sps:$4 sm:$0xff]  }
 0x786   : > { %6775 = vmatpush1.bf16.msra.mxu1 %v9709_v31  ;;  %6806 = vmatprep.mubr.bf16.mxu1 %v10901_v56  ;;  %v9799_v31 = vld [vmem:[#allocation11 + $0x11e0] ss:$16 sps:$4 sm:$0xff]  }
 0x787   : > { %7162 = vmatpush1.bf16.msra.mxu0 %v9712_v32  ;;  %7193 = vmatprep.mubr.bf16.mxu0 %v10901_v56  ;;  %v9738_v56 = vld [vmem:[#allocation11 + $0x108c] ss:$16 sps:$4 sm:$0xff]   ;;  %v9802_v32 = vld [vmem:[#allocation11 + $0x11e8] ss:$16 sps:$4 sm:$0xff]  }
 0x788   : > { %6776 = vmatprep.subr.bf16.mxu1 %v9717_v33  ;;  %7163 = vmatprep.subr.bf16.mxu0 %v9720_v17  ;;  %v7204_v33 = vld [vmem:[#allocation13] sm:$0xf]  ;;  %v7216_v17 = vsub.s32 2, %v10813_v42 }
 0x78a   : > { %6777 = vmatpush1.bf16.msra.mxu1 %v9715_v34  ;;  %v7220_v34 = vsub.s32 3, %v10813_v42 }
 0x78b   : > { %7164 = vmatpush1.bf16.msra.mxu0 %v9718_v15  ;;  %6778 = vmatprep.subr.bf16.mxu1 %v9723_v35  ;;  %v7234_v15 = vld [vmem:[#allocation14] sm:$0xf]  ;;  %v7209_v35 = vrot.slane %v7204_v33, %v10816_v44 }
 0x78c   : > { %7165 = vmatprep.subr.bf16.mxu0 %v9726_v36  ;;  %v7217_v36 = vrot.slane %v7204_v33, %v7216_v17 }
 0x78e   : > { %6779 = vmatpush1.bf16.msra.mxu1 %v9721_v37  ;;  %v7213_v37 = vrot.slane %v7204_v33, %v10819_v46 }
 0x78f   : > { %7166 = vmatpush1.bf16.msra.mxu0 %v9724_v39  ;;  %6780 = vmatprep.subr.bf16.mxu1 %v9729_v45  ;;  %v7239_v39 = vrot.slane %v7234_v15, %v10816_v44  ;;  %v7221_v45 = vrot.slane %v7204_v33, %v7220_v34 }
 0x790   : > { %7167 = vmatprep.subr.bf16.mxu0 %v9732_v25 }
 0x792   : > { %6781 = vmatpush1.bf16.msra.mxu1 %v9727_v28  ;;  %v7247_v28 = vrot.slane %v7234_v15, %v7216_v17 }
 0x793   : > { %7168 = vmatpush1.bf16.msra.mxu0 %v9730_v58  ;;  %6782 = vmatprep.subr.bf16.mxu1 %v9735_v60  ;;  %v7243_v58 = vrot.slane %v7234_v15, %v10819_v46 }
 0x794   : > { %7169 = vmatprep.subr.bf16.mxu0 %v9738_v56 }
 0x796   : > { %6783 = vmatpush1.bf16.msra.mxu1 %v9733_v62  ;;  %v7251_v62 = vrot.slane %v7234_v15, %v7220_v34 }
 0x797   : > { %7170 = vmatpush1.bf16.msra.mxu0 %v9736_v1  ;;  %6784 = vmatprep.subr.bf16.mxu1 %v9741_v5 }
 0x798   : > { %7171 = vmatprep.subr.bf16.mxu0 %v9744_v6 }
 0x79a   : > { %6785 = vmatpush1.bf16.msra.mxu1 %v9739_v48 }
 0x79b   : > { %7172 = vmatpush1.bf16.msra.mxu0 %v9742_v7  ;;  %6786 = vmatprep.subr.bf16.mxu1 %v9747_v50 }
 0x79c   : > { %7173 = vmatprep.subr.bf16.mxu0 %v9750_v52 }
 0x79e   : > { %6787 = vmatpush1.bf16.msra.mxu1 %v9745_v8 }
 0x79f   : > { %7174 = vmatpush1.bf16.msra.mxu0 %v9748_v9  ;;  %6788 = vmatprep.subr.bf16.mxu1 %v9753_v10  ;;  %v7272_v9 = vld [vmem:[#allocation16] sm:$0xff] }
 0x7a0   : > { %7175 = vmatprep.subr.bf16.mxu0 %v9756_v27 }
 0x7a2   : > { %6789 = vmatpush1.bf16.msra.mxu1 %v9751_v41 }
 0x7a3   : > { %7176 = vmatpush1.bf16.msra.mxu0 %v9754_v43  ;;  %6790 = vmatprep.subr.bf16.mxu1 %v9759_v40 }
 0x7a4   : > { %7177 = vmatprep.subr.bf16.mxu0 %v9762_v49  ;;  %v7273_v49 = vld [vmem:[#allocation16 + $0x8] sm:$0xff] }
 0x7a6   : > { %6791 = vmatpush1.bf16.msra.mxu1 %v9757_v53 }
 0x7a7   : > { %7178 = vmatpush1.bf16.msra.mxu0 %v9760_v55  ;;  %6792 = vmatprep.subr.bf16.mxu1 %v9765_v57 }
 0x7a8   : > { %7179 = vmatprep.subr.bf16.mxu0 %v9768_v26 }
 0x7aa   : > { %6793 = vmatpush1.bf16.msra.mxu1 %v9763_v61 }
 0x7ab   : > { %7180 = vmatpush1.bf16.msra.mxu0 %v9766_v63  ;;  %6794 = vmatprep.subr.bf16.mxu1 %v9771_v3  ;;  %v7276_v63 = vld [vmem:[#allocation16 + $0x20] sm:$0xff] }
 0x7ac   : > { %7181 = vmatprep.subr.bf16.mxu0 %v9774_v59 }
 0x7ae   : > { %6795 = vmatpush1.bf16.msra.mxu1 %v9769_v13 }
 0x7af   : > { %7182 = vmatpush1.bf16.msra.mxu0 %v9772_v54  ;;  %6796 = vmatprep.subr.bf16.mxu1 %v9777_v18  ;;  %v7277_v18 = vld [vmem:[#allocation16 + $0x28] sm:$0xff] }
 0x7b0   : > { %7183 = vmatprep.subr.bf16.mxu0 %v9780_v19 }
 0x7b2   : > { %6797 = vmatpush1.bf16.msra.mxu1 %v9775_v20  ;;  %v7274_v20 = vld [vmem:[#allocation16 + $0x10] sm:$0xff] }
 0x7b3   : > { %7184 = vmatpush1.bf16.msra.mxu0 %v9778_v0  ;;  %6798 = vmatprep.subr.bf16.mxu1 %v9783_v2 }
 0x7b4   : > { %7185 = vmatprep.subr.bf16.mxu0 %v9786_v51 }
 0x7b6   : > { %6799 = vmatpush1.bf16.msra.mxu1 %v9781_v4 }
 0x7b7   : > { %7186 = vmatpush1.bf16.msra.mxu0 %v9784_v21  ;;  %6800 = vmatprep.subr.bf16.mxu1 %v9789_v22  ;;  %v7278_v22 = vld [vmem:[#allocation16 + $0x30] sm:$0xff] }
 0x7b8   : > { %7187 = vmatprep.subr.bf16.mxu0 %v9792_v23  ;;  %v7275_v23 = vld [vmem:[#allocation16 + $0x18] sm:$0xff] }
 0x7ba   : > { %6801 = vmatpush1.bf16.msra.mxu1 %v9787_v47 }
 0x7bb   : > { %7188 = vmatpush1.bf16.msra.mxu0 %v9790_v38  ;;  %6802 = vmatprep.subr.bf16.mxu1 %v9795_v14 }
 0x7bc   : > { %7189 = vmatprep.subr.bf16.mxu0 %v9798_v24 }
 0x7be   : > { %6803 = vmatpush1.bf16.msra.mxu1 %v9793_v29  ;;  %v7279_v29 = vld [vmem:[#allocation16 + $0x38] sm:$0xff] }
 0x7bf   : > { %7190 = vmatpush1.bf16.msra.mxu0 %v9796_v12  ;;  %6804 = vmatprep.subr.bf16.mxu1 %v9801_v11 }
 0x7c0   : > { %7191 = vmatprep.subr.bf16.mxu0 %v9804_v30 }
 0x7c2   : > { %6805 = vmatpush1.bf16.msra.mxu1 %v9799_v31 }
 0x7c3   : > { %7192 = vmatpush1.bf16.msra.mxu0 %v9802_v32 }
 0x7c5   : > { %6807 = vmatmul.mubr.bf16.vlgmr.msra.gmra.mrb[156].mxu1 %v10899_v16 }
 0x7c6   : > { %7194 = vmatmul.mubr.bf16.vlgmr.msra.gmra.mrb[44].mxu0 %v10899_v16 }
 0x898   : > { %v6808_v25 = vpop.f32.mrb[156].mxu1 }
 0x899   : > { %v7226_v60 = vmul.f32 %v7209_v35, %v6808_v25  ;;  %v7195_v16 = vpop.f32.mrb[44].mxu0  ;;  %v6810_v56 = vpop.f32.mrb[157].mxu1 }
 0x89a   : > { %v7228_v1 = vmul.f32 %v7217_v36, %v7195_v16  ;;  %v7227_v5 = vmul.f32 %v7213_v37, %v6810_v56  ;;  %v7197_v42 = vpop.f32.mrb[45].mxu0  ;;  %v6812_v6 = vpop.f32.mrb[158].mxu1 }
 0x89b   : > { %v7256_v48 = vadd.f32 %v7239_v39, %v7226_v60  ;;  %v7229_v7 = vmul.f32 %v7221_v45, %v7197_v42  ;;  %v7230_v50 = vmul.f32 %v7209_v35, %v6812_v6  ;;  %v7199_v52 = vpop.f32.mrb[46].mxu0  ;;  %v6814_v8 = vpop.f32.mrb[159].mxu1 }
 0x89c   : > { %v7258_v10 = vadd.f32 %v7247_v28, %v7228_v1  ;;  %v7257_v27 = vadd.f32 %v7243_v58, %v7227_v5  ;;  %v7232_v41 = vmul.f32 %v7217_v36, %v7199_v52  ;;  %v7231_v43 = vmul.f32 %v7213_v37, %v6814_v8  ;;  %v7201_v40 = vpop.f32.mrb[47].mxu0 }
 0x89d   : > { %v7264_v46 = vmax.f32 %v7256_v48, 0.0  ;;  %v7259_v53 = vadd.f32 %v7251_v62, %v7229_v7  ;;  %v7260_v55 = vadd.f32 %v7239_v39, %v7230_v50  ;;  %v7233_v57 = vmul.f32 %v7221_v45, %v7201_v40 }
 0x89e   : > { %v7266_v26 = vmax.f32 %v7258_v10, 0.0  ;;  %v7265_v61 = vmax.f32 %v7257_v27, 0.0  ;;  %v7262_v3 = vadd.f32 %v7247_v28, %v7232_v41  ;;  %v7261_v59 = vadd.f32 %v7243_v58, %v7231_v43  ;;  %v7305_v58 = vld [vmem:[#allocation2] sm:$0x1] }
 0x89f   : > { %v7280_v13 = vmul.f32 %v7272_v9, %v7264_v46  ;;  %v7268_v54 = vmax.f32 %v7260_v55, 0.0  ;;  %v7263_v19 = vadd.f32 %v7251_v62, %v7233_v57  ;;  %v7267_v2 = vmax.f32 %v7259_v53, 0.0 }
 0x8a0   : > { %v7281_v0 = vmul.f32 %v7273_v49, %v7265_v61  ;;  %v7270_v51 = vmax.f32 %v7262_v3, 0.0  ;;  %v7269_v4 = vmax.f32 %v7261_v59, 0.0  ;;  %v7282_v14 = vmul.f32 %v7274_v20, %v7266_v26 }
 0x8a1   : > { %v7284_v21 = vmul.f32 %v7276_v63, %v7268_v54  ;;  %v7271_v38 = vmax.f32 %v7263_v19, 0.0  ;;  %v7283_v11 = vmul.f32 %v7275_v23, %v7267_v2 }
 0x8a2   : > { %v7285_v47 = vmul.f32 %v7277_v18, %v7269_v4  ;;  %v7288_v24 = vadd.f32 %v7281_v0, %v7280_v13  ;;  %v7286_v12 = vmul.f32 %v7278_v22, %v7270_v51 }
 0x8a3   : > { %v7287_v33 = vmul.f32 %v7279_v29, %v7271_v38 }
 0x8a4   : > { %v7289_v30 = vadd.f32 %v7288_v24, %v7282_v14  ;;  %v7293_v31 = vadd.f32 %v7285_v47, %v7284_v21 }
 0x8a6   : > { %v7290_v32 = vadd.f32 %v7289_v30, %v7283_v11  ;;  %v7294_v17 = vadd.f32 %v7293_v31, %v7286_v12 }
 0x8a8   : > { %7291 = vadd.xlane.f32.xlu0 %v7290_v32  ;;  %v7295_v34 = vadd.f32 %v7294_v17, %v7287_v33 }
 0x8ac   : > { %7296 = vadd.xlane.f32.xlu0 %v7295_v34 }
 0x935   : > { %v7292_v15 = vpop.xlane.xlu0 %7291 }
 0x939   : > { %v7297_v35 = vpop.xlane.xlu0 %7296 }
 0x93a   : > { %v7298_v36 = vadd.f32 %v7297_v35, %v7292_v15 }
 0x93c   : > { %v7299_v37 = vrot.slane %v7298_v36, 4 }
 0x93e   : > { %v7300_v39 = vadd.f32 %v7299_v37, %v7298_v36 }
 0x940   : > { %v7301_v45 = vrot.slane %v7300_v39, 2 }
 0x942   : > { %v7302_v25 = vadd.f32 %v7301_v45, %v7300_v39 }
 0x944   : > { %v7303_v28 = vrot.slane %v7302_v25, 1 }
 0x946   : > { %v7304_v60 = vadd.f32 %v7303_v28, %v7302_v25 }
 0x948   : > { %v7306_v16 = vadd.f32 %v7305_v58, %v7304_v60 }
 0x94a   : > { %v7307_v56 = vand.u32 2147483647, %v7306_v16  ;;  %vm7314_vm3 = vcmp.ge.f32.partialorder %v7306_v16, 0.0 }
 0x94c   : > { %v7308_v62 = vsub.f32 0.0, %v7307_v56 }
 0x94e   : > { %v7309_v1 = vmul.f32 1.442695, %v7308_v62 }
 0x950   : > { %9805 = vpow2.f32 %v7309_v1 }
 0x95a   : > { %v9806_v5 = vpop.eup %9805 }
 0x95b   : > { %v7311_v42 = vadd.f32 1.0, %v9806_v5 }
 0x95d   : > { %9807 = vrcp.f32 %v7311_v42 }
 0x967   : > { %v9808_v6 = vpop.eup %9807 }
 0x968   : > { %v7315_v48 = vsub.f32 1.0, %v9808_v6 }
 0x96a   : > { %v7316_v7 = vsel %vm7314_vm3, %v9808_v6, %v7315_v48 }
 0x96b   : > { %v7321_v50 = vrot.slane %v7316_v7, %v10816_v44 }
 0x96d   : > { %7323 = vperm.xlu1 %8621, %v7321_v50  }
 0x9ec   : > { %v7324_v52 = vpop.permute.xlu1 %7323 }
 0x9ed   : > { %7326 = vst [vmem:[%s561_s12] sm:$0xff] %v7324_v52 }
 0x9ee PF: > { %s30_s27 = sadd.s32 1, %s10087_s27  }
 0x9ef   : > { %p27_p11 = scmp.ge.s32.totalorder %s30_s27, 4  }
 0x9f1   :  { %29 = sbr.rel (!%p27_p11) target bundleno = 9 (0x9), region = 139 }
 0x9f8   :  { %7346 = vsyncpa [#allocation4], 1 }
 0x9f9   :  { %7348 = vsyncpa [#allocation4 + $0x1], 1 }
 0x9fa   :  { %7349 = vsyncpa [#allocation6], 1 }
 0x9fb   :  { %7350 = vsyncpa [#allocation9], 1 }
 0x9fc   :  { %7351 = vsyncpa [#allocation12], 1 }
 0x9fd   :  { %7352 = vsyncpa [#allocation15], 1 }

</bundles_post_ra>
